<compile_context>
chip_gen: v5e
topology: v5e:2x2
jax: 0.10.0
libtpu: 0.0.40
codegen_flags: <defaults>
</compile_context>

<pallas_src>
import functools
import math

import jax
import jax.numpy as jnp
import numpy as np
from jax.experimental import pallas as pl
from jax.experimental.pallas import tpu as pltpu

LN_EPS = 1e-5  # torch.nn.LayerNorm default eps


# ----------------------------- shared math helpers ----------------------------
def _layer_norm(h, w, b):
    mu = jnp.mean(h, axis=-1, keepdims=True)
    var = jnp.mean(jnp.square(h - mu), axis=-1, keepdims=True)
    return (h - mu) * jax.lax.rsqrt(var + LN_EPS) * w + b


def _gelu_tanh(x):
    # tanh-approx GELU: uses the EUP slot instead of a long erf polynomial.
    # TODO(synk): PyTorch F.gelu default is the exact erf form; the tanh
    # approximation differs by <= ~3e-3 per element (covered by the test tol).
    c = math.sqrt(2.0 / math.pi)
    return 0.5 * x * (1.0 + jnp.tanh(c * (x + 0.044715 * x * x * x)))


def _gelu_erf(x):
    # exact (erf) GELU -- used only by the pure-JAX reference (PyTorch F.gelu).
    return 0.5 * x * (1.0 + jax.lax.erf(x * (1.0 / math.sqrt(2.0))))


# --------------------------------- the kernel ---------------------------------
def _block_kernel(xfull_ref, ctx_ref,
                  n1w, n1b, wq1, wk1, wv1, wo1, bo1,
                  n2w, n2b, wq2, wk2, wv2, wo2, bo2,
                  n3w, n3b, w_hs, b_hs, w_gate, b_gate, w_out, b_out,
                  o_ref, *, heads, tq):
    f32, bf16 = jnp.float32, jnp.bfloat16

    # q-tile rows of the residual stream: sliced out of the full-sequence VMEM
    # block (aligned: tq is a multiple of 8, start is a multiple of tq).
    q_start = pl.multiple_of(pl.program_id(1) * tq, tq)
    x = xfull_ref[0, pl.ds(q_start, tq), :]      # (TQ, D)  f32
    x_full = xfull_ref[0]                        # (S,  D)  f32 (self-attn K/V)
    ctx = ctx_ref[0]                             # (Sc, Dc) bf16 (cross-attn K/V)
    dim = x.shape[-1]

    def attention(q_rows, kv_rows, wq, wk, wv, wo, bo):
        # q_rows / kv_rows are bf16.  Per-head weights are (H, Din, Dh) and
        # (H, Dh, D) slabs (leading-dim indexed), so there is no lane-offset
        # slicing of activations and no concatenate; every head's output
        # projection accumulates into the same f32 (TQ, D) buffer.
        acc = jnp.zeros((tq, dim), f32)
        for h in range(heads):                               # static unroll
            qh = jnp.dot(q_rows, wq[h], preferred_element_type=f32).astype(bf16)
            kh = jnp.dot(kv_rows, wk[h], preferred_element_type=f32).astype(bf16)
            vh = jnp.dot(kv_rows, wv[h], preferred_element_type=f32).astype(bf16)
            # softmax scale is folded into wq in the wrapper -> no score scaling.
            s = jax.lax.dot_general(qh, kh, (((1,), (1,)), ((), ())),
                                    preferred_element_type=f32)       # (TQ, Sk)
            s = s - jnp.max(s, axis=-1, keepdims=True)
            e = jnp.exp(s)
            p = e * pl.reciprocal(jnp.sum(e, axis=-1, keepdims=True), approx=True)
            oh = jnp.dot(p.astype(bf16), vh, preferred_element_type=f32)  # (TQ, Dh)
            acc = acc + jnp.dot(oh.astype(bf16), wo[h], preferred_element_type=f32)
        return acc + bo[0]

    h = x
    # --- self-attention (K/V come from norm1 of the *original* full sequence) ---
    # TODO(synk): for very long S, tile the K/V axis with online-softmax
    # (flash-style) accumulation and cache the per-head self-attn K/V in a VMEM
    # scratch across q-tiles instead of recomputing them per tile.
    nh_q = _layer_norm(h, n1w[0], n1b[0]).astype(bf16)
    nh_kv = _layer_norm(x_full, n1w[0], n1b[0]).astype(bf16)
    h = attention(nh_q, nh_kv, wq1, wk1, wv1, wo1, bo1) + h
    # --- cross-attention (K/V from raw context, query from norm2(h)) ---
    nh = _layer_norm(h, n2w[0], n2b[0]).astype(bf16)
    h = attention(nh, ctx, wq2, wk2, wv2, wo2, bo2) + h
    # --- GEGLU feed-forward (projection split into two (D, 4D) matmuls) ---
    nh = _layer_norm(h, n3w[0], n3b[0]).astype(bf16)
    hs = jnp.dot(nh, w_hs[...], preferred_element_type=f32) + b_hs[0]
    gate = jnp.dot(nh, w_gate[...], preferred_element_type=f32) + b_gate[0]
    act = (hs * _gelu_tanh(gate)).astype(bf16)
    ff = jnp.dot(act, w_out[...], preferred_element_type=f32) + b_out[0]
    o_ref[0] = (h + ff).astype(o_ref.dtype)


# ------------------------- host-side parameter preparation ---------------------
def _prep_params(params, heads, head_dim):
    (n1w, n1b, a1wq, a1wk, a1wv, a1wo, a1bo,
     n2w, n2b, a2wq, a2wk, a2wv, a2wo, a2bo,
     n3w, n3b, ffw1, ffb1, ffw2, ffb2) = params
    scale = head_dim ** -0.5
    ff_inner = ffw2.shape[0]
    bf16 = jnp.bfloat16

    def split_in(w):   # (Din, H*Dh) -> (H, Din, Dh), bf16
        return jnp.transpose(w.reshape(w.shape[0], heads, head_dim),
                             (1, 0, 2)).astype(bf16)

    def split_out(w):  # (H*Dh, D) -> (H, Dh, D), bf16
        return w.reshape(heads, head_dim, w.shape[1]).astype(bf16)

    return (
        n1w, n1b,
        split_in(a1wq * scale), split_in(a1wk), split_in(a1wv),
        split_out(a1wo), a1bo,
        n2w, n2b,
        split_in(a2wq * scale), split_in(a2wk), split_in(a2wv),
        split_out(a2wo), a2bo,
        n3w, n3b,
        ffw1[:, :ff_inner].astype(bf16), ffb1[:, :ff_inner],
        ffw1[:, ff_inner:].astype(bf16), ffb1[:, ff_inner:],
        ffw2.astype(bf16), ffb2,
    )


# --------------------------------- wrapper -------------------------------------
def run_block(hidden, context, params, *, heads, head_dim, tq=None):
    B, S, D = hidden.shape
    _, Sc, Dc = context.shape
    inner = heads * head_dim
    ff_inner = 4 * D

    if tq is None:
        tq = next((c for c in (256, 128, 64, 32, 16, 8) if S % c == 0), S)
    assert S % tq == 0
    n_tiles = S // tq

    prepped = _prep_params(params, heads, head_dim)
    ctx_bf = context.astype(jnp.bfloat16)
    kernel = functools.partial(_block_kernel, heads=heads, tq=tq)

    def _zero_map(nd):
        zeros = (0,) * nd
        return lambda b, sq: zeros

    in_specs = [
        # hidden: full sequence (residual q-tile is sliced in-kernel; block
        # index is constant along sq so it is not re-fetched per q-tile).
        pl.BlockSpec((1, S, D), lambda b, sq: (b, 0, 0)),
        # context (bf16) for cross-attention K/V.
        pl.BlockSpec((1, Sc, Dc), lambda b, sq: (b, 0, 0)),
    ]
    # Grid-invariant weights: whole-array VMEM blocks with constant index maps.
    # TODO(synk): at production sizes (D~1280) single-buffer these
    # (pipeline_mode=pl.Buffered(1)) or keep them in pl.ANY and stream K/N tiles
    # with pltpu.emit_pipeline so double-buffered weights don't blow the VMEM
    # budget (64 MiB on v7x, 16/32 MiB scoped defaults on v5e/v6e).
    for p in prepped:
        in_specs.append(pl.BlockSpec(p.shape, _zero_map(p.ndim)))

    flops = int(B * (6 * S * D * inner                 # attn1 q/k/v projections
                     + 4 * S * S * inner               # attn1 scores + pv
                     + 2 * S * inner * D               # attn1 out projection
                     + 2 * S * D * inner               # attn2 q projection
                     + 4 * Sc * Dc * inner             # attn2 k/v projections
                     + 4 * S * Sc * inner              # attn2 scores + pv
                     + 2 * S * inner * D               # attn2 out projection
                     + 6 * S * D * ff_inner))          # GEGLU + FF out
    transcendentals = int(B * (heads * S * (S + Sc) + S * ff_inner))
    bytes_accessed = int(sum(int(np.prod(p.shape)) * p.dtype.itemsize for p in prepped)
                         + 2 * hidden.nbytes + ctx_bf.size * 2)

    fn = pl.pallas_call(
        kernel,
        out_shape=jax.ShapeDtypeStruct((B, S, D), jnp.float32),
        grid_spec=pltpu.PrefetchScalarGridSpec(
            num_scalar_prefetch=0,
            grid=(B, n_tiles),
            in_specs=in_specs,
            out_specs=pl.BlockSpec((1, tq, D), lambda b, sq: (b, sq, 0)),
        ),
        compiler_params=pltpu.CompilerParams(
            dimension_semantics=("parallel", "parallel"),
            vmem_limit_bytes=48 * 1024 * 1024),
        cost_estimate=pl.CostEstimate(flops=flops,
                                      transcendentals=transcendentals,
                                      bytes_accessed=bytes_accessed),
    )
    return fn(hidden, ctx_bf, *prepped)


# -------------------------- deterministic parameter init -----------------------
def init_params(key, dim, heads, head_dim, cross_dim):
    inner = heads * head_dim
    ff_inner = 4 * dim
    ki = iter(jax.random.split(key, 24))

    def w(shape, scale):
        return scale * jax.random.normal(next(ki), shape, dtype=jnp.float32)

    # 1-D params are stored as (1, N) so they are 2-D VMEM tiles.
    return (
        1.0 + 0.05 * w((1, dim), 1.0),   # norm1 weight
        w((1, dim), 0.05),               # norm1 bias
        w((dim, inner), 0.08),           # attn1 Wq   (bias=False)
        w((dim, inner), 0.08),           # attn1 Wk
        w((dim, inner), 0.08),           # attn1 Wv
        w((inner, dim), 0.08),           # attn1 Wout
        w((1, dim), 0.02),               # attn1 out bias
        1.0 + 0.05 * w((1, dim), 1.0),   # norm2 weight
        w((1, dim), 0.05),               # norm2 bias
        w((dim, inner), 0.08),           # attn2 Wq
        w((cross_dim, inner), 0.08),     # attn2 Wk (cross_attention_dim)
        w((cross_dim, inner), 0.08),     # attn2 Wv
        w((inner, dim), 0.08),           # attn2 Wout
        w((1, dim), 0.02),               # attn2 out bias
        1.0 + 0.05 * w((1, dim), 1.0),   # norm3 weight
        w((1, dim), 0.05),               # norm3 bias
        w((dim, 2 * ff_inner), 0.08),    # GEGLU proj W (dim -> 2*4*dim)
        w((1, 2 * ff_inner), 0.02),      # GEGLU proj bias
        w((ff_inner, dim), 0.08),        # FF out W
        w((1, dim), 0.02),               # FF out bias
    )


# ------------------------------ pure-JAX reference ------------------------------
def reference(hidden, context, params, heads, head_dim):
    (n1w, n1b, a1wq, a1wk, a1wv, a1wo, a1bo,
     n2w, n2b, a2wq, a2wk, a2wv, a2wo, a2bo,
     n3w, n3b, ffw1, ffb1, ffw2, ffb2) = params
    D = hidden.shape[-1]
    ff_inner = 4 * D
    scale = head_dim ** -0.5

    def mha(qin, kvin, wq, wk, wv, wo, bo):
        B, Sq, _ = qin.shape
        Sk = kvin.shape[1]
        q = (qin @ wq).reshape(B, Sq, heads, head_dim).transpose(0, 2, 1, 3)
        k = (kvin @ wk).reshape(B, Sk, heads, head_dim).transpose(0, 2, 1, 3)
        v = (kvin @ wv).reshape(B, Sk, heads, head_dim).transpose(0, 2, 1, 3)
        s = jnp.einsum('bhqd,bhkd->bhqk', q, k) * scale
        p = jax.nn.softmax(s, axis=-1)
        o = jnp.einsum('bhqk,bhkd->bhqd', p, v)
        o = o.transpose(0, 2, 1, 3).reshape(B, Sq, heads * head_dim)
        return o @ wo + bo

    h = hidden
    nh = _layer_norm(h, n1w, n1b)
    h = mha(nh, nh, a1wq, a1wk, a1wv, a1wo, a1bo) + h
    nh = _layer_norm(h, n2w, n2b)
    h = mha(nh, context, a2wq, a2wk, a2wv, a2wo, a2bo) + h
    nh = _layer_norm(h, n3w, n3b)
    proj = nh @ ffw1 + ffb1
    hs, gate = proj[..., :ff_inner], proj[..., ff_inner:]
    return (hs * _gelu_erf(gate)) @ ffw2 + ffb2 + h


# ------------------------------------ main --------------------------------------
if __name__ == "__main__":
    # Small but lane-dense shapes (D = 128 so stores are unmasked full-lane vst).
    B, S, Sc = 2, 16, 24
    dim, heads, head_dim, cross_dim = 128, 4, 32, 64

    key = jax.random.PRNGKey(0)
    k1, k2, k3 = jax.random.split(key, 3)
    hidden = jax.random.normal(k1, (B, S, dim), dtype=jnp.float32)
    context = jax.random.normal(k2, (B, Sc, cross_dim), dtype=jnp.float32)
    params = init_params(k3, dim, heads, head_dim, cross_dim)

    # tq=8 -> grid=(B, 2): exercises the query-sequence tiling + in-kernel slice.
    out = run_block(hidden, context, params, heads=heads, head_dim=head_dim, tq=8)
    out = jax.block_until_ready(out)

    ref = jax.block_until_ready(reference(hidden, context, params, heads, head_dim))
    # Kernel uses bf16 MXU inputs + tanh GELU + approx reciprocal vs. the exact
    # f32 / erf reference, hence the widened tolerances.
    np.testing.assert_allclose(np.asarray(out), np.asarray(ref),
                               rtol=3e-2, atol=5e-2)
    print("KERNEL_OK")
</pallas_src>

<mosaic_0001>
module attributes {stable_mosaic.version = 11 : i64} {
  func.func @_block_kernel(%arg0: i32, %arg1: i32, %arg2: memref<1x16x128xf32, #tpu.memory_space<vmem>>, %arg3: memref<1x24x64xbf16, #tpu.memory_space<vmem>>, %arg4: memref<1x128xf32, #tpu.memory_space<vmem>>, %arg5: memref<1x128xf32, #tpu.memory_space<vmem>>, %arg6: memref<4x128x32xbf16, #tpu.memory_space<vmem>>, %arg7: memref<4x128x32xbf16, #tpu.memory_space<vmem>>, %arg8: memref<4x128x32xbf16, #tpu.memory_space<vmem>>, %arg9: memref<4x32x128xbf16, #tpu.memory_space<vmem>>, %arg10: memref<1x128xf32, #tpu.memory_space<vmem>>, %arg11: memref<1x128xf32, #tpu.memory_space<vmem>>, %arg12: memref<1x128xf32, #tpu.memory_space<vmem>>, %arg13: memref<4x128x32xbf16, #tpu.memory_space<vmem>>, %arg14: memref<4x64x32xbf16, #tpu.memory_space<vmem>>, %arg15: memref<4x64x32xbf16, #tpu.memory_space<vmem>>, %arg16: memref<4x32x128xbf16, #tpu.memory_space<vmem>>, %arg17: memref<1x128xf32, #tpu.memory_space<vmem>>, %arg18: memref<1x128xf32, #tpu.memory_space<vmem>>, %arg19: memref<1x128xf32, #tpu.memory_space<vmem>>, %arg20: memref<128x512xbf16, #tpu.memory_space<vmem>>, %arg21: memref<1x512xf32, #tpu.memory_space<vmem>>, %arg22: memref<128x512xbf16, #tpu.memory_space<vmem>>, %arg23: memref<1x512xf32, #tpu.memory_space<vmem>>, %arg24: memref<512x128xbf16, #tpu.memory_space<vmem>>, %arg25: memref<1x128xf32, #tpu.memory_space<vmem>>, %arg26: memref<1x8x128xf32, #tpu.memory_space<vmem>>) attributes {dimension_semantics = [#tpu.dimension_semantics<parallel>, #tpu.dimension_semantics<parallel>], iteration_bounds = array<i64: 2, 2>, scalar_prefetch = 0 : i64, scratch_operands = 0 : i64, tpu.core_type = #tpu.core_type<tc>, window_params = [{transform_indices = @transform_0, window_bounds = array<i64: 1, 16, 128>}, {transform_indices = @transform_1, window_bounds = array<i64: 1, 24, 64>}, {pipeline_mode = #tpu.pipeline_mode<synchronous>, transform_indices = @transform_2, window_bounds = array<i64: 1, 128>}, {pipeline_mode = #tpu.pipeline_mode<synchronous>, transform_indices = @transform_3, window_bounds = array<i64: 1, 128>}, {pipeline_mode = #tpu.pipeline_mode<synchronous>, transform_indices = @transform_4, window_bounds = array<i64: 4, 128, 32>}, {pipeline_mode = #tpu.pipeline_mode<synchronous>, transform_indices = @transform_5, window_bounds = array<i64: 4, 128, 32>}, {pipeline_mode = #tpu.pipeline_mode<synchronous>, transform_indices = @transform_6, window_bounds = array<i64: 4, 128, 32>}, {pipeline_mode = #tpu.pipeline_mode<synchronous>, transform_indices = @transform_7, window_bounds = array<i64: 4, 32, 128>}, {pipeline_mode = #tpu.pipeline_mode<synchronous>, transform_indices = @transform_8, window_bounds = array<i64: 1, 128>}, {pipeline_mode = #tpu.pipeline_mode<synchronous>, transform_indices = @transform_9, window_bounds = array<i64: 1, 128>}, {pipeline_mode = #tpu.pipeline_mode<synchronous>, transform_indices = @transform_10, window_bounds = array<i64: 1, 128>}, {pipeline_mode = #tpu.pipeline_mode<synchronous>, transform_indices = @transform_11, window_bounds = array<i64: 4, 128, 32>}, {pipeline_mode = #tpu.pipeline_mode<synchronous>, transform_indices = @transform_12, window_bounds = array<i64: 4, 64, 32>}, {pipeline_mode = #tpu.pipeline_mode<synchronous>, transform_indices = @transform_13, window_bounds = array<i64: 4, 64, 32>}, {pipeline_mode = #tpu.pipeline_mode<synchronous>, transform_indices = @transform_14, window_bounds = array<i64: 4, 32, 128>}, {pipeline_mode = #tpu.pipeline_mode<synchronous>, transform_indices = @transform_15, window_bounds = array<i64: 1, 128>}, {pipeline_mode = #tpu.pipeline_mode<synchronous>, transform_indices = @transform_16, window_bounds = array<i64: 1, 128>}, {pipeline_mode = #tpu.pipeline_mode<synchronous>, transform_indices = @transform_17, window_bounds = array<i64: 1, 128>}, {pipeline_mode = #tpu.pipeline_mode<synchronous>, transform_indices = @transform_18, window_bounds = array<i64: 128, 512>}, {pipeline_mode = #tpu.pipeline_mode<synchronous>, transform_indices = @transform_19, window_bounds = array<i64: 1, 512>}, {pipeline_mode = #tpu.pipeline_mode<synchronous>, transform_indices = @transform_20, window_bounds = array<i64: 128, 512>}, {pipeline_mode = #tpu.pipeline_mode<synchronous>, transform_indices = @transform_21, window_bounds = array<i64: 1, 512>}, {pipeline_mode = #tpu.pipeline_mode<synchronous>, transform_indices = @transform_22, window_bounds = array<i64: 512, 128>}, {pipeline_mode = #tpu.pipeline_mode<synchronous>, transform_indices = @transform_23, window_bounds = array<i64: 1, 128>}, {transform_indices = @transform_24, window_bounds = array<i64: 1, 8, 128>}]} {
    %c8_i32 = arith.constant 8 : i32
    %0 = arith.muli %arg1, %c8_i32 : i32
    %1 = tpu.assume_multiple %0, 8 : i32
    %c0 = arith.constant 0 : index
    %2 = arith.index_cast %1 : i32 to index
    %c0_0 = arith.constant 0 : index
    %3 = vector.load %arg2[%c0, %2, %c0_0] : memref<1x16x128xf32, #tpu.memory_space<vmem>>, vector<1x8x128xf32>
    %4 = vector.shape_cast %3 : vector<1x8x128xf32> to vector<8x128xf32>
    %c0_1 = arith.constant 0 : index
    %c0_2 = arith.constant 0 : index
    %c0_3 = arith.constant 0 : index
    %5 = vector.load %arg2[%c0_1, %c0_2, %c0_3] : memref<1x16x128xf32, #tpu.memory_space<vmem>>, vector<1x16x128xf32>
    %6 = vector.shape_cast %5 : vector<1x16x128xf32> to vector<16x128xf32>
    %c0_4 = arith.constant 0 : index
    %c0_5 = arith.constant 0 : index
    %c0_6 = arith.constant 0 : index
    %7 = vector.load %arg3[%c0_4, %c0_5, %c0_6] : memref<1x24x64xbf16, #tpu.memory_space<vmem>>, vector<1x24x64xbf16>
    %8 = vector.shape_cast %7 : vector<1x24x64xbf16> to vector<24x64xbf16>
    %c0_7 = arith.constant 0 : index
    %c0_8 = arith.constant 0 : index
    %9 = vector.load %arg4[%c0_7, %c0_8] : memref<1x128xf32, #tpu.memory_space<vmem>>, vector<1x128xf32>
    %10 = vector.shape_cast %9 : vector<1x128xf32> to vector<128xf32>
    %c0_9 = arith.constant 0 : index
    %c0_10 = arith.constant 0 : index
    %11 = vector.load %arg5[%c0_9, %c0_10] : memref<1x128xf32, #tpu.memory_space<vmem>>, vector<1x128xf32>
    %12 = vector.shape_cast %11 : vector<1x128xf32> to vector<128xf32>
    %cst = arith.constant dense<0.000000e+00> : vector<8xf32>
    %13 = vector.multi_reduction <add>, %4, %cst [1] : vector<8x128xf32> to vector<8xf32>
    %14 = vector.shape_cast %13 : vector<8xf32> to vector<8x1xf32>
    %cst_11 = arith.constant 1.280000e+02 : f32
    %15 = vector.broadcast %cst_11 : f32 to vector<8x1xf32>
    %16 = arith.divf %14, %15 : vector<8x1xf32>
    %17 = vector.broadcast %16 : vector<8x1xf32> to vector<8x128xf32>
    %18 = arith.subf %4, %17 : vector<8x128xf32>
    %19 = arith.mulf %18, %18 : vector<8x128xf32>
    %cst_12 = arith.constant dense<0.000000e+00> : vector<8xf32>
    %20 = vector.multi_reduction <add>, %19, %cst_12 [1] : vector<8x128xf32> to vector<8xf32>
    %21 = vector.shape_cast %20 : vector<8xf32> to vector<8x1xf32>
    %cst_13 = arith.constant 1.280000e+02 : f32
    %22 = vector.broadcast %cst_13 : f32 to vector<8x1xf32>
    %23 = arith.divf %21, %22 : vector<8x1xf32>
    %24 = vector.broadcast %16 : vector<8x1xf32> to vector<8x128xf32>
    %25 = arith.subf %4, %24 : vector<8x128xf32>
    %cst_14 = arith.constant 9.99999974E-6 : f32
    %26 = vector.broadcast %cst_14 : f32 to vector<8x1xf32>
    %27 = arith.addf %23, %26 : vector<8x1xf32>
    %28 = math.rsqrt %27 : vector<8x1xf32>
    %29 = vector.broadcast %28 : vector<8x1xf32> to vector<8x128xf32>
    %30 = arith.mulf %25, %29 : vector<8x128xf32>
    %31 = vector.shape_cast %10 : vector<128xf32> to vector<1x128xf32>
    %32 = vector.broadcast %31 : vector<1x128xf32> to vector<8x128xf32>
    %33 = arith.mulf %30, %32 : vector<8x128xf32>
    %34 = vector.shape_cast %12 : vector<128xf32> to vector<1x128xf32>
    %35 = vector.broadcast %34 : vector<1x128xf32> to vector<8x128xf32>
    %36 = arith.addf %33, %35 : vector<8x128xf32>
    %37 = arith.truncf %36 : vector<8x128xf32> to vector<8x128xbf16>
    %c0_15 = arith.constant 0 : index
    %c0_16 = arith.constant 0 : index
    %38 = vector.load %arg4[%c0_15, %c0_16] : memref<1x128xf32, #tpu.memory_space<vmem>>, vector<1x128xf32>
    %39 = vector.shape_cast %38 : vector<1x128xf32> to vector<128xf32>
    %c0_17 = arith.constant 0 : index
    %c0_18 = arith.constant 0 : index
    %40 = vector.load %arg5[%c0_17, %c0_18] : memref<1x128xf32, #tpu.memory_space<vmem>>, vector<1x128xf32>
    %41 = vector.shape_cast %40 : vector<1x128xf32> to vector<128xf32>
    %cst_19 = arith.constant dense<0.000000e+00> : vector<16xf32>
    %42 = vector.multi_reduction <add>, %6, %cst_19 [1] : vector<16x128xf32> to vector<16xf32>
    %43 = vector.shape_cast %42 : vector<16xf32> to vector<16x1xf32>
    %cst_20 = arith.constant 1.280000e+02 : f32
    %44 = vector.broadcast %cst_20 : f32 to vector<16x1xf32>
    %45 = arith.divf %43, %44 : vector<16x1xf32>
    %46 = vector.broadcast %45 : vector<16x1xf32> to vector<16x128xf32>
    %47 = arith.subf %6, %46 : vector<16x128xf32>
    %48 = arith.mulf %47, %47 : vector<16x128xf32>
    %cst_21 = arith.constant dense<0.000000e+00> : vector<16xf32>
    %49 = vector.multi_reduction <add>, %48, %cst_21 [1] : vector<16x128xf32> to vector<16xf32>
    %50 = vector.shape_cast %49 : vector<16xf32> to vector<16x1xf32>
    %cst_22 = arith.constant 1.280000e+02 : f32
    %51 = vector.broadcast %cst_22 : f32 to vector<16x1xf32>
    %52 = arith.divf %50, %51 : vector<16x1xf32>
    %53 = vector.broadcast %45 : vector<16x1xf32> to vector<16x128xf32>
    %54 = arith.subf %6, %53 : vector<16x128xf32>
    %cst_23 = arith.constant 9.99999974E-6 : f32
    %55 = vector.broadcast %cst_23 : f32 to vector<16x1xf32>
    %56 = arith.addf %52, %55 : vector<16x1xf32>
    %57 = math.rsqrt %56 : vector<16x1xf32>
    %58 = vector.broadcast %57 : vector<16x1xf32> to vector<16x128xf32>
    %59 = arith.mulf %54, %58 : vector<16x128xf32>
    %60 = vector.shape_cast %39 : vector<128xf32> to vector<1x128xf32>
    %61 = vector.broadcast %60 : vector<1x128xf32> to vector<16x128xf32>
    %62 = arith.mulf %59, %61 : vector<16x128xf32>
    %63 = vector.shape_cast %41 : vector<128xf32> to vector<1x128xf32>
    %64 = vector.broadcast %63 : vector<1x128xf32> to vector<16x128xf32>
    %65 = arith.addf %62, %64 : vector<16x128xf32>
    %66 = arith.truncf %65 : vector<16x128xf32> to vector<16x128xbf16>
    %cst_24 = arith.constant 0.000000e+00 : f32
    %67 = vector.broadcast %cst_24 : f32 to vector<8x128xf32>
    %c0_25 = arith.constant 0 : index
    %c0_26 = arith.constant 0 : index
    %c0_27 = arith.constant 0 : index
    %68 = vector.load %arg6[%c0_25, %c0_26, %c0_27] : memref<4x128x32xbf16, #tpu.memory_space<vmem>>, vector<1x128x32xbf16>
    %69 = vector.shape_cast %68 : vector<1x128x32xbf16> to vector<128x32xbf16>
    %cst_28 = arith.constant dense<0.000000e+00> : vector<8x32xf32>
    %70 = tpu.matmul %37, %69, %cst_28 {dimension_numbers = #tpu.dot_dimension_numbers<[1], [0], [0], [1], [0, 0, 1, 1], [], []>} : vector<8x128xbf16>, vector<128x32xbf16>, vector<8x32xf32> -> vector<8x32xf32>
    %71 = arith.truncf %70 : vector<8x32xf32> to vector<8x32xbf16>
    %c0_29 = arith.constant 0 : index
    %c0_30 = arith.constant 0 : index
    %c0_31 = arith.constant 0 : index
    %72 = vector.load %arg7[%c0_29, %c0_30, %c0_31] : memref<4x128x32xbf16, #tpu.memory_space<vmem>>, vector<1x128x32xbf16>
    %73 = vector.shape_cast %72 : vector<1x128x32xbf16> to vector<128x32xbf16>
    %cst_32 = arith.constant dense<0.000000e+00> : vector<16x32xf32>
    %74 = tpu.matmul %66, %73, %cst_32 {dimension_numbers = #tpu.dot_dimension_numbers<[1], [0], [0], [1], [0, 0, 1, 1], [], []>} : vector<16x128xbf16>, vector<128x32xbf16>, vector<16x32xf32> -> vector<16x32xf32>
    %75 = arith.truncf %74 : vector<16x32xf32> to vector<16x32xbf16>
    %c0_33 = arith.constant 0 : index
    %c0_34 = arith.constant 0 : index
    %c0_35 = arith.constant 0 : index
    %76 = vector.load %arg8[%c0_33, %c0_34, %c0_35] : memref<4x128x32xbf16, #tpu.memory_space<vmem>>, vector<1x128x32xbf16>
    %77 = vector.shape_cast %76 : vector<1x128x32xbf16> to vector<128x32xbf16>
    %cst_36 = arith.constant dense<0.000000e+00> : vector<16x32xf32>
    %78 = tpu.matmul %66, %77, %cst_36 {dimension_numbers = #tpu.dot_dimension_numbers<[1], [0], [0], [1], [0, 0, 1, 1], [], []>} : vector<16x128xbf16>, vector<128x32xbf16>, vector<16x32xf32> -> vector<16x32xf32>
    %79 = arith.truncf %78 : vector<16x32xf32> to vector<16x32xbf16>
    %cst_37 = arith.constant dense<0.000000e+00> : vector<8x16xf32>
    %80 = tpu.matmul %71, %75, %cst_37 {dimension_numbers = #tpu.dot_dimension_numbers<[1], [1], [0], [0], [0, 0, 1, 0], [], []>} : vector<8x32xbf16>, vector<16x32xbf16>, vector<8x16xf32> -> vector<8x16xf32>
    %cst_38 = arith.constant dense<0xFF800000> : vector<8xf32>
    %81 = vector.multi_reduction <maximumf>, %80, %cst_38 [1] : vector<8x16xf32> to vector<8xf32>
    %82 = vector.shape_cast %81 : vector<8xf32> to vector<8x1xf32>
    %83 = vector.broadcast %82 : vector<8x1xf32> to vector<8x16xf32>
    %84 = arith.subf %80, %83 : vector<8x16xf32>
    %85 = math.exp %84 : vector<8x16xf32>
    %cst_39 = arith.constant dense<0.000000e+00> : vector<8xf32>
    %86 = vector.multi_reduction <add>, %85, %cst_39 [1] : vector<8x16xf32> to vector<8xf32>
    %87 = vector.shape_cast %86 : vector<8xf32> to vector<8x1xf32>
    %88 = tpu.reciprocal %87 {approx = true} : vector<8x1xf32> -> vector<8x1xf32>
    %89 = vector.broadcast %88 : vector<8x1xf32> to vector<8x16xf32>
    %90 = arith.mulf %85, %89 : vector<8x16xf32>
    %91 = arith.truncf %90 : vector<8x16xf32> to vector<8x16xbf16>
    %cst_40 = arith.constant dense<0.000000e+00> : vector<8x32xf32>
    %92 = tpu.matmul %91, %79, %cst_40 {dimension_numbers = #tpu.dot_dimension_numbers<[1], [0], [0], [1], [0, 0, 1, 1], [], []>} : vector<8x16xbf16>, vector<16x32xbf16>, vector<8x32xf32> -> vector<8x32xf32>
    %93 = arith.truncf %92 : vector<8x32xf32> to vector<8x32xbf16>
    %c0_41 = arith.constant 0 : index
    %c0_42 = arith.constant 0 : index
    %c0_43 = arith.constant 0 : index
    %94 = vector.load %arg9[%c0_41, %c0_42, %c0_43] : memref<4x32x128xbf16, #tpu.memory_space<vmem>>, vector<1x32x128xbf16>
    %95 = vector.shape_cast %94 : vector<1x32x128xbf16> to vector<32x128xbf16>
    %cst_44 = arith.constant dense<0.000000e+00> : vector<8x128xf32>
    %96 = tpu.matmul %93, %95, %cst_44 {dimension_numbers = #tpu.dot_dimension_numbers<[1], [0], [0], [1], [0, 0, 1, 1], [], []>} : vector<8x32xbf16>, vector<32x128xbf16>, vector<8x128xf32> -> vector<8x128xf32>
    %97 = arith.addf %67, %96 : vector<8x128xf32>
    %c1 = arith.constant 1 : index
    %c0_45 = arith.constant 0 : index
    %c0_46 = arith.constant 0 : index
    %98 = vector.load %arg6[%c1, %c0_45, %c0_46] : memref<4x128x32xbf16, #tpu.memory_space<vmem>>, vector<1x128x32xbf16>
    %99 = vector.shape_cast %98 : vector<1x128x32xbf16> to vector<128x32xbf16>
    %cst_47 = arith.constant dense<0.000000e+00> : vector<8x32xf32>
    %100 = tpu.matmul %37, %99, %cst_47 {dimension_numbers = #tpu.dot_dimension_numbers<[1], [0], [0], [1], [0, 0, 1, 1], [], []>} : vector<8x128xbf16>, vector<128x32xbf16>, vector<8x32xf32> -> vector<8x32xf32>
    %101 = arith.truncf %100 : vector<8x32xf32> to vector<8x32xbf16>
    %c1_48 = arith.constant 1 : index
    %c0_49 = arith.constant 0 : index
    %c0_50 = arith.constant 0 : index
    %102 = vector.load %arg7[%c1_48, %c0_49, %c0_50] : memref<4x128x32xbf16, #tpu.memory_space<vmem>>, vector<1x128x32xbf16>
    %103 = vector.shape_cast %102 : vector<1x128x32xbf16> to vector<128x32xbf16>
    %cst_51 = arith.constant dense<0.000000e+00> : vector<16x32xf32>
    %104 = tpu.matmul %66, %103, %cst_51 {dimension_numbers = #tpu.dot_dimension_numbers<[1], [0], [0], [1], [0, 0, 1, 1], [], []>} : vector<16x128xbf16>, vector<128x32xbf16>, vector<16x32xf32> -> vector<16x32xf32>
    %105 = arith.truncf %104 : vector<16x32xf32> to vector<16x32xbf16>
    %c1_52 = arith.constant 1 : index
    %c0_53 = arith.constant 0 : index
    %c0_54 = arith.constant 0 : index
    %106 = vector.load %arg8[%c1_52, %c0_53, %c0_54] : memref<4x128x32xbf16, #tpu.memory_space<vmem>>, vector<1x128x32xbf16>
    %107 = vector.shape_cast %106 : vector<1x128x32xbf16> to vector<128x32xbf16>
    %cst_55 = arith.constant dense<0.000000e+00> : vector<16x32xf32>
    %108 = tpu.matmul %66, %107, %cst_55 {dimension_numbers = #tpu.dot_dimension_numbers<[1], [0], [0], [1], [0, 0, 1, 1], [], []>} : vector<16x128xbf16>, vector<128x32xbf16>, vector<16x32xf32> -> vector<16x32xf32>
    %109 = arith.truncf %108 : vector<16x32xf32> to vector<16x32xbf16>
    %cst_56 = arith.constant dense<0.000000e+00> : vector<8x16xf32>
    %110 = tpu.matmul %101, %105, %cst_56 {dimension_numbers = #tpu.dot_dimension_numbers<[1], [1], [0], [0], [0, 0, 1, 0], [], []>} : vector<8x32xbf16>, vector<16x32xbf16>, vector<8x16xf32> -> vector<8x16xf32>
    %cst_57 = arith.constant dense<0xFF800000> : vector<8xf32>
    %111 = vector.multi_reduction <maximumf>, %110, %cst_57 [1] : vector<8x16xf32> to vector<8xf32>
    %112 = vector.shape_cast %111 : vector<8xf32> to vector<8x1xf32>
    %113 = vector.broadcast %112 : vector<8x1xf32> to vector<8x16xf32>
    %114 = arith.subf %110, %113 : vector<8x16xf32>
    %115 = math.exp %114 : vector<8x16xf32>
    %cst_58 = arith.constant dense<0.000000e+00> : vector<8xf32>
    %116 = vector.multi_reduction <add>, %115, %cst_58 [1] : vector<8x16xf32> to vector<8xf32>
    %117 = vector.shape_cast %116 : vector<8xf32> to vector<8x1xf32>
    %118 = tpu.reciprocal %117 {approx = true} : vector<8x1xf32> -> vector<8x1xf32>
    %119 = vector.broadcast %118 : vector<8x1xf32> to vector<8x16xf32>
    %120 = arith.mulf %115, %119 : vector<8x16xf32>
    %121 = arith.truncf %120 : vector<8x16xf32> to vector<8x16xbf16>
    %cst_59 = arith.constant dense<0.000000e+00> : vector<8x32xf32>
    %122 = tpu.matmul %121, %109, %cst_59 {dimension_numbers = #tpu.dot_dimension_numbers<[1], [0], [0], [1], [0, 0, 1, 1], [], []>} : vector<8x16xbf16>, vector<16x32xbf16>, vector<8x32xf32> -> vector<8x32xf32>
    %123 = arith.truncf %122 : vector<8x32xf32> to vector<8x32xbf16>
    %c1_60 = arith.constant 1 : index
    %c0_61 = arith.constant 0 : index
    %c0_62 = arith.constant 0 : index
    %124 = vector.load %arg9[%c1_60, %c0_61, %c0_62] : memref<4x32x128xbf16, #tpu.memory_space<vmem>>, vector<1x32x128xbf16>
    %125 = vector.shape_cast %124 : vector<1x32x128xbf16> to vector<32x128xbf16>
    %cst_63 = arith.constant dense<0.000000e+00> : vector<8x128xf32>
    %126 = tpu.matmul %123, %125, %cst_63 {dimension_numbers = #tpu.dot_dimension_numbers<[1], [0], [0], [1], [0, 0, 1, 1], [], []>} : vector<8x32xbf16>, vector<32x128xbf16>, vector<8x128xf32> -> vector<8x128xf32>
    %127 = arith.addf %97, %126 : vector<8x128xf32>
    %c2 = arith.constant 2 : index
    %c0_64 = arith.constant 0 : index
    %c0_65 = arith.constant 0 : index
    %128 = vector.load %arg6[%c2, %c0_64, %c0_65] : memref<4x128x32xbf16, #tpu.memory_space<vmem>>, vector<1x128x32xbf16>
    %129 = vector.shape_cast %128 : vector<1x128x32xbf16> to vector<128x32xbf16>
    %cst_66 = arith.constant dense<0.000000e+00> : vector<8x32xf32>
    %130 = tpu.matmul %37, %129, %cst_66 {dimension_numbers = #tpu.dot_dimension_numbers<[1], [0], [0], [1], [0, 0, 1, 1], [], []>} : vector<8x128xbf16>, vector<128x32xbf16>, vector<8x32xf32> -> vector<8x32xf32>
    %131 = arith.truncf %130 : vector<8x32xf32> to vector<8x32xbf16>
    %c2_67 = arith.constant 2 : index
    %c0_68 = arith.constant 0 : index
    %c0_69 = arith.constant 0 : index
    %132 = vector.load %arg7[%c2_67, %c0_68, %c0_69] : memref<4x128x32xbf16, #tpu.memory_space<vmem>>, vector<1x128x32xbf16>
    %133 = vector.shape_cast %132 : vector<1x128x32xbf16> to vector<128x32xbf16>
    %cst_70 = arith.constant dense<0.000000e+00> : vector<16x32xf32>
    %134 = tpu.matmul %66, %133, %cst_70 {dimension_numbers = #tpu.dot_dimension_numbers<[1], [0], [0], [1], [0, 0, 1, 1], [], []>} : vector<16x128xbf16>, vector<128x32xbf16>, vector<16x32xf32> -> vector<16x32xf32>
    %135 = arith.truncf %134 : vector<16x32xf32> to vector<16x32xbf16>
    %c2_71 = arith.constant 2 : index
    %c0_72 = arith.constant 0 : index
    %c0_73 = arith.constant 0 : index
    %136 = vector.load %arg8[%c2_71, %c0_72, %c0_73] : memref<4x128x32xbf16, #tpu.memory_space<vmem>>, vector<1x128x32xbf16>
    %137 = vector.shape_cast %136 : vector<1x128x32xbf16> to vector<128x32xbf16>
    %cst_74 = arith.constant dense<0.000000e+00> : vector<16x32xf32>
    %138 = tpu.matmul %66, %137, %cst_74 {dimension_numbers = #tpu.dot_dimension_numbers<[1], [0], [0], [1], [0, 0, 1, 1], [], []>} : vector<16x128xbf16>, vector<128x32xbf16>, vector<16x32xf32> -> vector<16x32xf32>
    %139 = arith.truncf %138 : vector<16x32xf32> to vector<16x32xbf16>
    %cst_75 = arith.constant dense<0.000000e+00> : vector<8x16xf32>
    %140 = tpu.matmul %131, %135, %cst_75 {dimension_numbers = #tpu.dot_dimension_numbers<[1], [1], [0], [0], [0, 0, 1, 0], [], []>} : vector<8x32xbf16>, vector<16x32xbf16>, vector<8x16xf32> -> vector<8x16xf32>
    %cst_76 = arith.constant dense<0xFF800000> : vector<8xf32>
    %141 = vector.multi_reduction <maximumf>, %140, %cst_76 [1] : vector<8x16xf32> to vector<8xf32>
    %142 = vector.shape_cast %141 : vector<8xf32> to vector<8x1xf32>
    %143 = vector.broadcast %142 : vector<8x1xf32> to vector<8x16xf32>
    %144 = arith.subf %140, %143 : vector<8x16xf32>
    %145 = math.exp %144 : vector<8x16xf32>
    %cst_77 = arith.constant dense<0.000000e+00> : vector<8xf32>
    %146 = vector.multi_reduction <add>, %145, %cst_77 [1] : vector<8x16xf32> to vector<8xf32>
    %147 = vector.shape_cast %146 : vector<8xf32> to vector<8x1xf32>
    %148 = tpu.reciprocal %147 {approx = true} : vector<8x1xf32> -> vector<8x1xf32>
    %149 = vector.broadcast %148 : vector<8x1xf32> to vector<8x16xf32>
    %150 = arith.mulf %145, %149 : vector<8x16xf32>
    %151 = arith.truncf %150 : vector<8x16xf32> to vector<8x16xbf16>
    %cst_78 = arith.constant dense<0.000000e+00> : vector<8x32xf32>
    %152 = tpu.matmul %151, %139, %cst_78 {dimension_numbers = #tpu.dot_dimension_numbers<[1], [0], [0], [1], [0, 0, 1, 1], [], []>} : vector<8x16xbf16>, vector<16x32xbf16>, vector<8x32xf32> -> vector<8x32xf32>
    %153 = arith.truncf %152 : vector<8x32xf32> to vector<8x32xbf16>
    %c2_79 = arith.constant 2 : index
    %c0_80 = arith.constant 0 : index
    %c0_81 = arith.constant 0 : index
    %154 = vector.load %arg9[%c2_79, %c0_80, %c0_81] : memref<4x32x128xbf16, #tpu.memory_space<vmem>>, vector<1x32x128xbf16>
    %155 = vector.shape_cast %154 : vector<1x32x128xbf16> to vector<32x128xbf16>
    %cst_82 = arith.constant dense<0.000000e+00> : vector<8x128xf32>
    %156 = tpu.matmul %153, %155, %cst_82 {dimension_numbers = #tpu.dot_dimension_numbers<[1], [0], [0], [1], [0, 0, 1, 1], [], []>} : vector<8x32xbf16>, vector<32x128xbf16>, vector<8x128xf32> -> vector<8x128xf32>
    %157 = arith.addf %127, %156 : vector<8x128xf32>
    %c3 = arith.constant 3 : index
    %c0_83 = arith.constant 0 : index
    %c0_84 = arith.constant 0 : index
    %158 = vector.load %arg6[%c3, %c0_83, %c0_84] : memref<4x128x32xbf16, #tpu.memory_space<vmem>>, vector<1x128x32xbf16>
    %159 = vector.shape_cast %158 : vector<1x128x32xbf16> to vector<128x32xbf16>
    %cst_85 = arith.constant dense<0.000000e+00> : vector<8x32xf32>
    %160 = tpu.matmul %37, %159, %cst_85 {dimension_numbers = #tpu.dot_dimension_numbers<[1], [0], [0], [1], [0, 0, 1, 1], [], []>} : vector<8x128xbf16>, vector<128x32xbf16>, vector<8x32xf32> -> vector<8x32xf32>
    %161 = arith.truncf %160 : vector<8x32xf32> to vector<8x32xbf16>
    %c3_86 = arith.constant 3 : index
    %c0_87 = arith.constant 0 : index
    %c0_88 = arith.constant 0 : index
    %162 = vector.load %arg7[%c3_86, %c0_87, %c0_88] : memref<4x128x32xbf16, #tpu.memory_space<vmem>>, vector<1x128x32xbf16>
    %163 = vector.shape_cast %162 : vector<1x128x32xbf16> to vector<128x32xbf16>
    %cst_89 = arith.constant dense<0.000000e+00> : vector<16x32xf32>
    %164 = tpu.matmul %66, %163, %cst_89 {dimension_numbers = #tpu.dot_dimension_numbers<[1], [0], [0], [1], [0, 0, 1, 1], [], []>} : vector<16x128xbf16>, vector<128x32xbf16>, vector<16x32xf32> -> vector<16x32xf32>
    %165 = arith.truncf %164 : vector<16x32xf32> to vector<16x32xbf16>
    %c3_90 = arith.constant 3 : index
    %c0_91 = arith.constant 0 : index
    %c0_92 = arith.constant 0 : index
    %166 = vector.load %arg8[%c3_90, %c0_91, %c0_92] : memref<4x128x32xbf16, #tpu.memory_space<vmem>>, vector<1x128x32xbf16>
    %167 = vector.shape_cast %166 : vector<1x128x32xbf16> to vector<128x32xbf16>
    %cst_93 = arith.constant dense<0.000000e+00> : vector<16x32xf32>
    %168 = tpu.matmul %66, %167, %cst_93 {dimension_numbers = #tpu.dot_dimension_numbers<[1], [0], [0], [1], [0, 0, 1, 1], [], []>} : vector<16x128xbf16>, vector<128x32xbf16>, vector<16x32xf32> -> vector<16x32xf32>
    %169 = arith.truncf %168 : vector<16x32xf32> to vector<16x32xbf16>
    %cst_94 = arith.constant dense<0.000000e+00> : vector<8x16xf32>
    %170 = tpu.matmul %161, %165, %cst_94 {dimension_numbers = #tpu.dot_dimension_numbers<[1], [1], [0], [0], [0, 0, 1, 0], [], []>} : vector<8x32xbf16>, vector<16x32xbf16>, vector<8x16xf32> -> vector<8x16xf32>
    %cst_95 = arith.constant dense<0xFF800000> : vector<8xf32>
    %171 = vector.multi_reduction <maximumf>, %170, %cst_95 [1] : vector<8x16xf32> to vector<8xf32>
    %172 = vector.shape_cast %171 : vector<8xf32> to vector<8x1xf32>
    %173 = vector.broadcast %172 : vector<8x1xf32> to vector<8x16xf32>
    %174 = arith.subf %170, %173 : vector<8x16xf32>
    %175 = math.exp %174 : vector<8x16xf32>
    %cst_96 = arith.constant dense<0.000000e+00> : vector<8xf32>
    %176 = vector.multi_reduction <add>, %175, %cst_96 [1] : vector<8x16xf32> to vector<8xf32>
    %177 = vector.shape_cast %176 : vector<8xf32> to vector<8x1xf32>
    %178 = tpu.reciprocal %177 {approx = true} : vector<8x1xf32> -> vector<8x1xf32>
    %179 = vector.broadcast %178 : vector<8x1xf32> to vector<8x16xf32>
    %180 = arith.mulf %175, %179 : vector<8x16xf32>
    %181 = arith.truncf %180 : vector<8x16xf32> to vector<8x16xbf16>
    %cst_97 = arith.constant dense<0.000000e+00> : vector<8x32xf32>
    %182 = tpu.matmul %181, %169, %cst_97 {dimension_numbers = #tpu.dot_dimension_numbers<[1], [0], [0], [1], [0, 0, 1, 1], [], []>} : vector<8x16xbf16>, vector<16x32xbf16>, vector<8x32xf32> -> vector<8x32xf32>
    %183 = arith.truncf %182 : vector<8x32xf32> to vector<8x32xbf16>
    %c3_98 = arith.constant 3 : index
    %c0_99 = arith.constant 0 : index
    %c0_100 = arith.constant 0 : index
    %184 = vector.load %arg9[%c3_98, %c0_99, %c0_100] : memref<4x32x128xbf16, #tpu.memory_space<vmem>>, vector<1x32x128xbf16>
    %185 = vector.shape_cast %184 : vector<1x32x128xbf16> to vector<32x128xbf16>
    %cst_101 = arith.constant dense<0.000000e+00> : vector<8x128xf32>
    %186 = tpu.matmul %183, %185, %cst_101 {dimension_numbers = #tpu.dot_dimension_numbers<[1], [0], [0], [1], [0, 0, 1, 1], [], []>} : vector<8x32xbf16>, vector<32x128xbf16>, vector<8x128xf32> -> vector<8x128xf32>
    %187 = arith.addf %157, %186 : vector<8x128xf32>
    %c0_102 = arith.constant 0 : index
    %c0_103 = arith.constant 0 : index
    %188 = vector.load %arg10[%c0_102, %c0_103] : memref<1x128xf32, #tpu.memory_space<vmem>>, vector<1x128xf32>
    %189 = vector.shape_cast %188 : vector<1x128xf32> to vector<128xf32>
    %190 = vector.shape_cast %189 : vector<128xf32> to vector<1x128xf32>
    %191 = vector.broadcast %190 : vector<1x128xf32> to vector<8x128xf32>
    %192 = arith.addf %187, %191 : vector<8x128xf32>
    %193 = arith.addf %192, %4 : vector<8x128xf32>
    %c0_104 = arith.constant 0 : index
    %c0_105 = arith.constant 0 : index
    %194 = vector.load %arg11[%c0_104, %c0_105] : memref<1x128xf32, #tpu.memory_space<vmem>>, vector<1x128xf32>
    %195 = vector.shape_cast %194 : vector<1x128xf32> to vector<128xf32>
    %c0_106 = arith.constant 0 : index
    %c0_107 = arith.constant 0 : index
    %196 = vector.load %arg12[%c0_106, %c0_107] : memref<1x128xf32, #tpu.memory_space<vmem>>, vector<1x128xf32>
    %197 = vector.shape_cast %196 : vector<1x128xf32> to vector<128xf32>
    %cst_108 = arith.constant dense<0.000000e+00> : vector<8xf32>
    %198 = vector.multi_reduction <add>, %193, %cst_108 [1] : vector<8x128xf32> to vector<8xf32>
    %199 = vector.shape_cast %198 : vector<8xf32> to vector<8x1xf32>
    %cst_109 = arith.constant 1.280000e+02 : f32
    %200 = vector.broadcast %cst_109 : f32 to vector<8x1xf32>
    %201 = arith.divf %199, %200 : vector<8x1xf32>
    %202 = vector.broadcast %201 : vector<8x1xf32> to vector<8x128xf32>
    %203 = arith.subf %193, %202 : vector<8x128xf32>
    %204 = arith.mulf %203, %203 : vector<8x128xf32>
    %cst_110 = arith.constant dense<0.000000e+00> : vector<8xf32>
    %205 = vector.multi_reduction <add>, %204, %cst_110 [1] : vector<8x128xf32> to vector<8xf32>
    %206 = vector.shape_cast %205 : vector<8xf32> to vector<8x1xf32>
    %cst_111 = arith.constant 1.280000e+02 : f32
    %207 = vector.broadcast %cst_111 : f32 to vector<8x1xf32>
    %208 = arith.divf %206, %207 : vector<8x1xf32>
    %209 = vector.broadcast %201 : vector<8x1xf32> to vector<8x128xf32>
    %210 = arith.subf %193, %209 : vector<8x128xf32>
    %cst_112 = arith.constant 9.99999974E-6 : f32
    %211 = vector.broadcast %cst_112 : f32 to vector<8x1xf32>
    %212 = arith.addf %208, %211 : vector<8x1xf32>
    %213 = math.rsqrt %212 : vector<8x1xf32>
    %214 = vector.broadcast %213 : vector<8x1xf32> to vector<8x128xf32>
    %215 = arith.mulf %210, %214 : vector<8x128xf32>
    %216 = vector.shape_cast %195 : vector<128xf32> to vector<1x128xf32>
    %217 = vector.broadcast %216 : vector<1x128xf32> to vector<8x128xf32>
    %218 = arith.mulf %215, %217 : vector<8x128xf32>
    %219 = vector.shape_cast %197 : vector<128xf32> to vector<1x128xf32>
    %220 = vector.broadcast %219 : vector<1x128xf32> to vector<8x128xf32>
    %221 = arith.addf %218, %220 : vector<8x128xf32>
    %222 = arith.truncf %221 : vector<8x128xf32> to vector<8x128xbf16>
    %cst_113 = arith.constant 0.000000e+00 : f32
    %223 = vector.broadcast %cst_113 : f32 to vector<8x128xf32>
    %c0_114 = arith.constant 0 : index
    %c0_115 = arith.constant 0 : index
    %c0_116 = arith.constant 0 : index
    %224 = vector.load %arg13[%c0_114, %c0_115, %c0_116] : memref<4x128x32xbf16, #tpu.memory_space<vmem>>, vector<1x128x32xbf16>
    %225 = vector.shape_cast %224 : vector<1x128x32xbf16> to vector<128x32xbf16>
    %cst_117 = arith.constant dense<0.000000e+00> : vector<8x32xf32>
    %226 = tpu.matmul %222, %225, %cst_117 {dimension_numbers = #tpu.dot_dimension_numbers<[1], [0], [0], [1], [0, 0, 1, 1], [], []>} : vector<8x128xbf16>, vector<128x32xbf16>, vector<8x32xf32> -> vector<8x32xf32>
    %227 = arith.truncf %226 : vector<8x32xf32> to vector<8x32xbf16>
    %c0_118 = arith.constant 0 : index
    %c0_119 = arith.constant 0 : index
    %c0_120 = arith.constant 0 : index
    %228 = vector.load %arg14[%c0_118, %c0_119, %c0_120] : memref<4x64x32xbf16, #tpu.memory_space<vmem>>, vector<1x64x32xbf16>
    %229 = vector.shape_cast %228 : vector<1x64x32xbf16> to vector<64x32xbf16>
    %cst_121 = arith.constant dense<0.000000e+00> : vector<24x32xf32>
    %230 = tpu.matmul %8, %229, %cst_121 {dimension_numbers = #tpu.dot_dimension_numbers<[1], [0], [0], [1], [0, 0, 1, 1], [], []>} : vector<24x64xbf16>, vector<64x32xbf16>, vector<24x32xf32> -> vector<24x32xf32>
    %231 = arith.truncf %230 : vector<24x32xf32> to vector<24x32xbf16>
    %c0_122 = arith.constant 0 : index
    %c0_123 = arith.constant 0 : index
    %c0_124 = arith.constant 0 : index
    %232 = vector.load %arg15[%c0_122, %c0_123, %c0_124] : memref<4x64x32xbf16, #tpu.memory_space<vmem>>, vector<1x64x32xbf16>
    %233 = vector.shape_cast %232 : vector<1x64x32xbf16> to vector<64x32xbf16>
    %cst_125 = arith.constant dense<0.000000e+00> : vector<24x32xf32>
    %234 = tpu.matmul %8, %233, %cst_125 {dimension_numbers = #tpu.dot_dimension_numbers<[1], [0], [0], [1], [0, 0, 1, 1], [], []>} : vector<24x64xbf16>, vector<64x32xbf16>, vector<24x32xf32> -> vector<24x32xf32>
    %235 = arith.truncf %234 : vector<24x32xf32> to vector<24x32xbf16>
    %cst_126 = arith.constant dense<0.000000e+00> : vector<8x24xf32>
    %236 = tpu.matmul %227, %231, %cst_126 {dimension_numbers = #tpu.dot_dimension_numbers<[1], [1], [0], [0], [0, 0, 1, 0], [], []>} : vector<8x32xbf16>, vector<24x32xbf16>, vector<8x24xf32> -> vector<8x24xf32>
    %cst_127 = arith.constant dense<0xFF800000> : vector<8xf32>
    %237 = vector.multi_reduction <maximumf>, %236, %cst_127 [1] : vector<8x24xf32> to vector<8xf32>
    %238 = vector.shape_cast %237 : vector<8xf32> to vector<8x1xf32>
    %239 = vector.broadcast %238 : vector<8x1xf32> to vector<8x24xf32>
    %240 = arith.subf %236, %239 : vector<8x24xf32>
    %241 = math.exp %240 : vector<8x24xf32>
    %cst_128 = arith.constant dense<0.000000e+00> : vector<8xf32>
    %242 = vector.multi_reduction <add>, %241, %cst_128 [1] : vector<8x24xf32> to vector<8xf32>
    %243 = vector.shape_cast %242 : vector<8xf32> to vector<8x1xf32>
    %244 = tpu.reciprocal %243 {approx = true} : vector<8x1xf32> -> vector<8x1xf32>
    %245 = vector.broadcast %244 : vector<8x1xf32> to vector<8x24xf32>
    %246 = arith.mulf %241, %245 : vector<8x24xf32>
    %247 = arith.truncf %246 : vector<8x24xf32> to vector<8x24xbf16>
    %cst_129 = arith.constant dense<0.000000e+00> : vector<8x32xf32>
    %248 = tpu.matmul %247, %235, %cst_129 {dimension_numbers = #tpu.dot_dimension_numbers<[1], [0], [0], [1], [0, 0, 1, 1], [], []>} : vector<8x24xbf16>, vector<24x32xbf16>, vector<8x32xf32> -> vector<8x32xf32>
    %249 = arith.truncf %248 : vector<8x32xf32> to vector<8x32xbf16>
    %c0_130 = arith.constant 0 : index
    %c0_131 = arith.constant 0 : index
    %c0_132 = arith.constant 0 : index
    %250 = vector.load %arg16[%c0_130, %c0_131, %c0_132] : memref<4x32x128xbf16, #tpu.memory_space<vmem>>, vector<1x32x128xbf16>
    %251 = vector.shape_cast %250 : vector<1x32x128xbf16> to vector<32x128xbf16>
    %cst_133 = arith.constant dense<0.000000e+00> : vector<8x128xf32>
    %252 = tpu.matmul %249, %251, %cst_133 {dimension_numbers = #tpu.dot_dimension_numbers<[1], [0], [0], [1], [0, 0, 1, 1], [], []>} : vector<8x32xbf16>, vector<32x128xbf16>, vector<8x128xf32> -> vector<8x128xf32>
    %253 = arith.addf %223, %252 : vector<8x128xf32>
    %c1_134 = arith.constant 1 : index
    %c0_135 = arith.constant 0 : index
    %c0_136 = arith.constant 0 : index
    %254 = vector.load %arg13[%c1_134, %c0_135, %c0_136] : memref<4x128x32xbf16, #tpu.memory_space<vmem>>, vector<1x128x32xbf16>
    %255 = vector.shape_cast %254 : vector<1x128x32xbf16> to vector<128x32xbf16>
    %cst_137 = arith.constant dense<0.000000e+00> : vector<8x32xf32>
    %256 = tpu.matmul %222, %255, %cst_137 {dimension_numbers = #tpu.dot_dimension_numbers<[1], [0], [0], [1], [0, 0, 1, 1], [], []>} : vector<8x128xbf16>, vector<128x32xbf16>, vector<8x32xf32> -> vector<8x32xf32>
    %257 = arith.truncf %256 : vector<8x32xf32> to vector<8x32xbf16>
    %c1_138 = arith.constant 1 : index
    %c0_139 = arith.constant 0 : index
    %c0_140 = arith.constant 0 : index
    %258 = vector.load %arg14[%c1_138, %c0_139, %c0_140] : memref<4x64x32xbf16, #tpu.memory_space<vmem>>, vector<1x64x32xbf16>
    %259 = vector.shape_cast %258 : vector<1x64x32xbf16> to vector<64x32xbf16>
    %cst_141 = arith.constant dense<0.000000e+00> : vector<24x32xf32>
    %260 = tpu.matmul %8, %259, %cst_141 {dimension_numbers = #tpu.dot_dimension_numbers<[1], [0], [0], [1], [0, 0, 1, 1], [], []>} : vector<24x64xbf16>, vector<64x32xbf16>, vector<24x32xf32> -> vector<24x32xf32>
    %261 = arith.truncf %260 : vector<24x32xf32> to vector<24x32xbf16>
    %c1_142 = arith.constant 1 : index
    %c0_143 = arith.constant 0 : index
    %c0_144 = arith.constant 0 : index
    %262 = vector.load %arg15[%c1_142, %c0_143, %c0_144] : memref<4x64x32xbf16, #tpu.memory_space<vmem>>, vector<1x64x32xbf16>
    %263 = vector.shape_cast %262 : vector<1x64x32xbf16> to vector<64x32xbf16>
    %cst_145 = arith.constant dense<0.000000e+00> : vector<24x32xf32>
    %264 = tpu.matmul %8, %263, %cst_145 {dimension_numbers = #tpu.dot_dimension_numbers<[1], [0], [0], [1], [0, 0, 1, 1], [], []>} : vector<24x64xbf16>, vector<64x32xbf16>, vector<24x32xf32> -> vector<24x32xf32>
    %265 = arith.truncf %264 : vector<24x32xf32> to vector<24x32xbf16>
    %cst_146 = arith.constant dense<0.000000e+00> : vector<8x24xf32>
    %266 = tpu.matmul %257, %261, %cst_146 {dimension_numbers = #tpu.dot_dimension_numbers<[1], [1], [0], [0], [0, 0, 1, 0], [], []>} : vector<8x32xbf16>, vector<24x32xbf16>, vector<8x24xf32> -> vector<8x24xf32>
    %cst_147 = arith.constant dense<0xFF800000> : vector<8xf32>
    %267 = vector.multi_reduction <maximumf>, %266, %cst_147 [1] : vector<8x24xf32> to vector<8xf32>
    %268 = vector.shape_cast %267 : vector<8xf32> to vector<8x1xf32>
    %269 = vector.broadcast %268 : vector<8x1xf32> to vector<8x24xf32>
    %270 = arith.subf %266, %269 : vector<8x24xf32>
    %271 = math.exp %270 : vector<8x24xf32>
    %cst_148 = arith.constant dense<0.000000e+00> : vector<8xf32>
    %272 = vector.multi_reduction <add>, %271, %cst_148 [1] : vector<8x24xf32> to vector<8xf32>
    %273 = vector.shape_cast %272 : vector<8xf32> to vector<8x1xf32>
    %274 = tpu.reciprocal %273 {approx = true} : vector<8x1xf32> -> vector<8x1xf32>
    %275 = vector.broadcast %274 : vector<8x1xf32> to vector<8x24xf32>
    %276 = arith.mulf %271, %275 : vector<8x24xf32>
    %277 = arith.truncf %276 : vector<8x24xf32> to vector<8x24xbf16>
    %cst_149 = arith.constant dense<0.000000e+00> : vector<8x32xf32>
    %278 = tpu.matmul %277, %265, %cst_149 {dimension_numbers = #tpu.dot_dimension_numbers<[1], [0], [0], [1], [0, 0, 1, 1], [], []>} : vector<8x24xbf16>, vector<24x32xbf16>, vector<8x32xf32> -> vector<8x32xf32>
    %279 = arith.truncf %278 : vector<8x32xf32> to vector<8x32xbf16>
    %c1_150 = arith.constant 1 : index
    %c0_151 = arith.constant 0 : index
    %c0_152 = arith.constant 0 : index
    %280 = vector.load %arg16[%c1_150, %c0_151, %c0_152] : memref<4x32x128xbf16, #tpu.memory_space<vmem>>, vector<1x32x128xbf16>
    %281 = vector.shape_cast %280 : vector<1x32x128xbf16> to vector<32x128xbf16>
    %cst_153 = arith.constant dense<0.000000e+00> : vector<8x128xf32>
    %282 = tpu.matmul %279, %281, %cst_153 {dimension_numbers = #tpu.dot_dimension_numbers<[1], [0], [0], [1], [0, 0, 1, 1], [], []>} : vector<8x32xbf16>, vector<32x128xbf16>, vector<8x128xf32> -> vector<8x128xf32>
    %283 = arith.addf %253, %282 : vector<8x128xf32>
    %c2_154 = arith.constant 2 : index
    %c0_155 = arith.constant 0 : index
    %c0_156 = arith.constant 0 : index
    %284 = vector.load %arg13[%c2_154, %c0_155, %c0_156] : memref<4x128x32xbf16, #tpu.memory_space<vmem>>, vector<1x128x32xbf16>
    %285 = vector.shape_cast %284 : vector<1x128x32xbf16> to vector<128x32xbf16>
    %cst_157 = arith.constant dense<0.000000e+00> : vector<8x32xf32>
    %286 = tpu.matmul %222, %285, %cst_157 {dimension_numbers = #tpu.dot_dimension_numbers<[1], [0], [0], [1], [0, 0, 1, 1], [], []>} : vector<8x128xbf16>, vector<128x32xbf16>, vector<8x32xf32> -> vector<8x32xf32>
    %287 = arith.truncf %286 : vector<8x32xf32> to vector<8x32xbf16>
    %c2_158 = arith.constant 2 : index
    %c0_159 = arith.constant 0 : index
    %c0_160 = arith.constant 0 : index
    %288 = vector.load %arg14[%c2_158, %c0_159, %c0_160] : memref<4x64x32xbf16, #tpu.memory_space<vmem>>, vector<1x64x32xbf16>
    %289 = vector.shape_cast %288 : vector<1x64x32xbf16> to vector<64x32xbf16>
    %cst_161 = arith.constant dense<0.000000e+00> : vector<24x32xf32>
    %290 = tpu.matmul %8, %289, %cst_161 {dimension_numbers = #tpu.dot_dimension_numbers<[1], [0], [0], [1], [0, 0, 1, 1], [], []>} : vector<24x64xbf16>, vector<64x32xbf16>, vector<24x32xf32> -> vector<24x32xf32>
    %291 = arith.truncf %290 : vector<24x32xf32> to vector<24x32xbf16>
    %c2_162 = arith.constant 2 : index
    %c0_163 = arith.constant 0 : index
    %c0_164 = arith.constant 0 : index
    %292 = vector.load %arg15[%c2_162, %c0_163, %c0_164] : memref<4x64x32xbf16, #tpu.memory_space<vmem>>, vector<1x64x32xbf16>
    %293 = vector.shape_cast %292 : vector<1x64x32xbf16> to vector<64x32xbf16>
    %cst_165 = arith.constant dense<0.000000e+00> : vector<24x32xf32>
    %294 = tpu.matmul %8, %293, %cst_165 {dimension_numbers = #tpu.dot_dimension_numbers<[1], [0], [0], [1], [0, 0, 1, 1], [], []>} : vector<24x64xbf16>, vector<64x32xbf16>, vector<24x32xf32> -> vector<24x32xf32>
    %295 = arith.truncf %294 : vector<24x32xf32> to vector<24x32xbf16>
    %cst_166 = arith.constant dense<0.000000e+00> : vector<8x24xf32>
    %296 = tpu.matmul %287, %291, %cst_166 {dimension_numbers = #tpu.dot_dimension_numbers<[1], [1], [0], [0], [0, 0, 1, 0], [], []>} : vector<8x32xbf16>, vector<24x32xbf16>, vector<8x24xf32> -> vector<8x24xf32>
    %cst_167 = arith.constant dense<0xFF800000> : vector<8xf32>
    %297 = vector.multi_reduction <maximumf>, %296, %cst_167 [1] : vector<8x24xf32> to vector<8xf32>
    %298 = vector.shape_cast %297 : vector<8xf32> to vector<8x1xf32>
    %299 = vector.broadcast %298 : vector<8x1xf32> to vector<8x24xf32>
    %300 = arith.subf %296, %299 : vector<8x24xf32>
    %301 = math.exp %300 : vector<8x24xf32>
    %cst_168 = arith.constant dense<0.000000e+00> : vector<8xf32>
    %302 = vector.multi_reduction <add>, %301, %cst_168 [1] : vector<8x24xf32> to vector<8xf32>
    %303 = vector.shape_cast %302 : vector<8xf32> to vector<8x1xf32>
    %304 = tpu.reciprocal %303 {approx = true} : vector<8x1xf32> -> vector<8x1xf32>
    %305 = vector.broadcast %304 : vector<8x1xf32> to vector<8x24xf32>
    %306 = arith.mulf %301, %305 : vector<8x24xf32>
    %307 = arith.truncf %306 : vector<8x24xf32> to vector<8x24xbf16>
    %cst_169 = arith.constant dense<0.000000e+00> : vector<8x32xf32>
    %308 = tpu.matmul %307, %295, %cst_169 {dimension_numbers = #tpu.dot_dimension_numbers<[1], [0], [0], [1], [0, 0, 1, 1], [], []>} : vector<8x24xbf16>, vector<24x32xbf16>, vector<8x32xf32> -> vector<8x32xf32>
    %309 = arith.truncf %308 : vector<8x32xf32> to vector<8x32xbf16>
    %c2_170 = arith.constant 2 : index
    %c0_171 = arith.constant 0 : index
    %c0_172 = arith.constant 0 : index
    %310 = vector.load %arg16[%c2_170, %c0_171, %c0_172] : memref<4x32x128xbf16, #tpu.memory_space<vmem>>, vector<1x32x128xbf16>
    %311 = vector.shape_cast %310 : vector<1x32x128xbf16> to vector<32x128xbf16>
    %cst_173 = arith.constant dense<0.000000e+00> : vector<8x128xf32>
    %312 = tpu.matmul %309, %311, %cst_173 {dimension_numbers = #tpu.dot_dimension_numbers<[1], [0], [0], [1], [0, 0, 1, 1], [], []>} : vector<8x32xbf16>, vector<32x128xbf16>, vector<8x128xf32> -> vector<8x128xf32>
    %313 = arith.addf %283, %312 : vector<8x128xf32>
    %c3_174 = arith.constant 3 : index
    %c0_175 = arith.constant 0 : index
    %c0_176 = arith.constant 0 : index
    %314 = vector.load %arg13[%c3_174, %c0_175, %c0_176] : memref<4x128x32xbf16, #tpu.memory_space<vmem>>, vector<1x128x32xbf16>
    %315 = vector.shape_cast %314 : vector<1x128x32xbf16> to vector<128x32xbf16>
    %cst_177 = arith.constant dense<0.000000e+00> : vector<8x32xf32>
    %316 = tpu.matmul %222, %315, %cst_177 {dimension_numbers = #tpu.dot_dimension_numbers<[1], [0], [0], [1], [0, 0, 1, 1], [], []>} : vector<8x128xbf16>, vector<128x32xbf16>, vector<8x32xf32> -> vector<8x32xf32>
    %317 = arith.truncf %316 : vector<8x32xf32> to vector<8x32xbf16>
    %c3_178 = arith.constant 3 : index
    %c0_179 = arith.constant 0 : index
    %c0_180 = arith.constant 0 : index
    %318 = vector.load %arg14[%c3_178, %c0_179, %c0_180] : memref<4x64x32xbf16, #tpu.memory_space<vmem>>, vector<1x64x32xbf16>
    %319 = vector.shape_cast %318 : vector<1x64x32xbf16> to vector<64x32xbf16>
    %cst_181 = arith.constant dense<0.000000e+00> : vector<24x32xf32>
    %320 = tpu.matmul %8, %319, %cst_181 {dimension_numbers = #tpu.dot_dimension_numbers<[1], [0], [0], [1], [0, 0, 1, 1], [], []>} : vector<24x64xbf16>, vector<64x32xbf16>, vector<24x32xf32> -> vector<24x32xf32>
    %321 = arith.truncf %320 : vector<24x32xf32> to vector<24x32xbf16>
    %c3_182 = arith.constant 3 : index
    %c0_183 = arith.constant 0 : index
    %c0_184 = arith.constant 0 : index
    %322 = vector.load %arg15[%c3_182, %c0_183, %c0_184] : memref<4x64x32xbf16, #tpu.memory_space<vmem>>, vector<1x64x32xbf16>
    %323 = vector.shape_cast %322 : vector<1x64x32xbf16> to vector<64x32xbf16>
    %cst_185 = arith.constant dense<0.000000e+00> : vector<24x32xf32>
    %324 = tpu.matmul %8, %323, %cst_185 {dimension_numbers = #tpu.dot_dimension_numbers<[1], [0], [0], [1], [0, 0, 1, 1], [], []>} : vector<24x64xbf16>, vector<64x32xbf16>, vector<24x32xf32> -> vector<24x32xf32>
    %325 = arith.truncf %324 : vector<24x32xf32> to vector<24x32xbf16>
    %cst_186 = arith.constant dense<0.000000e+00> : vector<8x24xf32>
    %326 = tpu.matmul %317, %321, %cst_186 {dimension_numbers = #tpu.dot_dimension_numbers<[1], [1], [0], [0], [0, 0, 1, 0], [], []>} : vector<8x32xbf16>, vector<24x32xbf16>, vector<8x24xf32> -> vector<8x24xf32>
    %cst_187 = arith.constant dense<0xFF800000> : vector<8xf32>
    %327 = vector.multi_reduction <maximumf>, %326, %cst_187 [1] : vector<8x24xf32> to vector<8xf32>
    %328 = vector.shape_cast %327 : vector<8xf32> to vector<8x1xf32>
    %329 = vector.broadcast %328 : vector<8x1xf32> to vector<8x24xf32>
    %330 = arith.subf %326, %329 : vector<8x24xf32>
    %331 = math.exp %330 : vector<8x24xf32>
    %cst_188 = arith.constant dense<0.000000e+00> : vector<8xf32>
    %332 = vector.multi_reduction <add>, %331, %cst_188 [1] : vector<8x24xf32> to vector<8xf32>
    %333 = vector.shape_cast %332 : vector<8xf32> to vector<8x1xf32>
    %334 = tpu.reciprocal %333 {approx = true} : vector<8x1xf32> -> vector<8x1xf32>
    %335 = vector.broadcast %334 : vector<8x1xf32> to vector<8x24xf32>
    %336 = arith.mulf %331, %335 : vector<8x24xf32>
    %337 = arith.truncf %336 : vector<8x24xf32> to vector<8x24xbf16>
    %cst_189 = arith.constant dense<0.000000e+00> : vector<8x32xf32>
    %338 = tpu.matmul %337, %325, %cst_189 {dimension_numbers = #tpu.dot_dimension_numbers<[1], [0], [0], [1], [0, 0, 1, 1], [], []>} : vector<8x24xbf16>, vector<24x32xbf16>, vector<8x32xf32> -> vector<8x32xf32>
    %339 = arith.truncf %338 : vector<8x32xf32> to vector<8x32xbf16>
    %c3_190 = arith.constant 3 : index
    %c0_191 = arith.constant 0 : index
    %c0_192 = arith.constant 0 : index
    %340 = vector.load %arg16[%c3_190, %c0_191, %c0_192] : memref<4x32x128xbf16, #tpu.memory_space<vmem>>, vector<1x32x128xbf16>
    %341 = vector.shape_cast %340 : vector<1x32x128xbf16> to vector<32x128xbf16>
    %cst_193 = arith.constant dense<0.000000e+00> : vector<8x128xf32>
    %342 = tpu.matmul %339, %341, %cst_193 {dimension_numbers = #tpu.dot_dimension_numbers<[1], [0], [0], [1], [0, 0, 1, 1], [], []>} : vector<8x32xbf16>, vector<32x128xbf16>, vector<8x128xf32> -> vector<8x128xf32>
    %343 = arith.addf %313, %342 : vector<8x128xf32>
    %c0_194 = arith.constant 0 : index
    %c0_195 = arith.constant 0 : index
    %344 = vector.load %arg17[%c0_194, %c0_195] : memref<1x128xf32, #tpu.memory_space<vmem>>, vector<1x128xf32>
    %345 = vector.shape_cast %344 : vector<1x128xf32> to vector<128xf32>
    %346 = vector.shape_cast %345 : vector<128xf32> to vector<1x128xf32>
    %347 = vector.broadcast %346 : vector<1x128xf32> to vector<8x128xf32>
    %348 = arith.addf %343, %347 : vector<8x128xf32>
    %349 = arith.addf %348, %193 : vector<8x128xf32>
    %c0_196 = arith.constant 0 : index
    %c0_197 = arith.constant 0 : index
    %350 = vector.load %arg18[%c0_196, %c0_197] : memref<1x128xf32, #tpu.memory_space<vmem>>, vector<1x128xf32>
    %351 = vector.shape_cast %350 : vector<1x128xf32> to vector<128xf32>
    %c0_198 = arith.constant 0 : index
    %c0_199 = arith.constant 0 : index
    %352 = vector.load %arg19[%c0_198, %c0_199] : memref<1x128xf32, #tpu.memory_space<vmem>>, vector<1x128xf32>
    %353 = vector.shape_cast %352 : vector<1x128xf32> to vector<128xf32>
    %cst_200 = arith.constant dense<0.000000e+00> : vector<8xf32>
    %354 = vector.multi_reduction <add>, %349, %cst_200 [1] : vector<8x128xf32> to vector<8xf32>
    %355 = vector.shape_cast %354 : vector<8xf32> to vector<8x1xf32>
    %cst_201 = arith.constant 1.280000e+02 : f32
    %356 = vector.broadcast %cst_201 : f32 to vector<8x1xf32>
    %357 = arith.divf %355, %356 : vector<8x1xf32>
    %358 = vector.broadcast %357 : vector<8x1xf32> to vector<8x128xf32>
    %359 = arith.subf %349, %358 : vector<8x128xf32>
    %360 = arith.mulf %359, %359 : vector<8x128xf32>
    %cst_202 = arith.constant dense<0.000000e+00> : vector<8xf32>
    %361 = vector.multi_reduction <add>, %360, %cst_202 [1] : vector<8x128xf32> to vector<8xf32>
    %362 = vector.shape_cast %361 : vector<8xf32> to vector<8x1xf32>
    %cst_203 = arith.constant 1.280000e+02 : f32
    %363 = vector.broadcast %cst_203 : f32 to vector<8x1xf32>
    %364 = arith.divf %362, %363 : vector<8x1xf32>
    %365 = vector.broadcast %357 : vector<8x1xf32> to vector<8x128xf32>
    %366 = arith.subf %349, %365 : vector<8x128xf32>
    %cst_204 = arith.constant 9.99999974E-6 : f32
    %367 = vector.broadcast %cst_204 : f32 to vector<8x1xf32>
    %368 = arith.addf %364, %367 : vector<8x1xf32>
    %369 = math.rsqrt %368 : vector<8x1xf32>
    %370 = vector.broadcast %369 : vector<8x1xf32> to vector<8x128xf32>
    %371 = arith.mulf %366, %370 : vector<8x128xf32>
    %372 = vector.shape_cast %351 : vector<128xf32> to vector<1x128xf32>
    %373 = vector.broadcast %372 : vector<1x128xf32> to vector<8x128xf32>
    %374 = arith.mulf %371, %373 : vector<8x128xf32>
    %375 = vector.shape_cast %353 : vector<128xf32> to vector<1x128xf32>
    %376 = vector.broadcast %375 : vector<1x128xf32> to vector<8x128xf32>
    %377 = arith.addf %374, %376 : vector<8x128xf32>
    %378 = arith.truncf %377 : vector<8x128xf32> to vector<8x128xbf16>
    %c0_205 = arith.constant 0 : index
    %c0_206 = arith.constant 0 : index
    %379 = vector.load %arg20[%c0_205, %c0_206] : memref<128x512xbf16, #tpu.memory_space<vmem>>, vector<128x512xbf16>
    %cst_207 = arith.constant dense<0.000000e+00> : vector<8x512xf32>
    %380 = tpu.matmul %378, %379, %cst_207 {dimension_numbers = #tpu.dot_dimension_numbers<[1], [0], [0], [1], [0, 0, 1, 1], [], []>} : vector<8x128xbf16>, vector<128x512xbf16>, vector<8x512xf32> -> vector<8x512xf32>
    %c0_208 = arith.constant 0 : index
    %c0_209 = arith.constant 0 : index
    %381 = vector.load %arg21[%c0_208, %c0_209] : memref<1x512xf32, #tpu.memory_space<vmem>>, vector<1x512xf32>
    %382 = vector.shape_cast %381 : vector<1x512xf32> to vector<512xf32>
    %383 = vector.shape_cast %382 : vector<512xf32> to vector<1x512xf32>
    %384 = vector.broadcast %383 : vector<1x512xf32> to vector<8x512xf32>
    %385 = arith.addf %380, %384 : vector<8x512xf32>
    %c0_210 = arith.constant 0 : index
    %c0_211 = arith.constant 0 : index
    %386 = vector.load %arg22[%c0_210, %c0_211] : memref<128x512xbf16, #tpu.memory_space<vmem>>, vector<128x512xbf16>
    %cst_212 = arith.constant dense<0.000000e+00> : vector<8x512xf32>
    %387 = tpu.matmul %378, %386, %cst_212 {dimension_numbers = #tpu.dot_dimension_numbers<[1], [0], [0], [1], [0, 0, 1, 1], [], []>} : vector<8x128xbf16>, vector<128x512xbf16>, vector<8x512xf32> -> vector<8x512xf32>
    %c0_213 = arith.constant 0 : index
    %c0_214 = arith.constant 0 : index
    %388 = vector.load %arg23[%c0_213, %c0_214] : memref<1x512xf32, #tpu.memory_space<vmem>>, vector<1x512xf32>
    %389 = vector.shape_cast %388 : vector<1x512xf32> to vector<512xf32>
    %390 = vector.shape_cast %389 : vector<512xf32> to vector<1x512xf32>
    %391 = vector.broadcast %390 : vector<1x512xf32> to vector<8x512xf32>
    %392 = arith.addf %387, %391 : vector<8x512xf32>
    %cst_215 = arith.constant 5.000000e-01 : f32
    %393 = vector.broadcast %cst_215 : f32 to vector<8x512xf32>
    %394 = arith.mulf %393, %392 : vector<8x512xf32>
    %cst_216 = arith.constant 4.471500e-02 : f32
    %395 = vector.broadcast %cst_216 : f32 to vector<8x512xf32>
    %396 = arith.mulf %395, %392 : vector<8x512xf32>
    %397 = arith.mulf %396, %392 : vector<8x512xf32>
    %398 = arith.mulf %397, %392 : vector<8x512xf32>
    %399 = arith.addf %392, %398 : vector<8x512xf32>
    %cst_217 = arith.constant 0.797884583 : f32
    %400 = vector.broadcast %cst_217 : f32 to vector<8x512xf32>
    %401 = arith.mulf %400, %399 : vector<8x512xf32>
    %402 = math.tanh %401 : vector<8x512xf32>
    %cst_218 = arith.constant 1.000000e+00 : f32
    %403 = vector.broadcast %cst_218 : f32 to vector<8x512xf32>
    %404 = arith.addf %403, %402 : vector<8x512xf32>
    %405 = arith.mulf %394, %404 : vector<8x512xf32>
    %406 = arith.mulf %385, %405 : vector<8x512xf32>
    %407 = arith.truncf %406 : vector<8x512xf32> to vector<8x512xbf16>
    %c0_219 = arith.constant 0 : index
    %c0_220 = arith.constant 0 : index
    %408 = vector.load %arg24[%c0_219, %c0_220] : memref<512x128xbf16, #tpu.memory_space<vmem>>, vector<512x128xbf16>
    %cst_221 = arith.constant dense<0.000000e+00> : vector<8x128xf32>
    %409 = tpu.matmul %407, %408, %cst_221 {dimension_numbers = #tpu.dot_dimension_numbers<[1], [0], [0], [1], [0, 0, 1, 1], [], []>} : vector<8x512xbf16>, vector<512x128xbf16>, vector<8x128xf32> -> vector<8x128xf32>
    %c0_222 = arith.constant 0 : index
    %c0_223 = arith.constant 0 : index
    %410 = vector.load %arg25[%c0_222, %c0_223] : memref<1x128xf32, #tpu.memory_space<vmem>>, vector<1x128xf32>
    %411 = vector.shape_cast %410 : vector<1x128xf32> to vector<128xf32>
    %412 = vector.shape_cast %411 : vector<128xf32> to vector<1x128xf32>
    %413 = vector.broadcast %412 : vector<1x128xf32> to vector<8x128xf32>
    %414 = arith.addf %409, %413 : vector<8x128xf32>
    %415 = arith.addf %349, %414 : vector<8x128xf32>
    %c0_224 = arith.constant 0 : index
    %c0_225 = arith.constant 0 : index
    %c0_226 = arith.constant 0 : index
    %416 = vector.load %arg26[%c0_224, %c0_225, %c0_226] : memref<1x8x128xf32, #tpu.memory_space<vmem>>, vector<1x8x128xf32>
    %417 = vector.shape_cast %416 : vector<1x8x128xf32> to vector<8x128xf32>
    %418 = vector.shape_cast %415 : vector<8x128xf32> to vector<1x8x128xf32>
    tpu.vector_store %arg26[%c0_224, %c0_225, %c0_226], %418 {strides = array<i32>} : memref<1x8x128xf32, #tpu.memory_space<vmem>>, vector<1x8x128xf32>,
    return
  }
  func.func @transform_0(%arg0: i32, %arg1: i32) -> (i32, i32, i32) {
    %c0_i32 = arith.constant 0 : i32
    %c0_i32_0 = arith.constant 0 : i32
    %c0_i32_1 = arith.constant 0 : i32
    return %arg0, %c0_i32, %c0_i32_0 : i32, i32, i32
  }
  func.func @transform_1(%arg0: i32, %arg1: i32) -> (i32, i32, i32) {
    %c0_i32 = arith.constant 0 : i32
    %c0_i32_0 = arith.constant 0 : i32
    %c0_i32_1 = arith.constant 0 : i32
    return %arg0, %c0_i32, %c0_i32_0 : i32, i32, i32
  }
  func.func @transform_2(%arg0: i32, %arg1: i32) -> (i32, i32) {
    %c0_i32 = arith.constant 0 : i32
    %c0_i32_0 = arith.constant 0 : i32
    %c0_i32_1 = arith.constant 0 : i32
    return %c0_i32, %c0_i32_0 : i32, i32
  }
  func.func @transform_3(%arg0: i32, %arg1: i32) -> (i32, i32) {
    %c0_i32 = arith.constant 0 : i32
    %c0_i32_0 = arith.constant 0 : i32
    %c0_i32_1 = arith.constant 0 : i32
    return %c0_i32, %c0_i32_0 : i32, i32
  }
  func.func @transform_4(%arg0: i32, %arg1: i32) -> (i32, i32, i32) {
    %c0_i32 = arith.constant 0 : i32
    %c0_i32_0 = arith.constant 0 : i32
    %c0_i32_1 = arith.constant 0 : i32
    %c0_i32_2 = arith.constant 0 : i32
    return %c0_i32, %c0_i32_0, %c0_i32_1 : i32, i32, i32
  }
  func.func @transform_5(%arg0: i32, %arg1: i32) -> (i32, i32, i32) {
    %c0_i32 = arith.constant 0 : i32
    %c0_i32_0 = arith.constant 0 : i32
    %c0_i32_1 = arith.constant 0 : i32
    %c0_i32_2 = arith.constant 0 : i32
    return %c0_i32, %c0_i32_0, %c0_i32_1 : i32, i32, i32
  }
  func.func @transform_6(%arg0: i32, %arg1: i32) -> (i32, i32, i32) {
    %c0_i32 = arith.constant 0 : i32
    %c0_i32_0 = arith.constant 0 : i32
    %c0_i32_1 = arith.constant 0 : i32
    %c0_i32_2 = arith.constant 0 : i32
    return %c0_i32, %c0_i32_0, %c0_i32_1 : i32, i32, i32
  }
  func.func @transform_7(%arg0: i32, %arg1: i32) -> (i32, i32, i32) {
    %c0_i32 = arith.constant 0 : i32
    %c0_i32_0 = arith.constant 0 : i32
    %c0_i32_1 = arith.constant 0 : i32
    %c0_i32_2 = arith.constant 0 : i32
    return %c0_i32, %c0_i32_0, %c0_i32_1 : i32, i32, i32
  }
  func.func @transform_8(%arg0: i32, %arg1: i32) -> (i32, i32) {
    %c0_i32 = arith.constant 0 : i32
    %c0_i32_0 = arith.constant 0 : i32
    %c0_i32_1 = arith.constant 0 : i32
    return %c0_i32, %c0_i32_0 : i32, i32
  }
  func.func @transform_9(%arg0: i32, %arg1: i32) -> (i32, i32) {
    %c0_i32 = arith.constant 0 : i32
    %c0_i32_0 = arith.constant 0 : i32
    %c0_i32_1 = arith.constant 0 : i32
    return %c0_i32, %c0_i32_0 : i32, i32
  }
  func.func @transform_10(%arg0: i32, %arg1: i32) -> (i32, i32) {
    %c0_i32 = arith.constant 0 : i32
    %c0_i32_0 = arith.constant 0 : i32
    %c0_i32_1 = arith.constant 0 : i32
    return %c0_i32, %c0_i32_0 : i32, i32
  }
  func.func @transform_11(%arg0: i32, %arg1: i32) -> (i32, i32, i32) {
    %c0_i32 = arith.constant 0 : i32
    %c0_i32_0 = arith.constant 0 : i32
    %c0_i32_1 = arith.constant 0 : i32
    %c0_i32_2 = arith.constant 0 : i32
    return %c0_i32, %c0_i32_0, %c0_i32_1 : i32, i32, i32
  }
  func.func @transform_12(%arg0: i32, %arg1: i32) -> (i32, i32, i32) {
    %c0_i32 = arith.constant 0 : i32
    %c0_i32_0 = arith.constant 0 : i32
    %c0_i32_1 = arith.constant 0 : i32
    %c0_i32_2 = arith.constant 0 : i32
    return %c0_i32, %c0_i32_0, %c0_i32_1 : i32, i32, i32
  }
  func.func @transform_13(%arg0: i32, %arg1: i32) -> (i32, i32, i32) {
    %c0_i32 = arith.constant 0 : i32
    %c0_i32_0 = arith.constant 0 : i32
    %c0_i32_1 = arith.constant 0 : i32
    %c0_i32_2 = arith.constant 0 : i32
    return %c0_i32, %c0_i32_0, %c0_i32_1 : i32, i32, i32
  }
  func.func @transform_14(%arg0: i32, %arg1: i32) -> (i32, i32, i32) {
    %c0_i32 = arith.constant 0 : i32
    %c0_i32_0 = arith.constant 0 : i32
    %c0_i32_1 = arith.constant 0 : i32
    %c0_i32_2 = arith.constant 0 : i32
    return %c0_i32, %c0_i32_0, %c0_i32_1 : i32, i32, i32
  }
  func.func @transform_15(%arg0: i32, %arg1: i32) -> (i32, i32) {
    %c0_i32 = arith.constant 0 : i32
    %c0_i32_0 = arith.constant 0 : i32
    %c0_i32_1 = arith.constant 0 : i32
    return %c0_i32, %c0_i32_0 : i32, i32
  }
  func.func @transform_16(%arg0: i32, %arg1: i32) -> (i32, i32) {
    %c0_i32 = arith.constant 0 : i32
    %c0_i32_0 = arith.constant 0 : i32
    %c0_i32_1 = arith.constant 0 : i32
    return %c0_i32, %c0_i32_0 : i32, i32
  }
  func.func @transform_17(%arg0: i32, %arg1: i32) -> (i32, i32) {
    %c0_i32 = arith.constant 0 : i32
    %c0_i32_0 = arith.constant 0 : i32
    %c0_i32_1 = arith.constant 0 : i32
    return %c0_i32, %c0_i32_0 : i32, i32
  }
  func.func @transform_18(%arg0: i32, %arg1: i32) -> (i32, i32) {
    %c0_i32 = arith.constant 0 : i32
    %c0_i32_0 = arith.constant 0 : i32
    %c0_i32_1 = arith.constant 0 : i32
    return %c0_i32, %c0_i32_0 : i32, i32
  }
  func.func @transform_19(%arg0: i32, %arg1: i32) -> (i32, i32) {
    %c0_i32 = arith.constant 0 : i32
    %c0_i32_0 = arith.constant 0 : i32
    %c0_i32_1 = arith.constant 0 : i32
    return %c0_i32, %c0_i32_0 : i32, i32
  }
  func.func @transform_20(%arg0: i32, %arg1: i32) -> (i32, i32) {
    %c0_i32 = arith.constant 0 : i32
    %c0_i32_0 = arith.constant 0 : i32
    %c0_i32_1 = arith.constant 0 : i32
    return %c0_i32, %c0_i32_0 : i32, i32
  }
  func.func @transform_21(%arg0: i32, %arg1: i32) -> (i32, i32) {
    %c0_i32 = arith.constant 0 : i32
    %c0_i32_0 = arith.constant 0 : i32
    %c0_i32_1 = arith.constant 0 : i32
    return %c0_i32, %c0_i32_0 : i32, i32
  }
  func.func @transform_22(%arg0: i32, %arg1: i32) -> (i32, i32) {
    %c0_i32 = arith.constant 0 : i32
    %c0_i32_0 = arith.constant 0 : i32
    %c0_i32_1 = arith.constant 0 : i32
    return %c0_i32, %c0_i32_0 : i32, i32
  }
  func.func @transform_23(%arg0: i32, %arg1: i32) -> (i32, i32) {
    %c0_i32 = arith.constant 0 : i32
    %c0_i32_0 = arith.constant 0 : i32
    %c0_i32_1 = arith.constant 0 : i32
    return %c0_i32, %c0_i32_0 : i32, i32
  }
  func.func @transform_24(%arg0: i32, %arg1: i32) -> (i32, i32, i32) {
    %c0_i32 = arith.constant 0 : i32
    %c0_i32_0 = arith.constant 0 : i32
    return %arg0, %arg1, %c0_i32 : i32, i32, i32
  }
}

</mosaic_0001>

<bundles_post_ra>
// kernel: tpu_custom_call.1
= control target key start
LH: loop header
LB: loop body
LE: loop exit
PB: predicated region body
PF: predicated region fallthrough
CT: control target
= control target key end

     0   :  { %s7698_s0 = inlined_call_operand.vmem [shape: f32[2,16,128], index: 0, kind: input, shape index: {}]   ;;  %s7699_s1 = inlined_call_operand.vmem [shape: bf16[2,24,64], index: 1, kind: input, shape index: {}]   ;;  %s7700_s2 = inlined_call_operand.vmem [shape: f32[1,128], index: 2, kind: input, shape index: {}]   ;;  %s7701_s3 = inlined_call_operand.vmem [shape: f32[1,128], index: 3, kind: input, shape index: {}]   ;;  %s7702_s4 = inlined_call_operand.vmem [shape: bf16[4,128,32], index: 4, kind: input, shape index: {}]   ;;  %s7703_s5 = inlined_call_operand.vmem [shape: bf16[4,128,32], index: 5, kind: input, shape index: {}]   ;;  %s7704_s6 = inlined_call_operand.vmem [shape: bf16[4,128,32], index: 6, kind: input, shape index: {}]   ;;  %s7705_s7 = inlined_call_operand.vmem [shape: bf16[4,32,128], index: 7, kind: input, shape index: {}]   ;;  %s7706_s8 = inlined_call_operand.vmem [shape: f32[1,128], index: 8, kind: input, shape index: {}]   ;;  %s7707_s9 = inlined_call_operand.vmem [shape: f32[1,128], index: 9, kind: input, shape index: {}]   ;;  %s7708_s10 = inlined_call_operand.vmem [shape: f32[1,128], index: 10, kind: input, shape index: {}]   ;;  %s7709_s11 = inlined_call_operand.vmem [shape: bf16[4,128,32], index: 11, kind: input, shape index: {}]   ;;  %s7710_s12 = inlined_call_operand.vmem [shape: bf16[4,64,32], index: 12, kind: input, shape index: {}]   ;;  %s7711_s13 = inlined_call_operand.vmem [shape: bf16[4,64,32], index: 13, kind: input, shape index: {}]   ;;  %s7712_s14 = inlined_call_operand.vmem [shape: bf16[4,32,128], index: 14, kind: input, shape index: {}]   ;;  %s7713_s15 = inlined_call_operand.vmem [shape: f32[1,128], index: 15, kind: input, shape index: {}]   ;;  %s7714_s16 = inlined_call_operand.vmem [shape: f32[1,128], index: 16, kind: input, shape index: {}]   ;;  %s7715_s17 = inlined_call_operand.vmem [shape: f32[1,128], index: 17, kind: input, shape index: {}]   ;;  %s7716_s18 = inlined_call_operand.vmem [shape: bf16[128,512], index: 18, kind: input, shape index: {}]   ;;  %s7717_s19 = inlined_call_operand.vmem [shape: f32[1,512], index: 19, kind: input, shape index: {}]   ;;  %s7718_s20 = inlined_call_operand.vmem [shape: bf16[128,512], index: 20, kind: input, shape index: {}]   ;;  %s7719_s21 = inlined_call_operand.vmem [shape: f32[1,512], index: 21, kind: input, shape index: {}]   ;;  %s7720_s22 = inlined_call_operand.vmem [shape: bf16[512,128], index: 22, kind: input, shape index: {}]   ;;  %s7721_s23 = inlined_call_operand.vmem [shape: f32[1,128], index: 23, kind: input, shape index: {}]   ;;  %s7722_s24 = inlined_call_operand.hbm [shape: f32[2,16,128], index: 24, kind: output, shape index: {}]  }
   0x1   :  { %7743 = sst [smem:[#allocation16_spill]] %s7698_s0 }
   0x2   :  { %7744 = sst [smem:[#allocation17_spill]] %s7699_s1 }
   0x3   :  { %7745 = sst [smem:[#allocation18_spill]] %s7700_s2 }
   0x4   :  { %7746 = sst [smem:[#allocation19_spill]] %s7701_s3 }
   0x5   :  { %7747 = sst [smem:[#allocation20_spill]] %s7702_s4 }
   0x6   :  { %7748 = sst [smem:[#allocation21_spill]] %s7703_s5 }
   0x7   :  { %7749 = sst [smem:[#allocation22_spill]] %s7704_s6 }
   0x8   :  { %7750 = sst [smem:[#allocation23_spill]] %s7705_s7 }
   0x9   :  { %7751 = sst [smem:[#allocation24_spill]] %s7706_s8 }
   0xa   :  { %7752 = sst [smem:[#allocation25_spill]] %s7707_s9 }
   0xb   :  { %7753 = sst [smem:[#allocation26_spill]] %s7708_s10 }
   0xc   :  { %7754 = sst [smem:[#allocation27_spill]] %s7721_s23 }
   0xd   :  { %7755 = sst [smem:[#allocation28_spill]] %s7722_s24 }
   0xe   :  { %29 = vsyncpa [#allocation3], 0 }
   0xf   :  { %31 = vsyncpa [#allocation3 + $0x1], 0  ;;  %s6330_s5 = smov 0   ;;  %s6332_s26 = smov 0  }
  0x10   :  { %s6334_s27 = smov 0   ;;  %s6336_s28 = smov 0  }
  0x11   :  { %s6338_s6 = smov 0   ;;  %s6340_s2 = smov 0  }
  0x12   :  { %s6342_s29 = smov 0   ;;  %s6344_s0 = smov 0  }
  0x13 LB: > { %7756 = sst [smem:[#allocation5_spill]] %s6174_s5  ;;  %s4289_s7 = sadd.s32 4294967295, %s6202_s0   ;;  %s6202_s0 = sphi %s6344_s0, %s37_s0   ;;  %s6198_s29 = sphi %s6342_s29, %s7794_s29   ;;  %s6194_s2 = sphi %s6340_s2, %s7793_s2   ;;  %s6190_s6 = sphi %s6338_s6, %s7792_s6   ;;  %s6186_s28 = sphi %s6336_s28, %s7791_s28   ;;  %s6182_s27 = sphi %s6334_s27, %s7790_s27   ;;  %s6178_s26 = sphi %s6332_s26, %s7796_s26   ;;  %s6174_s5 = sphi %s6330_s5, %s7795_s5  }
  0x14   : > { %7757 = sst [smem:[#allocation6_spill]] %s6182_s27  ;;  %s4290_s30 = sadd.s32 4294967294, %s6202_s0  }
  0x15   : > { %7758 = sst [smem:[#allocation7_spill]] %s6186_s28  ;;  %s46_s3 = sadd.s32 1, %s6194_s2 }
  0x16   : > { %7759 = sst [smem:[#allocation8_spill]] %s6194_s2  ;;  %p47_p0 = scmp.ge.s32.totalorder %s46_s3, 2 }
  0x17   : > { %7760 = sst [smem:[#allocation9_spill]] %s6198_s29  ;;  %s49_s25 = sadd.s32 1, %s6198_s29 }
  0x18   : > { %7761 = sst [smem:[#allocation10_spill]] %s6202_s0  ;;  %p582_p1 = scmp.ne.s32.totalorder %s6182_s27, %s6178_s26 }
  0x19   : > { %p583_p2 = scmp.eq.s32.totalorder %s4289_s7, 3  ;;  %s7798_s3 = smov (%p47_p0, %s46_s3), 0 }
  0x1a   : > { %7762 = sst [smem:[#allocation11_spill]] %s7798_s3  ;;  %s7800_s25 = smov (!%p47_p0, %s49_s25), %s6198_s29 }
  0x1b   : > { %s568_s8 = ssub.s32 %s6194_s2, %s7798_s3  ;;  %p6381_p3 = por %p583_p2, %p582_p1 }
  0x1c   : > { %p51_p4 = scmp.ge.s32.totalorder %s7800_s25, 2  ;;  %p588_p5 = scmp.ne.s32.totalorder %s6178_s26, %s6174_s5 }
  0x1d   : > { %s7763_s4 = scalar_select %p6381_p3, 1, 0 }
  0x1e   : > { %p589_p6 = scmp.eq.s32.totalorder %s4290_s30, 3  ;;  %p4293_p7 = scmp.ge.s32.totalorder %s6202_s0, 1 }
  0x1f   : > { %7764 = sst [smem:[#allocation12_spill]] %s7763_s4  ;;  %s7802_s25 = smov (%p51_p4, %s7800_s25), 0 }
  0x20   : > { %7765 = sst [smem:[#allocation13_spill]] %s7802_s25  ;;  %p6390_p8 = por %p589_p6, %p588_p5 }
  0x21   : > { %p689_p9 = scmp.lt.s32.totalorder %s6202_s0, 5  ;;  %s567_s7 = ssub.s32 %s6198_s29, %s7802_s25 }
  0x22   : > { %s7766_s1 = scalar_select %p6390_p8, 1, 0 }
  0x23   : > { %s572_s24 = sadd.s32 1, %s6182_s27  ;;  %s569_s23 = sor.u32 %s568_s8, %s567_s7 }
  0x24   : > { %7767 = sst [smem:[#allocation14_spill]] %s7766_s1  ;;  %p690_p10 = pnand %p4293_p7, %p689_p9 }
  0x25   : > { %p570_p11 = scmp.eq.s32.totalorder %s569_s23, 0  ;;  %p760_p12 = scmp.lt.s32.totalorder (!%p690_p10), %s6190_s6, 1 }
  0x26   : > { %693 = sbr.rel (%p690_p10) target bundleno = 5902 (0x170e), region = 116  ;;  %s4298_s30 = sshll.u32 (!%p690_p10), %s6186_s28, 3 }
  0x27   : > { %s6399_s3 = scalar_select %p570_p11, %s6182_s27, %s572_s24  }
  0x28   : > { %s7769_s0 = sld [smem:[#allocation16_spill]] (!%p690_p10)  ;;  %s5696_s4 = sshll.u32 (!%p690_p10), %s6190_s6, 1 }
  0x29   : > { %7768 = sst [smem:[#allocation15_spill]] %s6399_s3 }
  0x2a   : > { %s7773_s3 = sld [smem:[#allocation22_spill]] (!%p690_p10) }
  0x2b   : > { %s6404_s2 = scalar_select %p760_p12, %s6190_s6, 1  ;;  %v6204_v3 = vmov 128.0   ;;  %vm1098_vm10 = vcmask 261120   ;;  %vm1118_vm11 = vcmask 130048   ;;  %vm2297_vm12 = vcmask 523264  }
  0x2c   : > { %6056 = vrcp.f32 %v6204_v3  ;;  %s7774_s24 = sld [smem:[#allocation18_spill]] }
  0x2d   : > { %s5700_s5 = sshll.u32 %s6404_s2, 4  ;;  %s7775_s29 = sld [smem:[#allocation19_spill]] }
  0x2e   : > { %s764_s25 = scalar_lea.vmem %s7769_s0, %s5700_s5  ;;  %s7770_s5 = sld [smem:[#allocation20_spill]] }
  0x2f   : > { %v774_v0 = vld [vmem:[%s764_s25] sm:$0xff]  ;;  %s772_s8 = scalar_lea.vmem %s764_s25, %s4298_s30  ;;  %v775_v2 = vld [vmem:[%s764_s25 + $0x8] sm:$0xff]  ;;  %s7772_s30 = sld [smem:[#allocation21_spill]] }
  0x30   : > { %817 = vadd.xlane.f32.xlu0 %v774_v0  ;;  %v6410_v1 = vld [vmem:[%s772_s8] sm:$0xff]  ;;  %v5725_v25 = vld [vmem:[%s7773_s3 + $0x38] sm:$0xff]  ;;  %v5724_v28 = vld [vmem:[%s7773_s3 + $0x30] sm:$0xff]  ;;  %s7776_s23 = sld [smem:[#allocation23_spill]]  ;;  %s5974_s1 = smul.u32 12, %s6404_s2 }
  0x31   : > { %781 = vadd.xlane.f32.xlu1 %v6410_v1  ;;  %1083 = vmatpush.bf16.msra.mxu2 %v5725_v25  ;;  %v5723_v31 = vld [vmem:[%s7773_s3 + $0x28] sm:$0xff]  ;;  %v5722_v34 = vld [vmem:[%s7773_s3 + $0x20] sm:$0xff]  ;;  %v5721_v37 = vld [vmem:[%s7773_s3 + $0x18] sm:$0xff]  ;;  %s7777_s7 = sld [smem:[#allocation24_spill]] }
  0x32   : > { %v6057_v4 = vpop.eup %6056  ;;  %v5720_v40 = vld [vmem:[%s7773_s3 + $0x10] sm:$0xff]  ;;  %v5719_v43 = vld [vmem:[%s7773_s3 + $0x8] sm:$0xff]  ;;  %v5718_v48 = vld [vmem:[%s7773_s3] sm:$0xff]  ;;  %s7779_s9 = sld [smem:[#allocation25_spill]] }
  0x33   : > { %v784_v5 = vmul.f32 128.0, %v6057_v4  ;;  %vm788_vm0 = vweird.f32 %v6057_v4  ;;  %s7780_s10 = sld [smem:[#allocation26_spill]] }
  0x34   : > { %s7771_s25 = smov %s7770_s5  ;;  %v5709_v22 = vld [vmem:[%s7770_s5 + $0x38] sm:$0xff]  ;;  %s7778_s5 = sld [smem:[#allocation17_spill]] }
  0x35   : > { %v785_v6 = vsub.f32 1.0, %v784_v5  ;;  %926 = vmatpush.bf16.msra.mxu0 %v5709_v22  ;;  %v5708_v23 = vld [vmem:[%s7771_s25 + $0x30] sm:$0xff]  ;;  %v5717_v24 = vld [vmem:[%s7772_s30 + $0x38] sm:$0xff]  ;;  %v5707_v26 = vld [vmem:[%s7771_s25 + $0x28] sm:$0xff]  ;;  %1084 = vmatpush.bf16.msra.mxu2 %v5724_v28  ;;  %s7783_s2 = sld [smem:[#allocation28_spill]] }
  0x36   : > { %1004 = vmatpush.bf16.msra.mxu1 %v5717_v24  ;;  %v5716_v27 = vld [vmem:[%s7772_s30 + $0x30] sm:$0xff]  ;;  %v5706_v29 = vld [vmem:[%s7771_s25 + $0x20] sm:$0xff]  ;;  %v5715_v30 = vld [vmem:[%s7772_s30 + $0x28] sm:$0xff] }
  0x37   : > { %v786_v7 = vmul.f32 %v6057_v4, %v785_v6  ;;  %v5705_v32 = vld [vmem:[%s7771_s25 + $0x18] sm:$0xff]  ;;  %v5714_v33 = vld [vmem:[%s7772_s30 + $0x20] sm:$0xff]  ;;  %v5704_v35 = vld [vmem:[%s7771_s25 + $0x10] sm:$0xff] }
  0x38   : > { %819 = vadd.xlane.f32.xlu0 %v775_v2  ;;  %v5713_v36 = vld [vmem:[%s7772_s30 + $0x18] sm:$0xff]  ;;  %v5703_v38 = vld [vmem:[%s7771_s25 + $0x8] sm:$0xff]  ;;  %v5712_v39 = vld [vmem:[%s7772_s30 + $0x10] sm:$0xff] }
  0x39   : > { %v787_v8 = vadd.f32 %v6057_v4, %v786_v7  ;;  %927 = vmatpush.bf16.msra.mxu0 %v5708_v23  ;;  %1085 = vmatpush.bf16.msra.mxu2 %v5723_v31  ;;  %v5702_v41 = vld [vmem:[%s7771_s25] sm:$0xff]  ;;  %v5711_v42 = vld [vmem:[%s7772_s30 + $0x8] sm:$0xff]  ;;  %v5743_v44 = vld [vmem:[%s7772_s30 + $0x78] sm:$0xff] }
  0x3a   : > { %1005 = vmatpush.bf16.msra.mxu1 %v5716_v27  ;;  %v5710_v47 = vld [vmem:[%s7772_s30] sm:$0xff]  ;;  %v5742_v49 = vld [vmem:[%s7772_s30 + $0x70] sm:$0xff]  ;;  %v5741_v51 = vld [vmem:[%s7772_s30 + $0x68] sm:$0xff]  ;;  %s769_s0 = scalar_lea.vmem %s7778_s5, %s5974_s1 }
  0x3b   : > { %v6413_v9 = vsel %vm788_vm0, %v6057_v4, %v787_v8  ;;  %v5740_v54 = vld [vmem:[%s7772_s30 + $0x60] sm:$0xff]  ;;  %v5739_v59 = vld [vmem:[%s7772_s30 + $0x58] sm:$0xff]  ;;  %v5738_v63 = vld [vmem:[%s7772_s30 + $0x50] sm:$0xff]  ;;  %vm2414_vm0 = vcmask 1043456  }
  0x3c   : > { %v5737_v6 = vld [vmem:[%s7772_s30 + $0x48] sm:$0xff]  ;;  %v6048_v23 = vld [vmem:[%s7775_s29] ss:$0 sm:$0xff] }
  0x3d   : > { %928 = vmatpush.bf16.msra.mxu0 %v5707_v26  ;;  %1086 = vmatpush.bf16.msra.mxu2 %v5722_v34 }
  0x3e   : > { %1006 = vmatpush.bf16.msra.mxu1 %v5715_v30 }
  0x41   : > { %929 = vmatpush.bf16.msra.mxu0 %v5706_v29  ;;  %1087 = vmatpush.bf16.msra.mxu2 %v5721_v37 }
  0x42   : > { %1007 = vmatpush.bf16.msra.mxu1 %v5714_v33 }
  0x45   : > { %930 = vmatpush.bf16.msra.mxu0 %v5705_v32  ;;  %1088 = vmatpush.bf16.msra.mxu2 %v5720_v40 }
  0x46   : > { %1008 = vmatpush.bf16.msra.mxu1 %v5713_v36 }
  0x49   : > { %931 = vmatpush.bf16.msra.mxu0 %v5704_v35  ;;  %1089 = vmatpush.bf16.msra.mxu2 %v5719_v43 }
  0x4a   : > { %1009 = vmatpush.bf16.msra.mxu1 %v5712_v39 }
  0x4d   : > { %932 = vmatpush.bf16.msra.mxu0 %v5703_v38  ;;  %1090 = vmatpush.bf16.msra.mxu2 %v5718_v48  ;;  %v5748_v48 = vld [vmem:[%s7773_s3 + $0x60] sm:$0xff] }
  0x4e   : > { %1010 = vmatpush.bf16.msra.mxu1 %v5711_v42  ;;  %v5750_v42 = vld [vmem:[%s7773_s3 + $0x70] sm:$0xff] }
  0x51   : > { %933 = vmatpush.bf16.msra.mxu0 %v5702_v41 }
  0x52   : > { %1011 = vmatpush.bf16.msra.mxu1 %v5710_v47  ;;  %v5749_v47 = vld [vmem:[%s7773_s3 + $0x68] sm:$0xff] }
  0x55   : > { %1296 = vmatpush.bf16.msrb.mxu0 %v5743_v44 }
  0x59   : > { %1297 = vmatpush.bf16.msrb.mxu0 %v5742_v49 }
  0x5d   : > { %1298 = vmatpush.bf16.msrb.mxu0 %v5741_v51  ;;  %v5746_v51 = vld [vmem:[%s7773_s3 + $0x50] sm:$0xff] }
  0x61   : > { %1299 = vmatpush.bf16.msrb.mxu0 %v5740_v54  ;;  %v5745_v54 = vld [vmem:[%s7773_s3 + $0x48] sm:$0xff] }
  0x65   : > { %1300 = vmatpush.bf16.msrb.mxu0 %v5739_v59  ;;  %v5759_v59 = vld [vmem:[%s7771_s25 + $0xa8] sm:$0xff] }
  0x69   : > { %1301 = vmatpush.bf16.msrb.mxu0 %v5738_v63  ;;  %v5755_v63 = vld [vmem:[%s7771_s25 + $0x88] sm:$0xff] }
  0x6d   : > { %1302 = vmatpush.bf16.msrb.mxu0 %v5737_v6 }
  0xa3   : > { %v818_v10 = vpop.xlane.xlu0 %817 }
  0xa4   : > { %v821_v11 = vmul.f32 %v818_v10, %v6413_v9  ;;  %v782_v15 = vpop.xlane.xlu1 %781 }
  0xa5   : > { %v790_v18 = vmul.f32 %v6413_v9, %v782_v15  ;;  %v6047_v15 = vld [vmem:[%s7774_s24] ss:$0 sm:$0xff] }
  0xa6   : > { %v6416_v12 = vsub.f32 %v774_v0, %v821_v11  ;;  %v5736_v11 = vld [vmem:[%s7772_s30 + $0x40] sm:$0xff] }
  0xa7   : > { %v6427_v20 = vsub.f32 %v6410_v1, %v790_v18  ;;  %1303 = vmatpush.bf16.msrb.mxu0 %v5736_v11  ;;  %v5735_v11 = vld [vmem:[%s7771_s25 + $0x78] sm:$0xff] }
  0xa8   : > { %v825_v13 = vmul.f32 %v6416_v12, %v6416_v12 }
  0xa9   : > { %v792_v21 = vmul.f32 %v6427_v20, %v6427_v20 }
  0xaa   : > { %827 = vadd.xlane.f32.xlu1 %v825_v13 }
  0xab   : > { %v820_v14 = vpop.xlane.xlu0 %819 }
  0xac   : > { %v822_v16 = vmul.f32 %v820_v14, %v6413_v9 }
  0xae   : > { %v6421_v17 = vsub.f32 %v775_v2, %v822_v16 }
  0xb0   : > { %v826_v19 = vmul.f32 %v6421_v17, %v6421_v17 }
  0xb2   : > { %829 = vadd.xlane.f32.xlu2 %v826_v19 }
  0xba   : > { %793 = vadd.xlane.f32.xlu2 %v792_v21 }
 0x11d   : > { %v828_v45 = vpop.xlane.xlu1 %827 }
 0x11e   : > { %v831_v46 = vmul.f32 %v828_v45, %v6413_v9 }
 0x120   : > { %v833_v50 = vadd.f32 1e-05, %v831_v46 }
 0x122   : > { %6058 = vrsqrt.f32 %v833_v50  ;;  %vm841_vm2 = vweird.f32 %v833_v50 }
 0x125   : > { %v830_v52 = vpop.xlane.xlu2 %829 }
 0x126   : > { %v832_v53 = vmul.f32 %v830_v52, %v6413_v9 }
 0x128   : > { %v6059_v55 = vpop.eup %6058  ;;  %v834_v56 = vadd.f32 1e-05, %v832_v53 }
 0x129   : > { %v836_v57 = vmul.f32 %v6059_v55, %v833_v50  ;;  %vm842_vm1 = vweird.f32 %v6059_v55  ;;  %v5747_v50 = vld [vmem:[%s7773_s3 + $0x58] sm:$0xff] }
 0x12a   : > { %6060 = vrsqrt.f32 %v834_v56  ;;  %vm843_vm3 = vmor %vm841_vm2, %vm842_vm1  ;;  %vm851_vm5 = vweird.f32 %v834_v56  ;;  %vm2398_vm1 = vcmask 195584  }
 0x12b   : > { %v837_v58 = vmul.f32 %v6059_v55, %v836_v57  ;;  %v5761_v57 = vld [vmem:[%s7771_s25 + $0xb8] sm:$0xff] }
 0x12d   : > { %v838_v60 = vmul.f32 0.5, %v837_v58  ;;  %v794_v61 = vpop.xlane.xlu2 %793  ;;  %v5760_v58 = vld [vmem:[%s7771_s25 + $0xb0] sm:$0xff] }
 0x12e   : > { %v795_v62 = vmul.f32 %v794_v61, %v6413_v9  ;;  %v5757_v61 = vld [vmem:[%s7771_s25 + $0x98] sm:$0xff] }
 0x12f   : > { %v839_v0 = vsub.f32 1.5, %v838_v60  ;;  %v5758_v60 = vld [vmem:[%s7771_s25 + $0xa0] sm:$0xff] }
 0x130   : > { %v6061_v2 = vpop.eup %6060  ;;  %v796_v3 = vadd.f32 1e-05, %v795_v62  ;;  %v5756_v62 = vld [vmem:[%s7771_s25 + $0x90] sm:$0xff] }
 0x131   : > { %v840_v4 = vmul.f32 %v6059_v55, %v839_v0  ;;  %v846_v5 = vmul.f32 %v6061_v2, %v834_v56  ;;  %vm852_vm4 = vweird.f32 %v6061_v2  ;;  %v5744_v56 = vld [vmem:[%s7773_s3 + $0x40] sm:$0xff] }
 0x132   : > { %6062 = vrsqrt.f32 %v796_v3  ;;  %vm853_vm6 = vmor %vm851_vm5, %vm852_vm4  ;;  %vm803_vm7 = vweird.f32 %v796_v3  ;;  %v5754_v0 = vld [vmem:[%s7771_s25 + $0x80] sm:$0xff] }
 0x133   : > { %v847_v7 = vmul.f32 %v6061_v2, %v846_v5  ;;  %v844_v8 = vsel %vm843_vm3, %v6059_v55, %v840_v4 }
 0x134   : > { %v855_v16 = vmul.f32 %v844_v8, %v6416_v12 }
 0x135   : > { %v848_v10 = vmul.f32 0.5, %v847_v7 }
 0x136   : > { %v857_v24 = vmul.f32 %v6047_v15, %v855_v16 }
 0x137   : > { %v849_v13 = vsub.f32 1.5, %v848_v10 }
 0x138   : > { %v6063_v14 = vpop.eup %6062  ;;  %v859_v12 = vadd.f32 %v6048_v23, %v857_v24  ;;  %v5730_v24 = vld [vmem:[%s7771_s25 + $0x50] sm:$0xff] }
 0x139   : > { %v850_v18 = vmul.f32 %v6061_v2, %v849_v13  ;;  %v798_v19 = vmul.f32 %v6063_v14, %v796_v3  ;;  %vm804_vm8 = vweird.f32 %v6063_v14 }
 0x13a   : > { %vm805_vm9 = vmor %vm803_vm7, %vm804_vm8 }
 0x13b   : > { %v854_v21 = vsel %vm853_vm6, %v6061_v2, %v850_v18  ;;  %v799_v22 = vmul.f32 %v6063_v14, %v798_v19  ;;  %v5734_v19 = vld [vmem:[%s7771_s25 + $0x70] sm:$0xff] }
 0x13c   : > { %v856_v25 = vmul.f32 %v854_v21, %v6421_v17  ;;  %v5733_v21 = vld [vmem:[%s7771_s25 + $0x68] sm:$0xff] }
 0x13d   : > { %v800_v26 = vmul.f32 0.5, %v799_v22  ;;  %v5732_v22 = vld [vmem:[%s7771_s25 + $0x60] sm:$0xff] }
 0x13e   : > { %v858_v27 = vmul.f32 %v6047_v15, %v856_v25  ;;  %v5729_v25 = vld [vmem:[%s7771_s25 + $0x48] sm:$0xff] }
 0x13f   : > { %v801_v28 = vsub.f32 1.5, %v800_v26  ;;  %v5728_v26 = vld [vmem:[%s7771_s25 + $0x40] sm:$0xff] }
 0x140   : > { %v860_v29 = vadd.f32 %v6048_v23, %v858_v27  ;;  %v5727_v27 = vld [vmem:[%s7776_s23 + $0x8] sm:$0xff] }
 0x141   : > { %v802_v30 = vmul.f32 %v6063_v14, %v801_v28 }
 0x142   : > { %v6538_v31 = vpack.c.bf16 %v860_v29, %v859_v12 }
 0x143   : > { %v806_v32 = vsel %vm805_vm9, %v6063_v14, %v802_v30 }
 0x144   : > { %v807_v33 = vmul.f32 %v806_v32, %v6427_v20  ;;  %1012 = vmatmul.bf16.vlgmr.msra.gmra.mxu1 %v6538_v31  ;;  %1091 = vmatmul.bf16.vlgmr.msra.gmra.mxu2 %v6538_v31  ;;  %v5751_v20 = vld [vmem:[%s7773_s3 + $0x78] sm:$0xff]  ;;  %v5726_v32 = vld [vmem:[%s7776_s23] sm:$0xff] }
 0x146   : > { %v811_v34 = vmul.f32 %v6047_v15, %v807_v33 }
 0x148   : > { %v815_v17 = vadd.f32 %v6048_v23, %v811_v34  ;;  %v5731_v23 = vld [vmem:[%s7771_s25 + $0x58] sm:$0xff] }
 0x14a   : > { %v6543_v35 = vpack.c.bf16 %v815_v17, %v815_v17 }
 0x14c   : > { %934 = vmatmul.bf16.vlgmr.msra.gmra.mxu0 %v6543_v35 }
 0x14d   : > { %1493 = vmatpush.bf16.msra.mxu0 %v5727_v27  ;;  %v5791_v27 = vld [vmem:[%s7772_s30 + $0xd8] sm:$0xff] }
 0x151   : > { %1494 = vmatpush.bf16.msra.mxu0 %v5726_v32 }
 0x15c   : > { %1304 = vmatmul.bf16.vlgmr.msrb.gmra.mxu0 %v6538_v31 }
 0x1c1   : > { %v1013_v36 = vpop.f32.mrf.mxu1 }
 0x1c7   : > { %v1092_v37 = vpop.f32.mrf.mxu2 }
 0x1c9   : > { %v935_v38 = vpop.f32.mrf.mxu0  ;;  %v1015_v39 = vpop.f32.mrf.mxu1 }
 0x1ca   : > { %v1018_v40 = vpack.c.bf16 %v1015_v39, %v1013_v36  ;;  %v939_v46 = vpack.c.bf16 %v935_v38, %v935_v38 }
 0x1cc   : > { %v1103_v41 = vsel %vm1098_vm10, %v1018_v40, 0 }
 0x1cd   : > { %1112 = vmatpush.bf16.xpose.msrb.mxu1 %v1103_v41 }
 0x1cf   : > { %v1094_v43 = vpop.f32.mrf.mxu2 }
 0x1d0   : > { %v1097_v44 = vpack.c.bf16 %v1094_v43, %v1092_v37  ;;  %v5769_v43 = vld [vmem:[%s7772_s30 + $0xb8] sm:$0xff] }
 0x1d1   : > { %v937_v45 = vpop.f32.mrf.mxu0 }
 0x1d2   : > { %1141 = vmatpush.bf16.msra.mxu3 %v1097_v44  ;;  %v5768_v44 = vld [vmem:[%s7772_s30 + $0xb0] sm:$0xff]  ;;  %v5767_v45 = vld [vmem:[%s7772_s30 + $0xa8] sm:$0xff] }
 0x1d4   : > { %4395 = vmatmul.msk.bf16.vlgmr.msrb.gmra.mxu1 %vm1098_vm10, %v939_v46  ;;  %v5766_v46 = vld [vmem:[%s7772_s30 + $0xa0] sm:$0xff] }
 0x1d5   : > { %1376 = vmatpush.bf16.msra.mxu1 %v5751_v20 }
 0x1d6   : > { %1217 = vmatpush.bf16.msrb.mxu3 %v5735_v11  ;;  %v5773_v11 = vld [vmem:[%s7773_s3 + $0x98] sm:$0xff] }
 0x1d9   : > { %1377 = vmatpush.bf16.msra.mxu1 %v5750_v42  ;;  %v1305_v49 = vpop.f32.mrf.mxu0 }
 0x1da   : > { %1218 = vmatpush.bf16.msrb.mxu3 %v5734_v19 }
 0x1dd   : > { %1378 = vmatpush.bf16.msra.mxu1 %v5749_v47 }
 0x1de   : > { %1219 = vmatpush.bf16.msrb.mxu3 %v5733_v21  ;;  %v5795_v21 = vld [vmem:[%s7772_s30 + $0xf8] sm:$0xff] }
 0x1e1   : > { %1379 = vmatpush.bf16.msra.mxu1 %v5748_v48  ;;  %v1307_v52 = vpop.f32.mrf.mxu0 }
 0x1e2   : > { %v1310_v53 = vpack.c.bf16 %v1307_v52, %v1305_v49  ;;  %1220 = vmatpush.bf16.msrb.mxu3 %v5732_v22  ;;  %v5765_v52 = vld [vmem:[%s7772_s30 + $0x98] sm:$0xff] }
 0x1e4   : > { %v1395_v55 = vsel %vm1098_vm10, %v1310_v53, 0  ;;  %v5764_v53 = vld [vmem:[%s7772_s30 + $0x90] sm:$0xff] }
 0x1e5   : > { %1380 = vmatpush.bf16.msra.mxu1 %v5747_v50  ;;  %1404 = vmatpush.bf16.xpose.msrb.mxu2 %v1395_v55  ;;  %v5762_v55 = vld [vmem:[%s7772_s30 + $0x80] sm:$0xff] }
 0x1e6   : > { %1221 = vmatpush.bf16.msrb.mxu3 %v5731_v23  ;;  %v5794_v23 = vld [vmem:[%s7772_s30 + $0xf0] sm:$0xff] }
 0x1e9   : > { %1381 = vmatpush.bf16.msra.mxu1 %v5746_v51 }
 0x1ea   : > { %1222 = vmatpush.bf16.msrb.mxu3 %v5730_v24 }
 0x1ed   : > { %1382 = vmatpush.bf16.msra.mxu1 %v5745_v54  ;;  %v5763_v54 = vld [vmem:[%s7772_s30 + $0x88] sm:$0xff] }
 0x1ee   : > { %1223 = vmatpush.bf16.msrb.mxu3 %v5729_v25  ;;  %v5792_v25 = vld [vmem:[%s7772_s30 + $0xe0] sm:$0xff] }
 0x1f1   : > { %1383 = vmatpush.bf16.msra.mxu1 %v5744_v56 }
 0x1f2   : > { %1224 = vmatpush.bf16.msrb.mxu3 %v5728_v26 }
 0x1f4   : > { %1384 = vmatmul.bf16.vlgmr.msra.gmra.mxu1 %v6538_v31 }
 0x1f5   : > { %1565 = vmatpush.bf16.msrb.mxu1 %v5761_v57 }
 0x1f9   : > { %1566 = vmatpush.bf16.msrb.mxu1 %v5760_v58 }
 0x1fd   : > { %1567 = vmatpush.bf16.msrb.mxu1 %v5759_v59  ;;  %v5787_v59 = vld [vmem:[%s7771_s25 + $0xf8] sm:$0xff] }
 0x201   : > { %1568 = vmatpush.bf16.msrb.mxu1 %v5758_v60 }
 0x205   : > { %1569 = vmatpush.bf16.msrb.mxu1 %v5757_v61  ;;  %v5753_v61 = vld [vmem:[%s7776_s23 + $0x18] sm:$0xff] }
 0x209   : > { %1570 = vmatpush.bf16.msrb.mxu1 %v5756_v62  ;;  %v5786_v62 = vld [vmem:[%s7771_s25 + $0xf0] sm:$0xff] }
 0x20d   : > { %1571 = vmatpush.bf16.msrb.mxu1 %v5755_v63  ;;  %v5752_v63 = vld [vmem:[%s7776_s23 + $0x10] sm:$0xff] }
 0x211   : > { %1572 = vmatpush.bf16.msrb.mxu1 %v5754_v0  ;;  %v5777_v0 = vld [vmem:[%s7773_s3 + $0xb8] sm:$0xff] }
 0x214   : > { %1573 = vmatmul.bf16.vlgmr.msrb.gmra.mxu1 %v6543_v35 }
 0x251   : > { %v1114_v2 = vpop.f32.mrf.mxu1 }
 0x252   : > { %v1119_v3 = vsel %vm1118_vm11, %v1114_v2, -inf }
 0x253   : > { %1120 = vmax.xlane.f32.xlu0 %v1119_v3  ;;  %v5776_v3 = vld [vmem:[%s7773_s3 + $0xb0] sm:$0xff] }
 0x259   : > { %v1116_v4 = vpop.f32.mrf.mxu1 }
 0x25a   : > { %v5784_v4 = vld [vmem:[%s7771_s25 + $0xe0] sm:$0xff] }
 0x271   : > { %v1385_v5 = vpop.f32.mrf.mxu1 }
 0x279   : > { %v1387_v6 = vpop.f32.mrf.mxu1 }
 0x27a   : > { %v1390_v7 = vpack.c.bf16 %v1387_v6, %v1385_v5  ;;  %v5775_v5 = vld [vmem:[%s7773_s3 + $0xa8] sm:$0xff]  ;;  %v5783_v6 = vld [vmem:[%s7771_s25 + $0xd8] sm:$0xff] }
 0x27c   : > { %1432 = vmatpush.bf16.msra.mxu2 %v1390_v7  ;;  %v5774_v7 = vld [vmem:[%s7773_s3 + $0xa0] sm:$0xff] }
 0x291   : > { %v6601_v8 = vpop.f32.mrf.mxu1 }
 0x299   : > { %v1576_v10 = vpop.f32.mrf.mxu1 }
 0x29a   : > { %v5782_v10 = vld [vmem:[%s7771_s25 + $0xd0] sm:$0xff] }
 0x2c6   : > { %v1121_v13 = vpop.xlane.xlu0 %1120 }
 0x2c7   : > { %v1122_v14 = vsub.f32 %v1114_v2, %v1121_v13  ;;  %v5785_v2 = vld [vmem:[%s7771_s25 + $0xe8] sm:$0xff] }
 0x2c8   : > { %v5781_v13 = vld [vmem:[%s7771_s25 + $0xc8] sm:$0xff] }
 0x2c9   : > { %v1123_v15 = vmul.f32 1.442695, %v1122_v14  ;;  %v5772_v14 = vld [vmem:[%s7773_s3 + $0x90] sm:$0xff] }
 0x2cb   : > { %6064 = vpow2.f32 %v1123_v15  ;;  %v5780_v15 = vld [vmem:[%s7771_s25 + $0xc0] sm:$0xff]  ;;  %s7782_s25 = sld [smem:[#allocation27_spill]] }
 0x2d1   : > { %v6065_v16 = vpop.eup %6064 }
 0x2d2   : > { %v1125_v18 = vsel %vm1118_vm11, %v6065_v16, 0.0 }
 0x2d3   : > { %1126 = vadd.xlane.f32.xlu1 %v1125_v18  ;;  %v5770_v18 = vld [vmem:[%s7773_s3 + $0x80] sm:$0xff] }
 0x346   : > { %v1127_v28 = vpop.xlane.xlu1 %1126 }
 0x347   : > { %6066 = vrcp.f32 %v1127_v28  ;;  %v5790_v28 = vld [vmem:[%s7772_s30 + $0xd0] sm:$0xff] }
 0x34d   : > { %v6067_v12 = vpop.eup %6066 }
 0x34e   : > { %v1129_v29 = vmul.f32 %v6067_v12, %v6065_v16  ;;  %v5771_v16 = vld [vmem:[%s7773_s3 + $0x88] sm:$0xff] }
 0x350   : > { %v1130_v30 = vpack.c.bf16 %v1129_v29, %v1129_v29  ;;  %v5789_v29 = vld [vmem:[%s7772_s30 + $0xc8] sm:$0xff] }
 0x352   : > { %4396 = vmatmul.msk.bf16.vlgmr.msra.gmra.mxu3 %vm1118_vm11, %v1130_v30 }
 0x353   : > { %1465 = vmatpush.bf16.msra.mxu3 %v5753_v61  ;;  %v5797_v61 = vld [vmem:[%s7773_s3 + $0xc8] sm:$0xff] }
 0x357   : > { %1466 = vmatpush.bf16.msra.mxu3 %v5752_v63 }
 0x362   : > { %1225 = vmatmul.bf16.vlgmr.msrb.gmra.mxu3 %v6543_v35 }
 0x363   : > { %1724 = vmatpush.bf16.msrb.mxu3 %v5777_v0 }
 0x367   : > { %1725 = vmatpush.bf16.msrb.mxu3 %v5776_v3 }
 0x36b   : > { %1726 = vmatpush.bf16.msrb.mxu3 %v5775_v5 }
 0x36f   : > { %1727 = vmatpush.bf16.msrb.mxu3 %v5774_v7 }
 0x373   : > { %1728 = vmatpush.bf16.msrb.mxu3 %v5773_v11 }
 0x377   : > { %1729 = vmatpush.bf16.msrb.mxu3 %v5772_v14 }
 0x37b   : > { %1730 = vmatpush.bf16.msrb.mxu3 %v5771_v16 }
 0x37f   : > { %1731 = vmatpush.bf16.msrb.mxu3 %v5770_v18 }
 0x3d5   : > { %v1143_v33 = vpop.f32.mrf.mxu3 }
 0x3d6   : > { %v1147_v34 = vpack.c.bf16 %v1143_v33, %v1143_v33  ;;  %v5788_v33 = vld [vmem:[%s7772_s30 + $0xc0] sm:$0xff] }
 0x3d8   : > { %4564 = vmatmul.msk.bf16.vlgmr.msra.gmra.mxu0 %vm1098_vm10, %v1147_v34 }
 0x3dd   : > { %v1145_v17 = vpop.f32.mrf.mxu3 }
 0x3de   : > { %v1578_v17 = vpack.c.bf16 %v6601_v8, %v6601_v8 }
 0x3e5   : > { %v1226_v36 = vpop.f32.mrf.mxu3 }
 0x3e6   : > { %v1230_v37 = vpack.c.bf16 %v1226_v36, %v1226_v36 }
 0x3e8   : > { %4541 = vmatmul.msk.bf16.vlgmr.msrb.gmra.mxu2 %vm1098_vm10, %v1230_v37 }
 0x3e9   : > { %1644 = vmatpush.bf16.msrb.mxu2 %v5769_v43 }
 0x3ed   : > { %v1228_v38 = vpop.f32.mrf.mxu3  ;;  %1645 = vmatpush.bf16.msrb.mxu2 %v5768_v44 }
 0x3ee   : > { %v5779_v38 = vld [vmem:[%s7776_s23 + $0x28] sm:$0xff] }
 0x3ef   : > { %1813 = vmatpush.bf16.msra.mxu1 %v5779_v38 }
 0x3f1   : > { %1646 = vmatpush.bf16.msrb.mxu2 %v5767_v45 }
 0x3f5   : > { %1647 = vmatpush.bf16.msrb.mxu2 %v5766_v46 }
 0x3f9   : > { %1648 = vmatpush.bf16.msrb.mxu2 %v5765_v52 }
 0x3fd   : > { %1649 = vmatpush.bf16.msrb.mxu2 %v5764_v53 }
 0x401   : > { %1650 = vmatpush.bf16.msrb.mxu2 %v5763_v54 }
 0x405   : > { %1651 = vmatpush.bf16.msrb.mxu2 %v5762_v55 }
 0x455   : > { %v6638_v39 = vpop.f32.mrf.mxu0 }
 0x45d   : > { %v1498_v40 = vpop.f32.mrf.mxu0 }
 0x46b   : > { %v1406_v20 = vpop.f32.mrf.mxu2 }
 0x46c   : > { %v1410_v41 = vsel %vm1118_vm11, %v1406_v20, -inf }
 0x46d   : > { %1411 = vmax.xlane.f32.xlu2 %v1410_v41 }
 0x473   : > { %v1408_v42 = vpop.f32.mrf.mxu2 }
 0x4e0   : > { %v1412_v47 = vpop.xlane.xlu2 %1411 }
 0x4e1   : > { %v1413_v48 = vsub.f32 %v1406_v20, %v1412_v47  ;;  %v5778_v20 = vld [vmem:[%s7776_s23 + $0x20] sm:$0xff] }
 0x4e2   : > { %1814 = vmatpush.bf16.msra.mxu1 %v5778_v20  ;;  %v5821_v20 = vld [vmem:[%s7711_s13 + $0x18] sm:$0xff] }
 0x4e3   : > { %v1414_v49 = vmul.f32 1.442695, %v1413_v48 }
 0x4e5   : > { %6068 = vpow2.f32 %v1414_v49 }
 0x4eb   : > { %v6069_v50 = vpop.eup %6068 }
 0x4ec   : > { %v1416_v51 = vsel %vm1118_vm11, %v6069_v50, 0.0 }
 0x4ed   : > { %1417 = vadd.xlane.f32.xlu0 %v1416_v51 }
 0x560   : > { %v1418_v56 = vpop.xlane.xlu0 %1417 }
 0x561   : > { %6070 = vrcp.f32 %v1418_v56  ;;  %v5802_v56 = vld [vmem:[%s7773_s3 + $0xf0] sm:$0xff] }
 0x567   : > { %v6071_v57 = vpop.eup %6070 }
 0x568   : > { %v1420_v58 = vmul.f32 %v6071_v57, %v6069_v50  ;;  %v5803_v50 = vld [vmem:[%s7773_s3 + $0xf8] sm:$0xff]  ;;  %v5801_v57 = vld [vmem:[%s7773_s3 + $0xe8] sm:$0xff] }
 0x56a   : > { %v1421_v60 = vpack.c.bf16 %v1420_v58, %v1420_v58  ;;  %v5800_v58 = vld [vmem:[%s7773_s3 + $0xe0] sm:$0xff] }
 0x56c   : > { %4542 = vmatmul.msk.bf16.vlgmr.msra.gmra.mxu2 %vm1118_vm11, %v1421_v60  ;;  %v5798_v60 = vld [vmem:[%s7773_s3 + $0xd0] sm:$0xff] }
 0x56d   : > { %1886 = vmatpush.bf16.msra.mxu2 %v5787_v59  ;;  %v5799_v59 = vld [vmem:[%s7773_s3 + $0xd8] sm:$0xff] }
 0x571   : > { %1887 = vmatpush.bf16.msra.mxu2 %v5786_v62  ;;  %v5796_v62 = vld [vmem:[%s7773_s3 + $0xc0] sm:$0xff]  ;;  %s7784_s3 = smov %s7783_s2 }
 0x575   : > { %1888 = vmatpush.bf16.msra.mxu2 %v5785_v2 }
 0x579   : > { %1889 = vmatpush.bf16.msra.mxu2 %v5784_v4 }
 0x57c   : > { %1652 = vmatmul.bf16.vlgmr.msrb.gmra.mxu2 %v6538_v31 }
 0x57d   : > { %1890 = vmatpush.bf16.msra.mxu2 %v5783_v6 }
 0x581   : > { %1891 = vmatpush.bf16.msra.mxu2 %v5782_v10 }
 0x585   : > { %1892 = vmatpush.bf16.msra.mxu2 %v5781_v13 }
 0x589   : > { %1893 = vmatpush.bf16.msra.mxu2 %v5780_v15 }
 0x58c   : > { %1894 = vmatmul.bf16.vlgmr.msra.gmra.mxu2 %v6543_v35  ;;  %v5793_v35 = vld [vmem:[%s7772_s30 + $0xe8] sm:$0xff] }
 0x5ef   : > { %v1434_v19 = vpop.f32.mrf.mxu2 }
 0x5f0   : > { %v1438_v22 = vpack.c.bf16 %v1434_v19, %v1434_v19 }
 0x5f2   : > { %4555 = vmatmul.msk.bf16.vlgmr.msra.gmra.mxu3 %vm1098_vm10, %v1438_v22 }
 0x5f3   : > { %1965 = vmatpush.bf16.msra.mxu3 %v5795_v21 }
 0x5f7   : > { %v1436_v24 = vpop.f32.mrf.mxu2  ;;  %1966 = vmatpush.bf16.msra.mxu3 %v5794_v23 }
 0x5fb   : > { %1967 = vmatpush.bf16.msra.mxu3 %v5793_v35 }
 0x5ff   : > { %v1653_v26 = vpop.f32.mrf.mxu2  ;;  %1968 = vmatpush.bf16.msra.mxu3 %v5792_v25 }
 0x602   : > { %1732 = vmatmul.bf16.vlgmr.msrb.gmra.mxu3 %v6538_v31 }
 0x603   : > { %1969 = vmatpush.bf16.msra.mxu3 %v5791_v27 }
 0x607   : > { %v1655_v12 = vpop.f32.mrf.mxu2  ;;  %1970 = vmatpush.bf16.msra.mxu3 %v5790_v28 }
 0x608   : > { %v1658_v30 = vpack.c.bf16 %v1655_v12, %v1653_v26 }
 0x60a   : > { %v1743_v32 = vsel %vm1098_vm10, %v1658_v30, 0 }
 0x60b   : > { %1752 = vmatpush.bf16.xpose.msrb.mxu0 %v1743_v32  ;;  %1971 = vmatpush.bf16.msra.mxu3 %v5789_v29  ;;  %v5804_v29 = vld [vmem:[%s7776_s23 + $0x30] sm:$0xff] }
 0x60f   : > { %v1895_v34 = vpop.f32.mrf.mxu2  ;;  %1972 = vmatpush.bf16.msra.mxu3 %v5788_v33 }
 0x610   : > { %v1899_v10 = vpack.c.bf16 %v1895_v34, %v1895_v34  ;;  %v6049_v34 = vld [vmem:[%s7777_s7] ss:$0 sm:$0xff] }
 0x612   : > { %4709 = vmatmul.msk.bf16.vlgmr.msrb.gmra.mxu0 %vm1098_vm10, %v1578_v17  ;;  %1973 = vmatmul.bf16.vlgmr.msra.gmra.mxu3 %v6538_v31 }
 0x617   : > { %v1897_v36 = vpop.f32.mrf.mxu2 }
 0x675   : > { %v1468_v37 = vpop.f32.mrf.mxu3 }
 0x676   : > { %v1497_v14 = vadd.f32 %v6638_v39, %v1468_v37  ;;  %v5805_v39 = vld [vmem:[%s7776_s23 + $0x38] sm:$0xff]  ;;  %s757_s23 = sand.u32 1, %s6178_s26  }
 0x677   : > { %2134 = vmatpush.bf16.msrb.mxu2 %v5805_v39  ;;  %s4294_s28 = sshll.u32 %s757_s23, 3 }
 0x67b   : > { %2135 = vmatpush.bf16.msrb.mxu2 %v5804_v29 }
 0x67d   : > { %v1470_v40 = vpop.f32.mrf.mxu3 }
 0x685   : > { %v1733_v41 = vpop.f32.mrf.mxu3 }
 0x68d   : > { %v1735_v42 = vpop.f32.mrf.mxu3 }
 0x68e   : > { %v1738_v8 = vpack.c.bf16 %v1735_v42, %v1733_v41  ;;  %v5817_v41 = vld [vmem:[%s7710_s12 + $0x18] sm:$0xff]  ;;  %v5820_v42 = vld [vmem:[%s7711_s13 + $0x10] sm:$0xff] }
 0x68f   : > { %v1754_v43 = vpop.f32.mrf.mxu0 }
 0x690   : > { %1780 = vmatpush.bf16.msra.mxu0 %v1738_v8  ;;  %v1758_v44 = vsel %vm1118_vm11, %v1754_v43, -inf  ;;  %v5819_v8 = vld [vmem:[%s7711_s13 + $0x8] sm:$0xff] }
 0x691   : > { %1759 = vmax.xlane.f32.xlu1 %v1758_v44  ;;  %v5818_v44 = vld [vmem:[%s7711_s13] sm:$0xff] }
 0x694   : > { %2045 = vmatpush.bf16.msrb.mxu0 %v5803_v50  ;;  %v5831_v50 = vld [vmem:[%s7709_s11 + $0x78] sm:$0xff] }
 0x695   : > { %v1974_v45 = vpop.f32.mrf.mxu3 }
 0x697   : > { %v1756_v46 = vpop.f32.mrf.mxu0 }
 0x698   : > { %2046 = vmatpush.bf16.msrb.mxu0 %v5802_v56  ;;  %v5814_v46 = vld [vmem:[%s7710_s12] sm:$0xff] }
 0x69c   : > { %2047 = vmatpush.bf16.msrb.mxu0 %v5801_v57 }
 0x69d   : > { %v1976_v47 = vpop.f32.mrf.mxu3 }
 0x69e   : > { %v1979_v48 = vpack.c.bf16 %v1976_v47, %v1974_v45  ;;  %v5839_v45 = vld [vmem:[%s7711_s13 + $0x38] sm:$0xff]  ;;  %v6840_v47 = vld [vmem:[%s769_s0] sm:$0xff] }
 0x6a0   : > { %v2064_v49 = vsel %vm1098_vm10, %v1979_v48, 0  ;;  %2048 = vmatpush.bf16.msrb.mxu0 %v5800_v58  ;;  %v5838_v48 = vld [vmem:[%s7711_s13 + $0x30] sm:$0xff] }
 0x6a1   : > { %2073 = vmatpush.bf16.xpose.msrb.mxu1 %v2064_v49  ;;  %v5813_v49 = vld [vmem:[%s7709_s11 + $0x38] sm:$0xff] }
 0x6a2   : > { %2243 = vmatpush.bf16.msrb.mxu3 %v5813_v49 }
 0x6a4   : > { %2049 = vmatpush.bf16.msrb.mxu0 %v5799_v59 }
 0x6a8   : > { %2050 = vmatpush.bf16.msrb.mxu0 %v5798_v60 }
 0x6ac   : > { %2051 = vmatpush.bf16.msrb.mxu0 %v5797_v61  ;;  %v5812_v61 = vld [vmem:[%s7709_s11 + $0x30] sm:$0xff] }
 0x6ad   : > { %2244 = vmatpush.bf16.msrb.mxu3 %v5812_v61 }
 0x6b0   : > { %2052 = vmatpush.bf16.msrb.mxu0 %v5796_v62  ;;  %v5830_v62 = vld [vmem:[%s7709_s11 + $0x70] sm:$0xff] }
 0x704   : > { %v1760_v51 = vpop.xlane.xlu1 %1759 }
 0x705   : > { %v1761_v52 = vsub.f32 %v1754_v43, %v1760_v51  ;;  %v5815_v43 = vld [vmem:[%s7710_s12 + $0x8] sm:$0xff] }
 0x706   : > { %v5837_v51 = vld [vmem:[%s7711_s13 + $0x28] sm:$0xff] }
 0x707   : > { %v1762_v53 = vmul.f32 1.442695, %v1761_v52  ;;  %v778_v52 = vld [vmem:[%s769_s0 + $0x8] sm:$0xf]  ;;  %s7781_s0 = sld [smem:[#allocation7_spill]] }
 0x709   : > { %6072 = vpow2.f32 %v1762_v53  ;;  %v5836_v53 = vld [vmem:[%s7711_s13 + $0x20] sm:$0xff] }
 0x70d   : > { %s4196_s27 = sadd.s32 %s7781_s0, %s5696_s4  ;;  %s4186_s0 = scalar_lea.sflag [#allocation3], %s757_s23 }
 0x70e   : > { %s5697_s8 = sshll.u32 %s4196_s27, 3 }
 0x70f   : > { %v6073_v54 = vpop.eup %6072  ;;  %s4198_s29 = scalar_lea.hbm %s7783_s2, %s5697_s8 }
 0x710   : > { %v1764_v55 = vsel %vm1118_vm11, %v6073_v54, 0.0  ;;  %s4202_s1 = sshll.u32 %s4198_s29, 4  ;;  %s4203_s1 = int_to_ptr.hbm [resolvable:$true] %s4202_s1 }
 0x711   : > { %1765 = vadd.xlane.f32.xlu2 %v1764_v55  ;;  %v2270_v55 = vunpack.c.l.b16 %v778_v52  ;;  %s6122_s4 = sshra.s32 %s4203_s1, 4  ;;  %s6123_s4 = int_to_ptr.hbm [resolvable:$true] %s6122_s4 }
 0x712   : > { %s6124_s7 = scalar_lea.hbm %s6123_s4, 8  ;;  %p6129_p2 = scmp.lt.s32.totalorder %s6123_s4, %s7784_s3 }
 0x713   : > { %v6868_v59 = vpack.c.b16 %v2270_v55, %v2270_v55  ;;  %p6125_p13 = scmp.ne.s32.totalorder %s6123_s4, %s6124_s7 }
 0x715   : > { %p6126_p0 = pnand %p6125_p13, %p6381_p3 }
 0x717   : > { %p6127_p1 = pneg %p6126_p0 }
 0x784   : > { %v1766_v63 = vpop.xlane.xlu2 %1765 }
 0x785   : > { %6074 = vrcp.f32 %v1766_v63  ;;  %v5848_v63 = vld [vmem:[%s7709_s11 + $0xb0] sm:$0xff] }
 0x78b   : > { %v6075_v0 = vpop.eup %6074 }
 0x78c   : > { %v1768_v2 = vmul.f32 %v6075_v0, %v6073_v54  ;;  %v5849_v54 = vld [vmem:[%s7709_s11 + $0xb8] sm:$0xff]  ;;  %v5811_v0 = vld [vmem:[%s7709_s11 + $0x28] sm:$0xff] }
 0x78d   : > { %2245 = vmatpush.bf16.msrb.mxu3 %v5811_v0 }
 0x78e   : > { %v1769_v3 = vpack.c.bf16 %v1768_v2, %v1768_v2  ;;  %v5829_v2 = vld [vmem:[%s7709_s11 + $0x68] sm:$0xff] }
 0x790   : > { %4710 = vmatmul.msk.bf16.vlgmr.msra.gmra.mxu0 %vm1118_vm11, %v1769_v3  ;;  %v5847_v3 = vld [vmem:[%s7709_s11 + $0xa8] sm:$0xff] }
 0x791   : > { %2308 = vmatpush.bf16.msra.mxu0 %v5817_v41 }
 0x7a0   : > { %2053 = vmatmul.bf16.vlgmr.msrb.gmra.mxu0 %v6538_v31 }
 0x80d   : > { %v1782_v4 = vpop.f32.mrf.mxu0 }
 0x80e   : > { %v1786_v5 = vpack.c.bf16 %v1782_v4, %v1782_v4  ;;  %v5810_v4 = vld [vmem:[%s7709_s11 + $0x20] sm:$0xff] }
 0x80f   : > { %2246 = vmatpush.bf16.msrb.mxu3 %v5810_v4  ;;  %v5835_v4 = vld [vmem:[%s7710_s12 + $0x38] sm:$0xff] }
 0x810   : > { %4723 = vmatmul.msk.bf16.vlgmr.msra.gmra.mxu1 %vm1098_vm10, %v1786_v5  ;;  %v5828_v5 = vld [vmem:[%s7709_s11 + $0x60] sm:$0xff] }
 0x815   : > { %v1784_v6 = vpop.f32.mrf.mxu0 }
 0x816   : > { %v5846_v6 = vld [vmem:[%s7709_s11 + $0xa0] sm:$0xff] }
 0x81d   : > { %v2054_v7 = vpop.f32.mrf.mxu0 }
 0x820   : > { %4868 = vmatmul.msk.bf16.vlgmr.msrb.gmra.mxu1 %vm1098_vm10, %v1899_v10  ;;  %v5827_v10 = vld [vmem:[%s7709_s11 + $0x58] sm:$0xff] }
 0x825   : > { %v2056_v11 = vpop.f32.mrf.mxu0 }
 0x826   : > { %v2059_v13 = vpack.c.bf16 %v2056_v11, %v2054_v7  ;;  %v5809_v7 = vld [vmem:[%s7709_s11 + $0x18] sm:$0xff] }
 0x827   : > { %v5845_v11 = vld [vmem:[%s7709_s11 + $0x98] sm:$0xff]  ;;  %2247 = vmatpush.bf16.msrb.mxu3 %v5809_v7  ;;  %v5832_v7 = vld [vmem:[%s7710_s12 + $0x20] sm:$0xff] }
 0x828   : > { %2101 = vmatpush.bf16.msra.mxu1 %v2059_v13  ;;  %v5808_v13 = vld [vmem:[%s7709_s11 + $0x10] sm:$0xff] }
 0x82b   : > { %2248 = vmatpush.bf16.msrb.mxu3 %v5808_v13 }
 0x82c   : > { %2360 = vmatpush.bf16.msrb.mxu1 %v5821_v20 }
 0x830   : > { %2361 = vmatpush.bf16.msrb.mxu1 %v5820_v42 }
 0x834   : > { %2362 = vmatpush.bf16.msrb.mxu1 %v5819_v8 }
 0x838   : > { %2363 = vmatpush.bf16.msrb.mxu1 %v5818_v44 }
 0x88d   : > { %v1816_v15 = vpop.f32.mrf.mxu1 }
 0x88e   : > { %v1820_v16 = vadd.f32 %v1816_v15, %v1497_v14  ;;  %v5826_v14 = vld [vmem:[%s7709_s11 + $0x50] sm:$0xff] }
 0x88f   : > { %v5844_v15 = vld [vmem:[%s7709_s11 + $0x90] sm:$0xff] }
 0x895   : > { %v1818_v18 = vpop.f32.mrf.mxu1 }
 0x896   : > { %v5825_v18 = vld [vmem:[%s7709_s11 + $0x48] sm:$0xff] }
 0x89d   : > { %v2075_v19 = vpop.f32.mrf.mxu1 }
 0x89e   : > { %v2079_v31 = vsel %vm1118_vm11, %v2075_v19, -inf }
 0x89f   : > { %2080 = vmax.xlane.f32.xlu0 %v2079_v31  ;;  %v5806_v31 = vld [vmem:[%s7709_s11] sm:$0xff] }
 0x8a5   : > { %v2077_v21 = vpop.f32.mrf.mxu1 }
 0x8a6   : > { %v5824_v21 = vld [vmem:[%s7709_s11 + $0x40] sm:$0xff] }
 0x912   : > { %v2081_v22 = vpop.xlane.xlu0 %2080 }
 0x913   : > { %v2082_v23 = vsub.f32 %v2075_v19, %v2081_v22  ;;  %v5843_v19 = vld [vmem:[%s7709_s11 + $0x88] sm:$0xff]  ;;  %v5842_v22 = vld [vmem:[%s7709_s11 + $0x80] sm:$0xff] }
 0x915   : > { %v2083_v24 = vmul.f32 1.442695, %v2082_v23 }
 0x917   : > { %6076 = vpow2.f32 %v2083_v24 }
 0x91d   : > { %v6077_v35 = vpop.eup %6076 }
 0x91e   : > { %v2085_v25 = vsel %vm1118_vm11, %v6077_v35, 0.0 }
 0x91f   : > { %2086 = vadd.xlane.f32.xlu1 %v2085_v25 }
 0x992   : > { %v2087_v26 = vpop.xlane.xlu1 %2086 }
 0x993   : > { %6078 = vrcp.f32 %v2087_v26 }
 0x999   : > { %v6079_v27 = vpop.eup %6078 }
 0x99a   : > { %v2089_v28 = vmul.f32 %v6079_v27, %v6077_v35 }
 0x99c   : > { %v2090_v12 = vpack.c.bf16 %v2089_v28, %v2089_v28 }
 0x99e   : > { %4869 = vmatmul.msk.bf16.vlgmr.msra.gmra.mxu1 %vm1118_vm11, %v2090_v12 }
 0x99f   : > { %2605 = vmatpush.bf16.msra.mxu1 %v5839_v45 }
 0x9a3   : > { %2606 = vmatpush.bf16.msra.mxu1 %v5838_v48 }
 0x9a7   : > { %2607 = vmatpush.bf16.msra.mxu1 %v5837_v51 }
 0x9ab   : > { %2608 = vmatpush.bf16.msra.mxu1 %v5836_v53 }
 0x9ae   : > { %4953 = vmatmul.msk.bf16.vlgmr.msrb.gmra.mxu1 %vm2297_vm12, %v6840_v47 }
 0x9af   : > { %2801 = vmatpush.bf16.msrb.mxu1 %v5849_v54 }
 0x9b3   : > { %2802 = vmatpush.bf16.msrb.mxu1 %v5848_v63 }
 0x9b7   : > { %2803 = vmatpush.bf16.msrb.mxu1 %v5847_v3 }
 0x9bb   : > { %2804 = vmatpush.bf16.msrb.mxu1 %v5846_v6  ;;  %v5833_v6 = vld [vmem:[%s7710_s12 + $0x28] sm:$0xff] }
 0x9be   : > { %4954 = vmatmul.msk.bf16.gmra.mxu1 %vm2297_vm12, %v6868_v59 }
 0x9bf   : > { %2805 = vmatpush.bf16.msrb.mxu1 %v5845_v11 }
 0x9c3   : > { %2806 = vmatpush.bf16.msrb.mxu1 %v5844_v15 }
 0x9c7   : > { %2807 = vmatpush.bf16.msrb.mxu1 %v5843_v19 }
 0x9cb   : > { %2808 = vmatpush.bf16.msrb.mxu1 %v5842_v22 }
 0x9ce   : > { %5055 = vmatmul.msk.bf16.vlgmr.msra.gmra.mxu1 %vm2297_vm12, %v6840_v47 }
 0x9de   : > { %5056 = vmatmul.msk.bf16.gmra.mxu1 %vm2297_vm12, %v6868_v59 }
 0xa1b   : > { %v2103_v30 = vpop.f32.mrf.mxu1 }
 0xa1c   : > { %v2107_v32 = vpack.c.bf16 %v2103_v30, %v2103_v30 }
 0xa1e   : > { %4882 = vmatmul.msk.bf16.vlgmr.msrb.gmra.mxu2 %vm1098_vm10, %v2107_v32 }
 0xa23   : > { %v2105_v33 = vpop.f32.mrf.mxu1 }
 0xa2b   : > { %v2365_v24 = vpop.f32.mrf.mxu1 }
 0xa33   : > { %v2367_v26 = vpop.f32.mrf.mxu1 }
 0xa34   : > { %v2374_v51 = vpack.c.bf16 %v2367_v26, %v2365_v24  ;;  %v5823_v26 = vld [vmem:[%s7712_s14 + $0x8] sm:$0xff] }
 0xa3b   : > { %v2370_v32 = vpop.f32.mrf.mxu1 }
 0xa3c   : > { %v2375_v8 = vpack.c.bf16 %v2370_v32, %v2370_v32  ;;  %v5822_v32 = vld [vmem:[%s7712_s14] sm:$0xff] }
 0xa3e   : > { %v2416_v49 = vsel %vm2414_vm0, %v2375_v8, 0 }
 0xaa1   : > { %v2137_v17 = vpop.f32.mrf.mxu2 }
 0xaa2   : > { %v2141_v36 = vadd.f32 %v2137_v17, %v1820_v16  ;;  %v5807_v16 = vld [vmem:[%s7709_s11 + $0x8] sm:$0xff] }
 0xaa3   : > { %2249 = vmatpush.bf16.msrb.mxu3 %v5807_v16 }
 0xaa4   : > { %v2146_v37 = vadd.f32 %v6049_v34, %v2141_v36 }
 0xaa6   : > { %v6806_v38 = vadd.f32 %v2146_v37, %v6410_v1  ;;  %v5816_v1 = vld [vmem:[%s7710_s12 + $0x10] sm:$0xff] }
 0xaa7   : > { %2309 = vmatpush.bf16.msra.mxu0 %v5816_v1  ;;  %2250 = vmatpush.bf16.msrb.mxu3 %v5806_v31  ;;  %v6051_v1 = vld [vmem:[%s7780_s10] ss:$0 sm:$0xff] }
 0xaa8   : > { %2150 = vadd.xlane.f32.xlu2 %v6806_v38 }
 0xaa9   : > { %v2139_v40 = vpop.f32.mrf.mxu2 }
 0xaaa   : > { %v6050_v40 = vld [vmem:[%s7779_s9] ss:$0 sm:$0xff]  ;;  %s759_s9 = scalar_lea.vmem [#allocation2], %s4294_s28  ;;  %s6128_s28 = scalar_lea.hbm %s7784_s3, 32 }
 0xaab   : > { %2310 = vmatpush.bf16.msra.mxu0 %v5815_v43  ;;  %v2372_v43 = vpop.f32.mrf.mxu1  ;;  %2552 = vmatpush.bf16.msra.mxu3 %v5835_v4  ;;  %s4200_s10 = sshll.u32 %s759_s9, 4  ;;  %p6130_p4 = scmp.lt.s32.totalorder %s6128_s28, %s6124_s7  ;;  %s4201_s10 = int_to_ptr.vmem [resolvable:$true] %s4200_s10 }
 0xaad   : > { %p6131_p5 = por %p6130_p4, %p6129_p2 }
 0xaaf   : > { %2311 = vmatpush.bf16.msra.mxu0 %v5814_v46  ;;  %p6132_p6 = pnand %p6131_p5, %p6127_p1 }
 0xab2   : > { %4935 = vmatmul.msk.bf16.vlgmr.msra.gmra.mxu0 %vm2297_vm12, %v6840_v47 }
 0xab3   : > { %2501 = vmatpush.bf16.msrb.mxu0 %v5831_v50  ;;  %v2610_v52 = vpop.f32.mrf.mxu1 }
 0xab7   : > { %2502 = vmatpush.bf16.msrb.mxu0 %v5830_v62 }
 0xabb   : > { %2503 = vmatpush.bf16.msrb.mxu0 %v5829_v2  ;;  %v2612_v53 = vpop.f32.mrf.mxu1 }
 0xabf   : > { %2504 = vmatpush.bf16.msrb.mxu0 %v5828_v5  ;;  %v5834_v5 = vld [vmem:[%s7710_s12 + $0x30] sm:$0xff] }
 0xac0   : > { %2553 = vmatpush.bf16.msra.mxu3 %v5834_v5 }
 0xac2   : > { %4936 = vmatmul.msk.bf16.gmra.mxu0 %vm2297_vm12, %v6868_v59 }
 0xac3   : > { %2505 = vmatpush.bf16.msrb.mxu0 %v5827_v10  ;;  %v2615_v54 = vpop.f32.mrf.mxu1 }
 0xac4   : > { %v2620_v55 = vpack.c.bf16 %v2615_v54, %v2615_v54  ;;  %2554 = vmatpush.bf16.msra.mxu3 %v5833_v6  ;;  %v5867_v54 = vld [vmem:[%s7709_s11 + $0xf8] sm:$0xff] }
 0xac7   : > { %2506 = vmatpush.bf16.msrb.mxu0 %v5826_v14 }
 0xac8   : > { %2555 = vmatpush.bf16.msra.mxu3 %v5832_v7 }
 0xacb   : > { %2507 = vmatpush.bf16.msrb.mxu0 %v5825_v18 }
 0xacf   : > { %2508 = vmatpush.bf16.msrb.mxu0 %v5824_v21 }
 0xb1b   : > { %v2151_v56 = vpop.xlane.xlu2 %2150 }
 0xb1c   : > { %v2152_v57 = vmul.f32 %v2151_v56, %v6413_v9  ;;  %v2659_v56 = vsel %vm2414_vm0, %v2620_v55, 0 }
 0xb1d   : > { %2667 = vmatpush.bf16.msra.mxu0 %v2659_v56  ;;  %v5866_v56 = vld [vmem:[%s7709_s11 + $0xf0] sm:$0xff] }
 0xb1e   : > { %v6866_v58 = vsub.f32 %v6806_v38, %v2152_v57  ;;  %v2619_v57 = vpack.c.bf16 %v2612_v53, %v2610_v52 }
 0xb20   : > { %v2154_v60 = vmul.f32 %v6866_v58, %v6866_v58 }
 0xb21   : > { %2668 = vmatpush.bf16.msra.mxu0 %v2619_v57  ;;  %v5865_v57 = vld [vmem:[%s7709_s11 + $0xe8] sm:$0xff] }
 0xb22   : > { %2155 = vadd.xlane.f32.xlu0 %v2154_v60 }
 0xb2f   : > { %v2313_v25 = vpop.f32.mrf.mxu0 }
 0xb37   : > { %v2315_v27 = vpop.f32.mrf.mxu0 }
 0xb38   : > { %v2322_v41 = vpack.c.bf16 %v2315_v27, %v2313_v25 }
 0xb3a   : > { %v2380_v46 = vsel %vm1098_vm10, %v2322_v41, 0 }
 0xb3f   : > { %v2318_v33 = vpop.f32.mrf.mxu0 }
 0xb40   : > { %v2323_v17 = vpack.c.bf16 %v2318_v33, %v2318_v33 }
 0xb42   : > { %v2383_v37 = vsel %vm1098_vm10, %v2323_v17, 0 }
 0xb43   : > { %2391 = vmatpush.bf16.xpose.msra.mxu2 %v2383_v37 }
 0xb47   : > { %v2320_v45 = vpop.f32.mrf.mxu0 }
 0xb48   : > { %v5853_v45 = vld [vmem:[%s7710_s12 + $0x58] sm:$0xff] }
 0xb4b   : > { %2392 = vmatpush.bf16.xpose.msra.mxu2 %v2380_v46  ;;  %v5852_v46 = vld [vmem:[%s7710_s12 + $0x50] sm:$0xff] }
 0xb53   : > { %2424 = vmatpush.bf16.msrb.mxu2 %v2416_v49  ;;  %v5850_v49 = vld [vmem:[%s7710_s12 + $0x40] sm:$0xff] }
 0xb57   : > { %2425 = vmatpush.bf16.msrb.mxu2 %v2374_v51 }
 0xb95   : > { %v2156_v23 = vpop.xlane.xlu0 %2155 }
 0xb96   : > { %v2157_v35 = vmul.f32 %v2156_v23, %v6413_v9 }
 0xb98   : > { %v2158_v39 = vadd.f32 1e-05, %v2157_v35 }
 0xb9a   : > { %6080 = vrsqrt.f32 %v2158_v39  ;;  %vm2165_vm14 = vweird.f32 %v2158_v39 }
 0xba0   : > { %v6081_v28 = vpop.eup %6080 }
 0xba1   : > { %v2160_v12 = vmul.f32 %v6081_v28, %v2158_v39  ;;  %vm2166_vm13 = vweird.f32 %v6081_v28 }
 0xba2   : > { %vm2167_vm15 = vmor %vm2165_vm14, %vm2166_vm13 }
 0xba3   : > { %v2161_v29 = vmul.f32 %v6081_v28, %v2160_v12 }
 0xba5   : > { %v2162_v30 = vmul.f32 0.5, %v2161_v29 }
 0xba7   : > { %v2163_v34 = vsub.f32 1.5, %v2162_v30 }
 0xba9   : > { %v2164_v36 = vmul.f32 %v6081_v28, %v2163_v34 }
 0xbab   : > { %v2168_v20 = vsel %vm2167_vm15, %v6081_v28, %v2164_v36 }
 0xbac   : > { %v2169_v42 = vmul.f32 %v2168_v20, %v6866_v58  ;;  %v2617_v58 = vpop.f32.mrf.mxu1 }
 0xbad   : > { %v5864_v58 = vld [vmem:[%s7709_s11 + $0xe0] sm:$0xff] }
 0xbae   : > { %v2173_v44 = vmul.f32 %v6050_v40, %v2169_v42 }
 0xbb0   : > { %v2177_v48 = vadd.f32 %v6051_v1, %v2173_v44 }
 0xbb2   : > { %v6954_v50 = vpack.c.bf16 %v2177_v48, %v2177_v48  ;;  %v5851_v48 = vld [vmem:[%s7710_s12 + $0x48] sm:$0xff] }
 0xbb4   : > { %2251 = vmatmul.bf16.vlgmr.msrb.gmra.mxu3 %v6954_v50  ;;  %2509 = vmatmul.bf16.vlgmr.msrb.gmra.mxu0 %v6954_v50 }
 0xbb5   : > { %2809 = vmatmul.bf16.vlgmr.msrb.gmra.mxu1 %v6954_v50  ;;  %2729 = vmatpush.bf16.msrb.mxu3 %v5823_v26 }
 0xbb6   : > { %2852 = vmatpush.bf16.msrb.mxu0 %v5853_v45 }
 0xbb9   : > { %2730 = vmatpush.bf16.msrb.mxu3 %v5822_v32 }
 0xbba   : > { %2853 = vmatpush.bf16.msrb.mxu0 %v5852_v46 }
 0xbbe   : > { %2854 = vmatpush.bf16.msrb.mxu0 %v5851_v48  ;;  %v5859_v48 = vld [vmem:[%s7712_s14 + $0x28] sm:$0xff] }
 0xbc2   : > { %2855 = vmatpush.bf16.msrb.mxu0 %v5850_v49  ;;  %v5858_v49 = vld [vmem:[%s7712_s14 + $0x20] sm:$0xff] }
 0xbc4   : > { %5029 = vmatmul.msk.bf16.vlgmr.msra.gmra.mxu3 %vm2297_vm12, %v6840_v47 }
 0xbd4   : > { %5030 = vmatmul.msk.bf16.gmra.mxu3 %vm2297_vm12, %v6868_v59 }
 0xc31   : > { %v2510_v60 = vpop.f32.mrf.mxu0 }
 0xc32   : > { %v6960_v61 = vpop.f32.mrf.mxu1  ;;  %v2514_v30 = vpack.c.bf16 %v2510_v60, %v2510_v60  ;;  %v5863_v60 = vld [vmem:[%s7709_s11 + $0xd8] sm:$0xff] }
 0xc37   : > { %v2252_v62 = vpop.f32.mrf.mxu3 }
 0xc38   : > { %v2256_v63 = vpack.c.bf16 %v2252_v62, %v2252_v62  ;;  %v5841_v62 = vld [vmem:[%s7712_s14 + $0x18] sm:$0xff] }
 0xc39   : > { %v2512_v0 = vpop.f32.mrf.mxu0 }
 0xc3a   : > { %v2812_v2 = vpop.f32.mrf.mxu1  ;;  %4955 = vmatmul.msk.bf16.vlgmr.msra.gmra.mxu2 %vm1098_vm10, %v2256_v63  ;;  %v5862_v63 = vld [vmem:[%s7709_s11 + $0xd0] sm:$0xff]  ;;  %v5861_v0 = vld [vmem:[%s7709_s11 + $0xc8] sm:$0xff] }
 0xc3b   : > { %v5860_v2 = vld [vmem:[%s7709_s11 + $0xc0] sm:$0xff] }
 0xc3f   : > { %v2254_v3 = vpop.f32.mrf.mxu3 }
 0xc40   : > { %v5840_v3 = vld [vmem:[%s7712_s14 + $0x10] sm:$0xff] }
 0xc47   : > { %v2557_v18 = vpop.f32.mrf.mxu3 }
 0xc4f   : > { %v2559_v21 = vpop.f32.mrf.mxu3 }
 0xc50   : > { %v2566_v22 = vpack.c.bf16 %v2559_v21, %v2557_v18 }
 0xc52   : > { %v2625_v39 = vsel %vm1098_vm10, %v2566_v22, 0 }
 0xc57   : > { %v2562_v23 = vpop.f32.mrf.mxu3 }
 0xc58   : > { %v2567_v24 = vpack.c.bf16 %v2562_v23, %v2562_v23  ;;  %v5857_v23 = vld [vmem:[%s7711_s13 + $0x58] sm:$0xff] }
 0xc5a   : > { %v2628_v35 = vsel %vm1098_vm10, %v2567_v24, 0  ;;  %v5856_v24 = vld [vmem:[%s7711_s13 + $0x50] sm:$0xff] }
 0xc5b   : > { %2636 = vmatpush.bf16.xpose.msra.mxu2 %v2628_v35  ;;  %v5854_v35 = vld [vmem:[%s7711_s13 + $0x40] sm:$0xff] }
 0xc5f   : > { %v2564_v25 = vpop.f32.mrf.mxu3 }
 0xc63   : > { %2637 = vmatpush.bf16.xpose.msra.mxu2 %v2625_v39 }
 0xcbd   : > { %v2394_v10 = vpop.f32.mrf.mxu2 }
 0xcbe   : > { %v2399_v11 = vsel %vm2398_vm1, %v2394_v10, -inf }
 0xcbf   : > { %2400 = vmax.xlane.f32.xlu1 %v2399_v11 }
 0xcc5   : > { %v2396_v13 = vpop.f32.mrf.mxu2 }
 0xd32   : > { %v2401_v14 = vpop.xlane.xlu1 %2400 }
 0xd33   : > { %v2402_v15 = vsub.f32 %v2394_v10, %v2401_v14 }
 0xd35   : > { %v2403_v16 = vmul.f32 1.442695, %v2402_v15 }
 0xd37   : > { %6082 = vpow2.f32 %v2403_v16 }
 0xd3d   : > { %v6083_v19 = vpop.eup %6082 }
 0xd3e   : > { %v2405_v31 = vsel %vm2398_vm1, %v6083_v19, 0.0 }
 0xd3f   : > { %2406 = vadd.xlane.f32.xlu2 %v2405_v31 }
 0xdb2   : > { %v2407_v27 = vpop.xlane.xlu2 %2406 }
 0xdb3   : > { %6084 = vrcp.f32 %v2407_v27 }
 0xdb9   : > { %v6085_v28 = vpop.eup %6084 }
 0xdba   : > { %v2409_v12 = vmul.f32 %v6085_v28, %v6083_v19  ;;  %v2814_v19 = vpack.c.bf16 %v6960_v61, %v6960_v61  ;;  %v5855_v61 = vld [vmem:[%s7711_s13 + $0x48] sm:$0xff] }
 0xdbc   : > { %v2410_v29 = vpack.c.bf16 %v2409_v12, %v2409_v12 }
 0xdbe   : > { %4956 = vmatmul.msk.bf16.vlgmr.msrb.gmra.mxu2 %vm2398_vm1, %v2410_v29 }
 0xdbf   : > { %2701 = vmatpush.bf16.msrb.mxu2 %v5841_v62 }
 0xdc3   : > { %2702 = vmatpush.bf16.msrb.mxu2 %v5840_v3 }
 0xdce   : > { %5057 = vmatmul.msk.bf16.vlgmr.msra.gmra.mxu2 %vm1098_vm10, %v2514_v30 }
 0xdcf   : > { %2905 = vmatpush.bf16.msra.mxu2 %v5857_v23 }
 0xdd3   : > { %2906 = vmatpush.bf16.msra.mxu2 %v5856_v24 }
 0xdd7   : > { %2907 = vmatpush.bf16.msra.mxu2 %v5855_v61 }
 0xddb   : > { %2908 = vmatpush.bf16.msra.mxu2 %v5854_v35 }
 0xe41   : > { %v2427_v33 = vpop.f32.mrf.mxu2 }
 0xe42   : > { %v2431_v34 = vpack.c.bf16 %v2427_v33, %v2427_v33 }
 0xe44   : > { %5080 = vmatmul.msk.bf16.vlgmr.msrb.gmra.mxu3 %vm1098_vm10, %v2431_v34 }
 0xe49   : > { %v2429_v17 = vpop.f32.mrf.mxu2 }
 0xe51   : > { %v2639_v36 = vpop.f32.mrf.mxu2 }
 0xe52   : > { %v2643_v37 = vsel %vm2398_vm1, %v2639_v36, -inf }
 0xe53   : > { %2644 = vmax.xlane.f32.xlu0 %v2643_v37 }
 0xe59   : > { %v2641_v40 = vpop.f32.mrf.mxu2 }
 0xec6   : > { %v2645_v20 = vpop.xlane.xlu0 %2644 }
 0xec7   : > { %v2646_v41 = vsub.f32 %v2639_v36, %v2645_v20  ;;  %v6993_v42 = vpop.f32.mrf.mxu3  ;;  %v5871_v20 = vld [vmem:[%s7710_s12 + $0x78] sm:$0xff] }
 0xec9   : > { %v2647_v1 = vmul.f32 1.442695, %v2646_v41  ;;  %v5870_v41 = vld [vmem:[%s7710_s12 + $0x70] sm:$0xff] }
 0xecb   : > { %6086 = vpow2.f32 %v2647_v1  ;;  %v5869_v1 = vld [vmem:[%s7710_s12 + $0x68] sm:$0xff] }
 0xecf   : > { %v2734_v8 = vpop.f32.mrf.mxu3 }
 0xed0   : > { %v5868_v8 = vld [vmem:[%s7710_s12 + $0x60] sm:$0xff] }
 0xed1   : > { %v6087_v43 = vpop.eup %6086 }
 0xed2   : > { %v2649_v44 = vsel %vm2398_vm1, %v6087_v43, 0.0 }
 0xed3   : > { %2650 = vadd.xlane.f32.xlu1 %v2649_v44 }
 0xf46   : > { %v2651_v51 = vpop.xlane.xlu1 %2650 }
 0xf47   : > { %6088 = vrcp.f32 %v2651_v51 }
 0xf4d   : > { %v6089_v52 = vpop.eup %6088 }
 0xf4e   : > { %v2653_v53 = vmul.f32 %v6089_v52, %v6087_v43 }
 0xf50   : > { %v2654_v55 = vpack.c.bf16 %v2653_v53, %v2653_v53 }
 0xf52   : > { %5058 = vmatmul.msk.bf16.vlgmr.msra.gmra.mxu0 %vm2398_vm1, %v2654_v55 }
 0xf53   : > { %3074 = vmatpush.bf16.msra.mxu0 %v5867_v54 }
 0xf57   : > { %3075 = vmatpush.bf16.msra.mxu0 %v5866_v56 }
 0xf5b   : > { %3076 = vmatpush.bf16.msra.mxu0 %v5865_v57 }
 0xf5f   : > { %3077 = vmatpush.bf16.msra.mxu0 %v5864_v58 }
 0xf62   : > { %5153 = vmatmul.msk.bf16.vlgmr.msrb.gmra.mxu0 %vm2297_vm12, %v6840_v47 }
 0xf63   : > { %3078 = vmatpush.bf16.msra.mxu0 %v5863_v60 }
 0xf67   : > { %3079 = vmatpush.bf16.msra.mxu0 %v5862_v63 }
 0xf6b   : > { %3080 = vmatpush.bf16.msra.mxu0 %v5861_v0 }
 0xf6f   : > { %3081 = vmatpush.bf16.msra.mxu0 %v5860_v2 }
 0xf72   : > { %5154 = vmatmul.msk.bf16.gmra.mxu0 %vm2297_vm12, %v6868_v59 }
 0xf82   : > { %3082 = vmatmul.bf16.vlgmr.msra.gmra.mxu0 %v6954_v50 }
 0xfcf   : > { %v2670_v4 = vpop.f32.mrf.mxu0 }
 0xfd0   : > { %v2674_v5 = vpack.c.bf16 %v2670_v4, %v2670_v4 }
 0xfd2   : > { %5071 = vmatmul.msk.bf16.vlgmr.msrb.gmra.mxu2 %vm1098_vm10, %v2674_v5 }
 0xfd7   : > { %v2672_v6 = vpop.f32.mrf.mxu0 }
 0xfd8   : > { %v5875_v6 = vld [vmem:[%s7711_s13 + $0x78] sm:$0xff] }
 0xfd9   : > { %3178 = vmatpush.bf16.msrb.mxu2 %v5875_v6 }
 0xfdf   : > { %v2857_v7 = vpop.f32.mrf.mxu0 }
 0xfe2   : > { %5179 = vmatmul.msk.bf16.vlgmr.msra.gmra.mxu2 %vm2297_vm12, %v6840_v47 }
 0xfe7   : > { %v2859_v10 = vpop.f32.mrf.mxu0 }
 0xfe8   : > { %v2866_v15 = vpack.c.bf16 %v2859_v10, %v2857_v7  ;;  %v5874_v7 = vld [vmem:[%s7711_s13 + $0x70] sm:$0xff]  ;;  %v5873_v10 = vld [vmem:[%s7711_s13 + $0x68] sm:$0xff] }
 0xfe9   : > { %3179 = vmatpush.bf16.msrb.mxu2 %v5874_v7  ;;  %v5901_v7 = vld [vmem:[%s7716_s18 + $0xb4] sm:$0xf0] }
 0xfea   : > { %v2925_v50 = vsel %vm1098_vm10, %v2866_v15, 0 }
 0xfed   : > { %3180 = vmatpush.bf16.msrb.mxu2 %v5873_v10  ;;  %v5899_v10 = vld [vmem:[%s7716_s18 + $0xac] sm:$0xf] }
 0xfef   : > { %v2862_v11 = vpop.f32.mrf.mxu0 }
 0xff0   : > { %v2867_v13 = vpack.c.bf16 %v2862_v11, %v2862_v11 }
 0xff2   : > { %v2928_v14 = vsel %vm1098_vm10, %v2867_v13, 0  ;;  %5180 = vmatmul.msk.bf16.gmra.mxu2 %vm2297_vm12, %v6868_v59 }
 0xff3   : > { %2936 = vmatpush.bf16.xpose.msra.mxu3 %v2928_v14 }
 0xff7   : > { %v2864_v16 = vpop.f32.mrf.mxu0 }
 0xffb   : > { %2937 = vmatpush.bf16.xpose.msra.mxu3 %v2925_v50 }
 0xfff   : > { %v7047_v18 = vpop.f32.mrf.mxu0 }
0x1000   : > { %v3087_v0 = vpack.c.bf16 %v7047_v18, %v7047_v18 }
0x1002   : > { %5181 = vmatmul.msk.bf16.vlgmr.msra.gmra.mxu3 %vm1098_vm10, %v2814_v19 }
0x1003   : > { %3001 = vmatpush.bf16.msrb.mxu3 %v5859_v48  ;;  %v5409_v48 = vld [vmem:[%s7716_s18 + $0xc0] sm:$0xf] }
0x1007   : > { %v3085_v31 = vpop.f32.mrf.mxu0  ;;  %3002 = vmatpush.bf16.msrb.mxu3 %v5858_v49 }
0x1055   : > { %v7052_v21 = vpop.f32.mrf.mxu2 }
0x1056   : > { %v2733_v2 = vadd.f32 %v6993_v42, %v7052_v21  ;;  %v5872_v42 = vld [vmem:[%s7711_s13 + $0x60] sm:$0xff] }
0x1057   : > { %3181 = vmatpush.bf16.msrb.mxu2 %v5872_v42  ;;  %v5403_v42 = vld [vmem:[%s7716_s18 + $0xb8] sm:$0xf0] }
0x105a   : > { %5294 = vmatmul.msk.bf16.vlgmr.msrb.gmra.mxu2 %vm2297_vm12, %v6840_v47 }
0x105d   : > { %v2706_v22 = vpop.f32.mrf.mxu2 }
0x1065   : > { %v2910_v29 = vpop.f32.mrf.mxu2 }
0x106a   : > { %5295 = vmatmul.msk.bf16.gmra.mxu2 %vm2297_vm12, %v6868_v59 }
0x106d   : > { %v2912_v33 = vpop.f32.mrf.mxu2 }
0x106e   : > { %v2919_v37 = vpack.c.bf16 %v2912_v33, %v2910_v29 }
0x1075   : > { %v2915_v34 = vpop.f32.mrf.mxu2 }
0x1076   : > { %v2920_v17 = vpack.c.bf16 %v2915_v34, %v2915_v34 }
0x1078   : > { %v2959_v36 = vsel %vm2414_vm0, %v2920_v17, 0 }
0x1079   : > { %2967 = vmatpush.bf16.msra.mxu1 %v2959_v36 }
0x107d   : > { %2968 = vmatpush.bf16.msra.mxu1 %v2919_v37  ;;  %v2917_v40 = vpop.f32.mrf.mxu2  ;;  %v5425_v37 = vld [vmem:[%s7716_s18 + $0xe0] sm:$0xf] }
0x107e   : > { %v5908_v40 = vld [vmem:[%s7716_s18 + $0xec] sm:$0xf0] }
0x1081   : > { %3125 = vmatpush.bf16.msrb.mxu1 %v5871_v20  ;;  %v5906_v20 = vld [vmem:[%s7716_s18 + $0xe4] sm:$0xf] }
0x1085   : > { %v2939_v25 = vpop.f32.mrf.mxu3  ;;  %3126 = vmatpush.bf16.msrb.mxu1 %v5870_v41  ;;  %v5426_v41 = vor.u32 %v5908_v40, %v5425_v37  ;;  %v5371_v37 = vld [vmem:[%s7716_s18 + $0x78] sm:$0xf0] }
0x1086   : > { %v2943_v39 = vsel %vm2398_vm1, %v2939_v25, -inf }
0x1087   : > { %2944 = vmax.xlane.f32.xlu2 %v2943_v39 }
0x1089   : > { %3127 = vmatpush.bf16.msrb.mxu1 %v5869_v1  ;;  %v5433_v1 = vld [vmem:[%s7716_s18 + $0xe8] sm:$0xf] }
0x108d   : > { %v2941_v26 = vpop.f32.mrf.mxu3  ;;  %3128 = vmatpush.bf16.msrb.mxu1 %v5868_v8  ;;  %v5909_v8 = vld [vmem:[%s7716_s18 + $0xf4] sm:$0xf0] }
0x10dd   : > { %v3183_v18 = vpop.f32.mrf.mxu2 }
0x10e5   : > { %v3185_v21 = vpop.f32.mrf.mxu2 }
0x10e6   : > { %v3192_v24 = vpack.c.bf16 %v3185_v21, %v3183_v18  ;;  %v5379_v18 = vld [vmem:[%s7716_s18 + $0x90] sm:$0xf0]  ;;  %v5895_v21 = vld [vmem:[%s7716_s18 + $0x8c] sm:$0xf] }
0x10ed   : > { %v3188_v22 = vpop.f32.mrf.mxu2 }
0x10f5   : > { %v3190_v61 = vpop.f32.mrf.mxu2 }
0x10fa   : > { %v2945_v27 = vpop.xlane.xlu2 %2944 }
0x10fb   : > { %v2946_v28 = vsub.f32 %v2939_v25, %v2945_v27  ;;  %v5876_v27 = vld [vmem:[%s7712_s14 + $0x30] sm:$0xff] }
0x10fd   : > { %v2947_v12 = vmul.f32 1.442695, %v2946_v28 }
0x10ff   : > { %6090 = vpow2.f32 %v2947_v12 }
0x1105   : > { %v6091_v30 = vpop.eup %6090 }
0x1106   : > { %v2949_v32 = vsel %vm2398_vm1, %v6091_v30, 0.0 }
0x1107   : > { %2950 = vadd.xlane.f32.xlu0 %v2949_v32 }
0x117a   : > { %v2951_v43 = vpop.xlane.xlu0 %2950 }
0x117b   : > { %6092 = vrcp.f32 %v2951_v43 }
0x1181   : > { %v6093_v44 = vpop.eup %6092 }
0x1182   : > { %v2953_v45 = vmul.f32 %v6093_v44, %v6091_v30  ;;  %v6052_v30 = vld [vmem:[%s7713_s15] ss:$0 sm:$0xff]  ;;  %v5434_v44 = vor.u32 %v5909_v8, %v5433_v1  ;;  %v5347_v8 = vld [vmem:[%s7716_s18 + $0x50] sm:$0xf0] }
0x1184   : > { %v2954_v46 = vpack.c.bf16 %v2953_v45, %v2953_v45  ;;  %v5907_v45 = vld [vmem:[%s7716_s18 + $0xec] sm:$0xf] }
0x1186   : > { %5182 = vmatmul.msk.bf16.vlgmr.msra.gmra.mxu1 %vm2398_vm1, %v2954_v46  ;;  %v5435_v46 = vld [vmem:[%s7716_s18 + $0xf8] sm:$0xf0] }
0x1187   : > { %3521 = vmatpush.bf16.msra.mxu1 %v5426_v41  ;;  %v5438_v49 = vor.u32 %v5907_v45, %v5435_v46  ;;  %v5888_v41 = vld [vmem:[%s7716_s18 + $0x4c] sm:$0xf0] }
0x1196   : > { %5268 = vmatmul.msk.bf16.vlgmr.msrb.gmra.mxu1 %vm2297_vm12, %v6840_v47  ;;  %v3193_v47 = vpack.c.bf16 %v3188_v22, %v3188_v22  ;;  %v5387_v22 = vld [vmem:[%s7716_s18 + $0x98] sm:$0xf0] }
0x1197   : > { %v5390_v61 = vor.u32 %v5895_v21, %v5387_v22 }
0x1198   : > { %v3232_v23 = vsel %vm2414_vm0, %v3193_v47, 0 }
0x1199   : > { %3240 = vmatpush.bf16.msrb.mxu0 %v3232_v23 }
0x119d   : > { %3241 = vmatpush.bf16.msrb.mxu0 %v3192_v24 }
0x11a1   : > { %3547 = vmatpush.bf16.msra.mxu0 %v5434_v44  ;;  %v5889_v44 = vld [vmem:[%s7716_s18 + $0x54] sm:$0xf0] }
0x11a6   : > { %5269 = vmatmul.msk.bf16.gmra.mxu1 %vm2297_vm12, %v6868_v59  ;;  %v5877_v59 = vld [vmem:[%s7712_s14 + $0x38] sm:$0xff] }
0x1203   : > { %v2970_v51 = vpop.f32.mrf.mxu1 }
0x1204   : > { %v2974_v52 = vpack.c.bf16 %v2970_v51, %v2970_v51  ;;  %v5904_v51 = vld [vmem:[%s7716_s18 + $0xcc] sm:$0xf0] }
0x1206   : > { %5195 = vmatmul.msk.bf16.vlgmr.msrb.gmra.mxu3 %vm1098_vm10, %v2974_v52  ;;  %v5902_v52 = vld [vmem:[%s7716_s18 + $0xc4] sm:$0xf] }
0x120b   : > { %v2972_v53 = vpop.f32.mrf.mxu1 }
0x120c   : > { %v5411_v53 = vld [vmem:[%s7716_s18 + $0xd0] sm:$0xf0] }
0x1213   : > { %v3130_v54 = vpop.f32.mrf.mxu1 }
0x121b   : > { %v3132_v55 = vpop.f32.mrf.mxu1 }
0x121c   : > { %v3139_v60 = vpack.c.bf16 %v3132_v55, %v3130_v54  ;;  %v5410_v54 = vor.u32 %v5904_v51, %v5409_v48  ;;  %v5414_v55 = vor.u32 %v5902_v52, %v5411_v53  ;;  %v5887_v48 = vld [vmem:[%s7716_s18 + $0x4c] sm:$0xf]  ;;  %v5329_v52 = vld [vmem:[%s7716_s18 + $0x20] sm:$0xf]  ;;  %v5884_v53 = vld [vmem:[%s7716_s18 + $0x2c] sm:$0xf0] }
0x121e   : > { %v3198_v63 = vsel %vm1098_vm10, %v3139_v60, 0  ;;  %3522 = vmatpush.bf16.msra.mxu1 %v5410_v54  ;;  %v5882_v54 = vld [vmem:[%s7716_s18 + $0x24] sm:$0xf] }
0x1223   : > { %v3135_v56 = vpop.f32.mrf.mxu1 }
0x1224   : > { %v3140_v57 = vpack.c.bf16 %v3135_v56, %v3135_v56  ;;  %v5417_v56 = vld [vmem:[%s7716_s18 + $0xc8] sm:$0xf] }
0x1226   : > { %v3201_v58 = vsel %vm1098_vm10, %v3140_v57, 0  ;;  %v5905_v57 = vld [vmem:[%s7716_s18 + $0xd4] sm:$0xf0] }
0x1227   : > { %3209 = vmatpush.bf16.xpose.msra.mxu3 %v3201_v58  ;;  %v5903_v58 = vld [vmem:[%s7716_s18 + $0xcc] sm:$0xf]  ;;  %v5418_v60 = vor.u32 %v5905_v57, %v5417_v56  ;;  %v5331_v56 = vld [vmem:[%s7716_s18 + $0x30] sm:$0xf0]  ;;  %v5337_v57 = vld [vmem:[%s7716_s18 + $0x28] sm:$0xf] }
0x1229   : > { %3548 = vmatpush.bf16.msra.mxu0 %v5418_v60  ;;  %v5334_v60 = vor.u32 %v5882_v54, %v5331_v56  ;;  %v5513_v56 = vld [vmem:[%s7718_s20 + $0x88] sm:$0xf] }
0x122b   : > { %v3137_v62 = vpop.f32.mrf.mxu1 }
0x122c   : > { %v5419_v62 = vld [vmem:[%s7716_s18 + $0xd8] sm:$0xf0] }
0x122f   : > { %3210 = vmatpush.bf16.xpose.msra.mxu3 %v3198_v63  ;;  %v5393_v63 = vld [vmem:[%s7716_s18 + $0xa0] sm:$0xf] }
0x1236   : > { %5296 = vmatmul.msk.bf16.vlgmr.msra.gmra.mxu3 %vm1098_vm10, %v3087_v0  ;;  %v5900_v0 = vld [vmem:[%s7716_s18 + $0xac] sm:$0xf0] }
0x1237   : > { %3274 = vmatpush.bf16.msrb.mxu3 %v5877_v59  ;;  %v5394_v6 = vor.u32 %v5900_v0, %v5393_v63  ;;  %v5883_v63 = vld [vmem:[%s7716_s18 + $0x2c] sm:$0xf]  ;;  %v5339_v0 = vld [vmem:[%s7716_s18 + $0x38] sm:$0xf0] }
0x1239   : > { %3523 = vmatpush.bf16.msra.mxu1 %v5394_v6 }
0x123b   : > { %3275 = vmatpush.bf16.msrb.mxu3 %v5876_v27  ;;  %v5892_v27 = vld [vmem:[%s7716_s18 + $0x6c] sm:$0xf0] }
0x123f   : > { %3560 = vmatpush.bf16.msra.mxu3 %v5438_v49  ;;  %v5355_v49 = vld [vmem:[%s7716_s18 + $0x58] sm:$0xf0] }
0x1240   : > { %v5358_v51 = vor.u32 %v5887_v48, %v5355_v49  ;;  %v5531_v48 = vld [vmem:[%s7718_s20 + $0xb8] sm:$0xf0] }
0x1289   : > { %v3004_v3 = vpop.f32.mrf.mxu3 }
0x128a   : > { %v3008_v4 = vadd.f32 %v3004_v3, %v2733_v2  ;;  %v5422_v2 = vor.u32 %v5903_v58, %v5419_v62  ;;  %v5898_v3 = vld [vmem:[%s7716_s18 + $0xa4] sm:$0xf]  ;;  %v5885_v58 = vld [vmem:[%s7716_s18 + $0x34] sm:$0xf0] }
0x128b   : > { %v5338_v62 = vor.u32 %v5885_v58, %v5337_v57  ;;  %v5929_v57 = vld [vmem:[%s7718_s20 + $0x94] sm:$0xf0] }
0x128c   : > { %3561 = vmatpush.bf16.msra.mxu3 %v5422_v2  ;;  %v5342_v2 = vor.u32 %v5883_v63, %v5339_v0  ;;  %v5515_v63 = vld [vmem:[%s7718_s20 + $0x98] sm:$0xf0] }
0x1291   : > { %v3006_v5 = vpop.f32.mrf.mxu3 }
0x1292   : > { %v5401_v5 = vld [vmem:[%s7716_s18 + $0xa8] sm:$0xf] }
0x12b9   : > { %v3212_v11 = vpop.f32.mrf.mxu3 }
0x12ba   : > { %v3216_v13 = vsel %vm2398_vm1, %v3212_v11, -inf }
0x12bb   : > { %3217 = vmax.xlane.f32.xlu1 %v3216_v13  ;;  %v5402_v13 = vor.u32 %v5901_v7, %v5401_v5  ;;  %v5878_v5 = vld [vmem:[%s7716_s18 + $0x4] sm:$0xf]  ;;  %v5315_v7 = vld [vmem:[%s7716_s18 + $0x10] sm:$0xf0] }
0x12bd   : > { %3549 = vmatpush.bf16.msra.mxu0 %v5402_v13 }
0x12c1   : > { %v3214_v14 = vpop.f32.mrf.mxu3 }
0x12c2   : > { %v5377_v14 = vld [vmem:[%s7716_s18 + $0x80] sm:$0xf] }
0x132e   : > { %v3218_v15 = vpop.xlane.xlu1 %3217 }
0x132f   : > { %v3219_v16 = vsub.f32 %v3212_v11, %v3218_v15  ;;  %v5896_v15 = vld [vmem:[%s7716_s18 + $0x8c] sm:$0xf0] }
0x1330   : > { %v5378_v47 = vor.u32 %v5896_v15, %v5377_v14  ;;  %v5879_v14 = vld [vmem:[%s7716_s18 + $0xc] sm:$0xf]  ;;  %v5323_v15 = vld [vmem:[%s7716_s18 + $0x18] sm:$0xf0] }
0x1331   : > { %v3220_v50 = vmul.f32 1.442695, %v3219_v16  ;;  %v5894_v16 = vld [vmem:[%s7716_s18 + $0x84] sm:$0xf] }
0x1332   : > { %v5382_v23 = vor.u32 %v5894_v16, %v5379_v18  ;;  %3524 = vmatpush.bf16.msra.mxu1 %v5378_v47  ;;  %v5553_v16 = vld [vmem:[%s7718_s20 + $0xe0] sm:$0xf]  ;;  %v5940_v18 = vld [vmem:[%s7718_s20 + $0xec] sm:$0xf0]  ;;  %v5561_v47 = vld [vmem:[%s7718_s20 + $0xe8] sm:$0xf] }
0x1333   : > { %6094 = vpow2.f32 %v3220_v50  ;;  %v5406_v50 = vor.u32 %v5899_v10, %v5403_v42  ;;  %v5321_v10 = vld [vmem:[%s7716_s18 + $0x8] sm:$0xf]  ;;  %v5881_v42 = vld [vmem:[%s7716_s18 + $0x14] sm:$0xf0]  ;;  %v5554_v21 = vor.u32 %v5940_v18, %v5553_v16  ;;  %v5473_v16 = vld [vmem:[%s7718_s20 + $0x40] sm:$0xf] }
0x1334   : > { %v5322_v13 = vor.u32 %v5881_v42, %v5321_v10  ;;  %v5925_v10 = vld [vmem:[%s7718_s20 + $0x74] sm:$0xf0] }
0x1335   : > { %3562 = vmatpush.bf16.msra.mxu3 %v5406_v50  ;;  %v5326_v50 = vor.u32 %v5879_v14, %v5323_v15  ;;  %v5923_v14 = vld [vmem:[%s7718_s20 + $0x6c] sm:$0xf]  ;;  %v5499_v15 = vld [vmem:[%s7718_s20 + $0x78] sm:$0xf0] }
0x1336   : > { %v5502_v18 = vor.u32 %v5923_v14, %v5499_v15  ;;  %v5972_v14 = vld [vmem:[%s7720_s22 + $0xf0] sm:$0xff]  ;;  %v5946_v15 = vld [vmem:[%s7720_s22 + $0x20] sm:$0xff] }
0x1339   : > { %v6095_v19 = vpop.eup %6094  ;;  %3563 = vmatpush.bf16.msra.mxu3 %v5390_v61 }
0x133a   : > { %v3222_v31 = vsel %vm2398_vm1, %v6095_v19, 0.0 }
0x133b   : > { %3223 = vadd.xlane.f32.xlu2 %v3222_v31  ;;  %v5897_v31 = vld [vmem:[%s7716_s18 + $0x94] sm:$0xf0] }
0x13ae   : > { %v3224_v35 = vpop.xlane.xlu2 %3223 }
0x13af   : > { %6096 = vrcp.f32 %v3224_v35 }
0x13b5   : > { %v6097_v25 = vpop.eup %6096 }
0x13b6   : > { %v3226_v39 = vmul.f32 %v6097_v25, %v6095_v19  ;;  %v5385_v19 = vld [vmem:[%s7716_s18 + $0x88] sm:$0xf] }
0x13b7   : > { %v5386_v24 = vor.u32 %v5897_v31, %v5385_v19  ;;  %v5938_v19 = vld [vmem:[%s7718_s20 + $0xe4] sm:$0xf]  ;;  %v5555_v31 = vld [vmem:[%s7718_s20 + $0xf0] sm:$0xf0] }
0x13b8   : > { %v3227_v26 = vpack.c.bf16 %v3226_v39, %v3226_v39  ;;  %v5558_v22 = vor.u32 %v5938_v19, %v5555_v31  ;;  %v5920_v19 = vld [vmem:[%s7718_s20 + $0x4c] sm:$0xf0]  ;;  %v5918_v31 = vld [vmem:[%s7718_s20 + $0x44] sm:$0xf] }
0x13b9   : > { %3550 = vmatpush.bf16.msra.mxu0 %v5386_v24  ;;  %v5939_v24 = vld [vmem:[%s7718_s20 + $0xec] sm:$0xf] }
0x13ba   : > { %5297 = vmatmul.msk.bf16.vlgmr.msrb.gmra.mxu0 %vm2398_vm1, %v3227_v26  ;;  %v5361_v26 = vld [vmem:[%s7716_s18 + $0x60] sm:$0xf] }
0x1437   : > { %v3243_v28 = vpop.f32.mrf.mxu0 }
0x1438   : > { %v3247_v12 = vpack.c.bf16 %v3243_v28, %v3243_v28  ;;  %v5890_v28 = vld [vmem:[%s7716_s18 + $0x64] sm:$0xf] }
0x143a   : > { %5310 = vmatmul.msk.bf16.vlgmr.msrb.gmra.mxu3 %vm1098_vm10, %v3247_v12  ;;  %v5362_v12 = vor.u32 %v5892_v27, %v5361_v26 }
0x143c   : > { %3525 = vmatpush.bf16.msra.mxu1 %v5362_v12  ;;  %v5539_v12 = vld [vmem:[%s7718_s20 + $0xd0] sm:$0xf0] }
0x143f   : > { %v3245_v29 = vpop.f32.mrf.mxu0 }
0x1440   : > { %v5363_v29 = vld [vmem:[%s7716_s18 + $0x70] sm:$0xf0] }
0x14bd   : > { %v3277_v32 = vpop.f32.mrf.mxu3 }
0x14be   : > { %v3281_v33 = vadd.f32 %v3277_v32, %v3008_v4  ;;  %v5395_v4 = vld [vmem:[%s7716_s18 + $0xb0] sm:$0xf0]  ;;  %v5893_v32 = vld [vmem:[%s7716_s18 + $0x74] sm:$0xf0] }
0x14bf   : > { %v5398_v11 = vor.u32 %v5898_v3, %v5395_v4  ;;  %v5313_v3 = vld [vmem:[%s7716_s18] sm:$0xf]  ;;  %v5880_v4 = vld [vmem:[%s7716_s18 + $0xc] sm:$0xf0] }
0x14c0   : > { %v3286_v34 = vadd.f32 %v6052_v30, %v3281_v33  ;;  %v5369_v30 = vld [vmem:[%s7716_s18 + $0x68] sm:$0xf]  ;;  %v5366_v33 = vor.u32 %v5890_v28, %v5363_v29  ;;  %v5314_v6 = vor.u32 %v5880_v4, %v5313_v3  ;;  %v5934_v28 = vld [vmem:[%s7718_s20 + $0xc4] sm:$0xf]  ;;  %v5924_v3 = vld [vmem:[%s7718_s20 + $0x6c] sm:$0xf0] }
0x14c1   : > { %v5545_v29 = vld [vmem:[%s7718_s20 + $0xc8] sm:$0xf]  ;;  %v5922_v4 = vld [vmem:[%s7718_s20 + $0x64] sm:$0xf] }
0x14c2   : > { %v7135_v17 = vadd.f32 %v3286_v34, %v6806_v38  ;;  %v5427_v38 = vld [vmem:[%s7716_s18 + $0xf0] sm:$0xf0]  ;;  %v5370_v34 = vor.u32 %v5893_v32, %v5369_v30  ;;  %v5542_v30 = vor.u32 %v5934_v28, %v5539_v12  ;;  %v5937_v32 = vld [vmem:[%s7718_s20 + $0xd4] sm:$0xf0] }
0x14c3   : > { %v5430_v43 = vor.u32 %v5906_v20, %v5427_v38  ;;  %v5345_v20 = vld [vmem:[%s7716_s18 + $0x40] sm:$0xf]  ;;  %v5886_v38 = vld [vmem:[%s7716_s18 + $0x44] sm:$0xf]  ;;  %v5459_v28 = vld [vmem:[%s7718_s20 + $0x30] sm:$0xf0] }
0x14c4   : > { %3290 = vadd.xlane.f32.xlu0 %v7135_v17  ;;  %3551 = vmatpush.bf16.msra.mxu0 %v5370_v34  ;;  %v5346_v1 = vor.u32 %v5888_v41, %v5345_v20  ;;  %v5350_v45 = vor.u32 %v5886_v38, %v5347_v8  ;;  %v5547_v34 = vld [vmem:[%s7718_s20 + $0xd8] sm:$0xf0]  ;;  %v5932_v20 = vld [vmem:[%s7718_s20 + $0xac] sm:$0xf0]  ;;  %v5930_v41 = vld [vmem:[%s7718_s20 + $0xa4] sm:$0xf] }
0x14c5   : > { %v3279_v36 = vpop.f32.mrf.mxu3  ;;  %3534 = vmatpush.bf16.msra.mxu2 %v5430_v43  ;;  %v5353_v43 = vld [vmem:[%s7716_s18 + $0x48] sm:$0xf] }
0x14c6   : > { %v5891_v36 = vld [vmem:[%s7716_s18 + $0x6c] sm:$0xf]  ;;  %v5354_v46 = vor.u32 %v5889_v44, %v5353_v43  ;;  %3526 = vmatpush.bf16.msra.mxu1 %v5346_v1  ;;  %v5523_v1 = vld [vmem:[%s7718_s20 + $0xb0] sm:$0xf0]  ;;  %v5529_v8 = vld [vmem:[%s7718_s20 + $0xa8] sm:$0xf] }
0x14c7   : > { %v5374_v40 = vor.u32 %v5891_v36, %v5371_v37  ;;  %v5546_v36 = vor.u32 %v5937_v32, %v5545_v29  ;;  %v5933_v43 = vld [vmem:[%s7718_s20 + $0xb4] sm:$0xf0]  ;;  %v5526_v44 = vor.u32 %v5930_v41, %v5523_v1  ;;  %v5465_v29 = vld [vmem:[%s7718_s20 + $0x28] sm:$0xf]  ;;  %v5915_v32 = vld [vmem:[%s7718_s20 + $0x2c] sm:$0xf] }
0x14c8   : > { %3552 = vmatpush.bf16.msra.mxu0 %v5354_v46  ;;  %v5931_v46 = vld [vmem:[%s7718_s20 + $0xac] sm:$0xf]  ;;  %v5910_v41 = vld [vmem:[%s7718_s20 + $0x4] sm:$0xf] }
0x14c9   : > { %3535 = vmatpush.bf16.msra.mxu2 %v5414_v55  ;;  %3564 = vmatpush.bf16.msra.mxu3 %v5374_v40  ;;  %v5330_v55 = vor.u32 %v5884_v53, %v5329_v52  ;;  %v5521_v40 = vld [vmem:[%s7718_s20 + $0xa0] sm:$0xf]  ;;  %v5534_v49 = vor.u32 %v5931_v46, %v5531_v48  ;;  %v5928_v52 = vld [vmem:[%s7718_s20 + $0x8c] sm:$0xf0]  ;;  %v5926_v53 = vld [vmem:[%s7718_s20 + $0x84] sm:$0xf] }
0x14ca   : > { %v5522_v38 = vor.u32 %v5932_v20, %v5521_v40  ;;  %v5912_v20 = vld [vmem:[%s7718_s20 + $0xc] sm:$0xf0] }
0x14cb   : > { %3527 = vmatpush.bf16.msra.mxu1 %v5330_v55  ;;  %v5507_v55 = vld [vmem:[%s7718_s20 + $0x90] sm:$0xf0] }
0x14cc   : > { %3553 = vmatpush.bf16.msra.mxu0 %v5338_v62  ;;  %v5510_v58 = vor.u32 %v5926_v53, %v5507_v55  ;;  %v5927_v62 = vld [vmem:[%s7718_s20 + $0x8c] sm:$0xf] }
0x14cd   : > { %3536 = vmatpush.bf16.msra.mxu2 %v5398_v11  ;;  %3565 = vmatpush.bf16.msra.mxu3 %v5358_v51  ;;  %v5318_v11 = vor.u32 %v5878_v5, %v5315_v7  ;;  %v5505_v51 = vld [vmem:[%s7718_s20 + $0x80] sm:$0xf]  ;;  %v5518_v0 = vor.u32 %v5927_v62, %v5515_v63  ;;  %v5497_v7 = vld [vmem:[%s7718_s20 + $0x68] sm:$0xf] }
0x14ce   : > { %v5506_v54 = vor.u32 %v5928_v52, %v5505_v51  ;;  %v6054_v62 = vld [vmem:[%s7715_s17] ss:$0 sm:$0xff] }
0x14cf   : > { %3528 = vmatpush.bf16.msra.mxu1 %v5314_v6  ;;  %v5491_v6 = vld [vmem:[%s7718_s20 + $0x70] sm:$0xf0] }
0x14d0   : > { %3554 = vmatpush.bf16.msra.mxu0 %v5322_v13  ;;  %v5498_v13 = vor.u32 %v5925_v10, %v5497_v7  ;;  %v5957_v7 = vld [vmem:[%s7720_s22 + $0x78] sm:$0xff] }
0x14d1   : > { %3537 = vmatpush.bf16.msra.mxu2 %v5382_v23  ;;  %3566 = vmatpush.bf16.msra.mxu3 %v5342_v2  ;;  %v5941_v23 = vld [vmem:[%s7718_s20 + $0xf4] sm:$0xf0]  ;;  %v5489_v2 = vld [vmem:[%s7718_s20 + $0x60] sm:$0xf] }
0x14d2   : > { %v5562_v61 = vor.u32 %v5941_v23, %v5561_v47  ;;  %v5490_v5 = vor.u32 %v5924_v3, %v5489_v2  ;;  %v5919_v47 = vld [vmem:[%s7718_s20 + $0x4c] sm:$0xf]  ;;  %v5973_v10 = vld [vmem:[%s7720_s22 + $0xf8] sm:$0xff] }
0x14d3   : > { %3775 = vmatpush.bf16.msrb.mxu1 %v5554_v21  ;;  %v5475_v21 = vld [vmem:[%s7718_s20 + $0x50] sm:$0xf0] }
0x14d4   : > { %3801 = vmatpush.bf16.msrb.mxu0 %v5562_v61  ;;  %v5478_v61 = vor.u32 %v5918_v31, %v5475_v21  ;;  %v5961_v31 = vld [vmem:[%s7720_s22 + $0x98] sm:$0xff]  ;;  %v5954_v21 = vld [vmem:[%s7720_s22 + $0x60] sm:$0xff] }
0x14d5   : > { %3538 = vmatpush.bf16.msra.mxu2 %v5366_v33  ;;  %3567 = vmatpush.bf16.msra.mxu3 %v5326_v50  ;;  %v5935_v33 = vld [vmem:[%s7718_s20 + $0xcc] sm:$0xf] }
0x14d6   : > { %v5550_v37 = vor.u32 %v5935_v33, %v5547_v34  ;;  %v5467_v33 = vld [vmem:[%s7718_s20 + $0x38] sm:$0xf0] }
0x14d7   : > { %v5470_v1 = vor.u32 %v5915_v32, %v5467_v33  ;;  %v5958_v32 = vld [vmem:[%s7720_s22 + $0x80] sm:$0xff] }
0x14d8   : > { %3802 = vmatpush.bf16.msrb.mxu0 %v5546_v36 }
0x14d9   : > { %3539 = vmatpush.bf16.msra.mxu2 %v5350_v45  ;;  %v5530_v45 = vor.u32 %v5933_v43, %v5529_v8  ;;  %v5449_v8 = vld [vmem:[%s7718_s20 + $0x8] sm:$0xf]  ;;  %v5913_v43 = vld [vmem:[%s7718_s20 + $0x14] sm:$0xf0] }
0x14da   : > { %v5450_v52 = vor.u32 %v5913_v43, %v5449_v8 }
0x14dc   : > { %3803 = vmatpush.bf16.msrb.mxu0 %v5530_v45  ;;  %v5451_v45 = vld [vmem:[%s7718_s20 + $0x18] sm:$0xf0] }
0x14dd   : > { %3540 = vmatpush.bf16.msra.mxu2 %v5334_v60  ;;  %v5514_v60 = vor.u32 %v5929_v57, %v5513_v56 }
0x14e0   : > { %3804 = vmatpush.bf16.msrb.mxu0 %v5514_v60 }
0x14e1   : > { %3541 = vmatpush.bf16.msra.mxu2 %v5318_v11  ;;  %v5494_v11 = vor.u32 %v5922_v4, %v5491_v6  ;;  %v5949_v4 = vld [vmem:[%s7720_s22 + $0x38] sm:$0xff]  ;;  %v5964_v6 = vld [vmem:[%s7720_s22 + $0xb0] sm:$0xff] }
0x14e4   : > { %3805 = vmatpush.bf16.msrb.mxu0 %v5498_v13  ;;  %v5956_v13 = vld [vmem:[%s7720_s22 + $0x70] sm:$0xff] }
0x14e5   : > { %3788 = vmatpush.bf16.msrb.mxu2 %v5558_v22  ;;  %v5481_v22 = vld [vmem:[%s7718_s20 + $0x48] sm:$0xf] }
0x14e9   : > { %3789 = vmatpush.bf16.msrb.mxu2 %v5542_v30  ;;  %v5917_v30 = vld [vmem:[%s7718_s20 + $0x34] sm:$0xf0] }
0x14ea   : > { %v5466_v40 = vor.u32 %v5917_v30, %v5465_v29  ;;  %v5942_v30 = vld [vmem:[%s7720_s22] sm:$0xff] }
0x14ed   : > { %3790 = vmatpush.bf16.msrb.mxu2 %v5526_v44  ;;  %v5911_v44 = vld [vmem:[%s7718_s20 + $0xc] sm:$0xf] }
0x14ee   : > { %v5454_v53 = vor.u32 %v5911_v44, %v5451_v45 }
0x14f1   : > { %3791 = vmatpush.bf16.msrb.mxu2 %v5510_v58  ;;  %v6053_v58 = vld [vmem:[%s7714_s16] ss:$0 sm:$0xff] }
0x14f5   : > { %3792 = vmatpush.bf16.msrb.mxu2 %v5494_v11  ;;  %v5963_v11 = vld [vmem:[%s7720_s22 + $0xa8] sm:$0xff] }
0x14f9   : > { %3793 = vmatpush.bf16.msrb.mxu2 %v5478_v61  ;;  %v5953_v61 = vld [vmem:[%s7720_s22 + $0x58] sm:$0xff] }
0x1537   : > { %v3291_v59 = vpop.xlane.xlu0 %3290 }
0x1538   : > { %v3292_v35 = vmul.f32 %v3291_v59, %v6413_v9  ;;  %v5563_v59 = vld [vmem:[%s7718_s20 + $0xf8] sm:$0xf0] }
0x1539   : > { %v5566_v26 = vor.u32 %v5939_v24, %v5563_v59  ;;  %v5474_v24 = vor.u32 %v5920_v19, %v5473_v16  ;;  %v5483_v59 = vld [vmem:[%s7718_s20 + $0x58] sm:$0xf0]  ;;  %v5962_v16 = vld [vmem:[%s7720_s22 + $0xa0] sm:$0xff] }
0x153a   : > { %v7236_v25 = vsub.f32 %v7135_v17, %v3292_v35  ;;  %v5537_v35 = vld [vmem:[%s7718_s20 + $0xc0] sm:$0xf]  ;;  %v5486_v12 = vor.u32 %v5919_v47, %v5483_v59  ;;  %v5945_v19 = vld [vmem:[%s7720_s22 + $0x18] sm:$0xff]  ;;  %v5944_v47 = vld [vmem:[%s7720_s22 + $0x10] sm:$0xff] }
0x153b   : > { %3814 = vmatpush.bf16.msrb.mxu3 %v5566_v26  ;;  %v5916_v26 = vld [vmem:[%s7718_s20 + $0x2c] sm:$0xf0]  ;;  %v5969_v59 = vld [vmem:[%s7720_s22 + $0xd8] sm:$0xff] }
0x153c   : > { %v3294_v39 = vmul.f32 %v7236_v25, %v7236_v25 }
0x153e   : > { %3295 = vadd.xlane.f32.xlu1 %v3294_v39  ;;  %v5936_v39 = vld [vmem:[%s7718_s20 + $0xcc] sm:$0xf0] }
0x153f   : > { %v5538_v27 = vor.u32 %v5936_v39, %v5537_v35  ;;  %3815 = vmatpush.bf16.msrb.mxu3 %v5550_v37  ;;  %v5457_v35 = vld [vmem:[%s7718_s20 + $0x20] sm:$0xf] }
0x1540   : > { %v5458_v34 = vor.u32 %v5916_v26, %v5457_v35  ;;  %v5441_v37 = vld [vmem:[%s7718_s20] sm:$0xf]  ;;  %v5943_v35 = vld [vmem:[%s7720_s22 + $0x8] sm:$0xff] }
0x1541   : > { %3776 = vmatpush.bf16.msrb.mxu1 %v5538_v27  ;;  %v5914_v27 = vld [vmem:[%s7718_s20 + $0x24] sm:$0xf]  ;;  %v5442_v48 = vor.u32 %v5912_v20, %v5441_v37  ;;  %v5967_v37 = vld [vmem:[%s7720_s22 + $0xc8] sm:$0xff] }
0x1542   : > { %v5462_v36 = vor.u32 %v5914_v27, %v5459_v28  ;;  %v5952_v27 = vld [vmem:[%s7720_s22 + $0x50] sm:$0xff]  ;;  %v5950_v20 = vld [vmem:[%s7720_s22 + $0x40] sm:$0xff] }
0x1543   : > { %3816 = vmatpush.bf16.msrb.mxu3 %v5534_v49  ;;  %v5968_v28 = vld [vmem:[%s7720_s22 + $0xd0] sm:$0xff] }
0x1544   : > { %3794 = vmatpush.bf16.msrb.mxu2 %v5462_v36  ;;  %v5951_v36 = vld [vmem:[%s7720_s22 + $0x48] sm:$0xff] }
0x1545   : > { %3777 = vmatpush.bf16.msrb.mxu1 %v5522_v38  ;;  %v5443_v38 = vld [vmem:[%s7718_s20 + $0x10] sm:$0xf0] }
0x1546   : > { %v5446_v49 = vor.u32 %v5910_v41, %v5443_v38  ;;  %v5966_v41 = vld [vmem:[%s7720_s22 + $0xc0] sm:$0xff] }
0x1547   : > { %3817 = vmatpush.bf16.msrb.mxu3 %v5518_v0 }
0x1548   : > { %3795 = vmatpush.bf16.msrb.mxu2 %v5446_v49 }
0x1549   : > { %3778 = vmatpush.bf16.msrb.mxu1 %v5506_v54 }
0x154b   : > { %3818 = vmatpush.bf16.msrb.mxu3 %v5502_v18  ;;  %v5971_v18 = vld [vmem:[%s7720_s22 + $0xe8] sm:$0xff] }
0x154d   : > { %3779 = vmatpush.bf16.msrb.mxu1 %v5490_v5  ;;  %v5965_v5 = vld [vmem:[%s7720_s22 + $0xb8] sm:$0xff] }
0x154f   : > { %3819 = vmatpush.bf16.msrb.mxu3 %v5486_v12 }
0x1551   : > { %3780 = vmatpush.bf16.msrb.mxu1 %v5474_v24 }
0x1553   : > { %3820 = vmatpush.bf16.msrb.mxu3 %v5470_v1 }
0x1555   : > { %3781 = vmatpush.bf16.msrb.mxu1 %v5458_v34  ;;  %v3605_v34 = vld [vmem:[%s7719_s21] sm:$0xf] }
0x1556   : > { %v3609_v1 = vperm.slane %v3605_v34, 2  ;;  %v3608_v49 = vperm.slane %v3605_v34, 1 }
0x1557   : > { %3821 = vmatpush.bf16.msrb.mxu3 %v5454_v53 }
0x1559   : > { %3782 = vmatpush.bf16.msrb.mxu1 %v5442_v48 }
0x15b1   : > { %v3296_v42 = vpop.xlane.xlu1 %3295 }
0x15b2   : > { %v3297_v50 = vmul.f32 %v3296_v42, %v6413_v9  ;;  %v5921_v9 = vld [vmem:[%s7718_s20 + $0x54] sm:$0xf0]  ;;  %v5947_v42 = vld [vmem:[%s7720_s22 + $0x28] sm:$0xff] }
0x15b3   : > { %v5482_v39 = vor.u32 %v5921_v9, %v5481_v22  ;;  %v5970_v22 = vld [vmem:[%s7720_s22 + $0xe0] sm:$0xff] }
0x15b4   : > { %v3298_v23 = vadd.f32 1e-05, %v3297_v50  ;;  %v5955_v50 = vld [vmem:[%s7720_s22 + $0x68] sm:$0xff] }
0x15b5   : > { %3806 = vmatpush.bf16.msrb.mxu0 %v5482_v39  ;;  %v5959_v39 = vld [vmem:[%s7720_s22 + $0x88] sm:$0xff] }
0x15b6   : > { %6098 = vrsqrt.f32 %v3298_v23  ;;  %vm3305_vm3 = vweird.f32 %v3298_v23 }
0x15b9   : > { %3807 = vmatpush.bf16.msrb.mxu0 %v5466_v40  ;;  %v3607_v40 = vperm.slane %v3605_v34, 0 }
0x15bc   : > { %v6099_v46 = vpop.eup %6098 }
0x15bd   : > { %v3300_v51 = vmul.f32 %v6099_v46, %v3298_v23  ;;  %3808 = vmatpush.bf16.msrb.mxu0 %v5450_v52  ;;  %vm3306_vm2 = vweird.f32 %v6099_v46  ;;  %v5960_v23 = vld [vmem:[%s7720_s22 + $0x90] sm:$0xff]  ;;  %v3610_v52 = vperm.slane %v3605_v34, 3 }
0x15be   : > { %vm3307_vm4 = vmor %vm3305_vm3, %vm3306_vm2 }
0x15bf   : > { %v3301_v54 = vmul.f32 %v6099_v46, %v3300_v51 }
0x15c1   : > { %v3302_v55 = vmul.f32 0.5, %v3301_v54 }
0x15c3   : > { %v3303_v56 = vsub.f32 1.5, %v3302_v55 }
0x15c5   : > { %v3304_v57 = vmul.f32 %v6099_v46, %v3303_v56 }
0x15c7   : > { %v3308_v60 = vsel %vm3307_vm4, %v6099_v46, %v3304_v57 }
0x15c8   : > { %v3309_v63 = vmul.f32 %v3308_v60, %v7236_v25  ;;  %v5948_v25 = vld [vmem:[%s7720_s22 + $0x30] sm:$0xff] }
0x15ca   : > { %v3313_v0 = vmul.f32 %v6053_v58, %v3309_v63 }
0x15cc   : > { %v3317_v2 = vadd.f32 %v6054_v62, %v3313_v0 }
0x15ce   : > { %v3318_v3 = vpack.c.bf16 %v3317_v2, %v3317_v2 }
0x15d0   : > { %3529 = vmatmul.bf16.vlgmr.msra.gmra.mxu1 %v3318_v3  ;;  %3542 = vmatmul.bf16.vlgmr.msra.gmra.mxu2 %v3318_v3 }
0x15d1   : > { %3555 = vmatmul.bf16.vlgmr.msra.gmra.mxu0 %v3318_v3  ;;  %3568 = vmatmul.bf16.vlgmr.msra.gmra.mxu3 %v3318_v3 }
0x15d2   : > { %4131 = vmatpush.bf16.msra.mxu1 %v5949_v4  ;;  %4157 = vmatpush.bf16.msra.mxu0 %v5965_v5 }
0x15d3   : > { %4144 = vmatpush.bf16.msra.mxu2 %v5957_v7  ;;  %4170 = vmatpush.bf16.msra.mxu3 %v5973_v10 }
0x15d6   : > { %4132 = vmatpush.bf16.msra.mxu1 %v5948_v25  ;;  %4158 = vmatpush.bf16.msra.mxu0 %v5964_v6 }
0x15d7   : > { %4145 = vmatpush.bf16.msra.mxu2 %v5956_v13  ;;  %4171 = vmatpush.bf16.msra.mxu3 %v5972_v14  ;;  %v3351_v14 = vld [vmem:[%s7717_s19] sm:$0xf] }
0x15d8   : > { %v3356_v34 = vperm.slane %v3351_v14, 3 }
0x15da   : > { %4133 = vmatpush.bf16.msra.mxu1 %v5947_v42  ;;  %4159 = vmatpush.bf16.msra.mxu0 %v5963_v11 }
0x15db   : > { %4146 = vmatpush.bf16.msra.mxu2 %v5955_v50  ;;  %4172 = vmatpush.bf16.msra.mxu3 %v5971_v18 }
0x15de   : > { %4134 = vmatpush.bf16.msra.mxu1 %v5946_v15  ;;  %4160 = vmatpush.bf16.msra.mxu0 %v5962_v16 }
0x15df   : > { %4147 = vmatpush.bf16.msra.mxu2 %v5954_v21  ;;  %4173 = vmatpush.bf16.msra.mxu3 %v5970_v22  ;;  %v3355_v22 = vperm.slane %v3351_v14, 2 }
0x15e0   : > { %3783 = vmatmul.bf16.vlgmr.msrb.gmra.mxu1 %v3318_v3  ;;  %3796 = vmatmul.bf16.vlgmr.msrb.gmra.mxu2 %v3318_v3 }
0x15e1   : > { %3809 = vmatmul.bf16.vlgmr.msrb.gmra.mxu0 %v3318_v3  ;;  %3822 = vmatmul.bf16.vlgmr.msrb.gmra.mxu3 %v3318_v3 }
0x15e2   : > { %4135 = vmatpush.bf16.msra.mxu1 %v5945_v19  ;;  %4161 = vmatpush.bf16.msra.mxu0 %v5961_v31  ;;  %v3353_v19 = vperm.slane %v3351_v14, 0 }
0x15e3   : > { %4148 = vmatpush.bf16.msra.mxu2 %v5953_v61  ;;  %4174 = vmatpush.bf16.msra.mxu3 %v5969_v59 }
0x15e6   : > { %4136 = vmatpush.bf16.msra.mxu1 %v5944_v47  ;;  %4162 = vmatpush.bf16.msra.mxu0 %v5960_v23 }
0x15e7   : > { %4149 = vmatpush.bf16.msra.mxu2 %v5952_v27  ;;  %4175 = vmatpush.bf16.msra.mxu3 %v5968_v28 }
0x15ea   : > { %4137 = vmatpush.bf16.msra.mxu1 %v5943_v35  ;;  %4163 = vmatpush.bf16.msra.mxu0 %v5959_v39 }
0x15eb   : > { %4150 = vmatpush.bf16.msra.mxu2 %v5951_v36  ;;  %4176 = vmatpush.bf16.msra.mxu3 %v5967_v37 }
0x15ee   : > { %4138 = vmatpush.bf16.msra.mxu1 %v5942_v30  ;;  %4164 = vmatpush.bf16.msra.mxu0 %v5958_v32  ;;  %v3354_v30 = vperm.slane %v3351_v14, 1 }
0x15ef   : > { %4151 = vmatpush.bf16.msra.mxu2 %v5950_v20  ;;  %4177 = vmatpush.bf16.msra.mxu3 %v5966_v41 }
0x164d   : > { %v7590_v9 = vpop.f32.mrf.mxu1 }
0x164e   : > { %v7598_v24 = vpop.f32.mrf.mxu0  ;;  %v3531_v39 = vadd.f32 %v7590_v9, %v3353_v19 }
0x164f   : > { %v3557_v28 = vadd.f32 %v7598_v24, %v3355_v22 }
0x1653   : > { %v7612_v26 = vpop.f32.mrf.mxu2 }
0x1654   : > { %v7620_v12 = vpop.f32.mrf.mxu3 }
0x1655   : > { %v3532_v29 = vpop.f32.mrf.mxu1  ;;  %v3570_v24 = vadd.f32 %v7620_v12, %v3356_v34 }
0x1656   : > { %v3558_v33 = vpop.f32.mrf.mxu0 }
0x165b   : > { %v3545_v38 = vpop.f32.mrf.mxu2 }
0x165c   : > { %v3571_v8 = vpop.f32.mrf.mxu3 }
0x165d   : > { %v3784_v43 = vpop.f32.mrf.mxu1 }
0x165e   : > { %v3785_v44 = vadd.f32 %v3784_v43, %v3607_v40  ;;  %v3810_v45 = vpop.f32.mrf.mxu0  ;;  %v3544_v43 = vadd.f32 %v7612_v26, %v3354_v30  ;;  %v6055_v26 = vld [vmem:[%s7782_s25] ss:$0 sm:$0xff] }
0x165f   : > { %v3811_v46 = vadd.f32 %v3810_v45, %v3609_v1 }
0x1660   : > { %v3831_v48 = vmul.f32 0.044715, %v3785_v44  ;;  %v3827_v23 = vmul.f32 0.5, %v3785_v44 }
0x1661   : > { %v3833_v51 = vmul.f32 0.044715, %v3811_v46  ;;  %v3829_v59 = vmul.f32 0.5, %v3811_v46 }
0x1662   : > { %v3835_v53 = vmul.f32 %v3831_v48, %v3785_v44 }
0x1663   : > { %v3837_v54 = vmul.f32 %v3833_v51, %v3811_v46  ;;  %v3797_v55 = vpop.f32.mrf.mxu2 }
0x1664   : > { %v3839_v56 = vmul.f32 %v3835_v53, %v3785_v44  ;;  %v3798_v57 = vadd.f32 %v3797_v55, %v3608_v49  ;;  %v3823_v58 = vpop.f32.mrf.mxu3 }
0x1665   : > { %v3841_v60 = vmul.f32 %v3837_v54, %v3811_v46  ;;  %v3824_v62 = vadd.f32 %v3823_v58, %v3610_v52  ;;  %v3786_v63 = vpop.f32.mrf.mxu1 }
0x1666   : > { %v3843_v0 = vadd.f32 %v3839_v56, %v3785_v44  ;;  %v3832_v2 = vmul.f32 0.044715, %v3798_v57  ;;  %v3812_v3 = vpop.f32.mrf.mxu0  ;;  %v3828_v40 = vmul.f32 0.5, %v3798_v57 }
0x1667   : > { %v3845_v4 = vadd.f32 %v3841_v60, %v3811_v46  ;;  %v3834_v5 = vmul.f32 0.044715, %v3824_v62  ;;  %v3830_v38 = vmul.f32 0.5, %v3824_v62 }
0x1668   : > { %v3847_v25 = vmul.f32 0.7978846, %v3843_v0  ;;  %v3836_v6 = vmul.f32 %v3832_v2, %v3798_v57 }
0x1669   : > { %v3849_v7 = vmul.f32 0.7978846, %v3845_v4  ;;  %v3838_v10 = vmul.f32 %v3834_v5, %v3824_v62 }
0x166a   : > { %6100 = vtanh.f32 %v3847_v25  ;;  %v3840_v42 = vmul.f32 %v3836_v6, %v3798_v57 }
0x166b   : > { %6102 = vtanh.f32 %v3849_v7  ;;  %v3842_v11 = vmul.f32 %v3838_v10, %v3824_v62  ;;  %v3799_v13 = vpop.f32.mrf.mxu2 }
0x166c   : > { %v3844_v15 = vadd.f32 %v3840_v42, %v3798_v57  ;;  %v3825_v16 = vpop.f32.mrf.mxu3 }
0x166d   : > { %v3846_v50 = vadd.f32 %v3842_v11, %v3824_v62 }
0x166e   : > { %v3848_v18 = vmul.f32 0.7978846, %v3844_v15 }
0x166f   : > { %v3850_v31 = vmul.f32 0.7978846, %v3846_v50 }
0x1670   : > { %v6101_v21 = vpop.eup %6100  ;;  %6104 = vtanh.f32 %v3848_v18 }
0x1671   : > { %v6103_v47 = vpop.eup %6102  ;;  %v3855_v61 = vadd.f32 1.0, %v6101_v21  ;;  %6106 = vtanh.f32 %v3850_v31 }
0x1672   : > { %v3857_v35 = vadd.f32 1.0, %v6103_v47 }
0x1673   : > { %v3859_v27 = vmul.f32 %v3855_v61, %v3827_v23 }
0x1674   : > { %v3861_v29 = vmul.f32 %v3857_v35, %v3829_v59 }
0x1675   : > { %v3863_v32 = vmul.f32 %v3859_v27, %v3531_v39 }
0x1676   : > { %v6105_v33 = vpop.eup %6104  ;;  %v3865_v36 = vmul.f32 %v3861_v29, %v3557_v28 }
0x1677   : > { %v6107_v37 = vpop.eup %6106  ;;  %v3856_v20 = vadd.f32 1.0, %v6105_v33  ;;  %v3867_v41 = vpack.c.bf16 %v3863_v32, %v3863_v32 }
0x1678   : > { %v3858_v1 = vadd.f32 1.0, %v6107_v37  ;;  %v3869_v8 = vpack.c.bf16 %v3865_v36, %v3865_v36 }
0x1679   : > { %4139 = vmatmul.bf16.vlgmr.msra.gmra.mxu1 %v3867_v41  ;;  %v3860_v9 = vmul.f32 %v3856_v20, %v3828_v40 }
0x167a   : > { %4165 = vmatmul.bf16.vlgmr.msra.gmra.mxu0 %v3869_v8  ;;  %v3862_v44 = vmul.f32 %v3858_v1, %v3830_v38 }
0x167b   : > { %v3864_v45 = vmul.f32 %v3860_v9, %v3544_v43 }
0x167c   : > { %v3866_v46 = vmul.f32 %v3862_v44, %v3570_v24 }
0x167d   : > { %v3868_v48 = vpack.c.bf16 %v3864_v45, %v3864_v45 }
0x167e   : > { %v3870_v49 = vpack.c.bf16 %v3866_v46, %v3866_v46 }
0x167f   : > { %4152 = vmatmul.bf16.vlgmr.msra.gmra.mxu2 %v3868_v48 }
0x1680   : > { %4178 = vmatmul.bf16.vlgmr.msra.gmra.mxu3 %v3870_v49 }
0x16f6   : > { %v4140_v51 = vpop.f32.mrf.mxu1 }
0x16f7   : > { %v4166_v52 = vpop.f32.mrf.mxu0  ;;  %v4141_v12 = vadd.f32 %v6055_v26, %v4140_v51 }
0x16fe   : > { %v4142_v53 = vpop.f32.mrf.mxu1 }
0x16ff   : > { %v4168_v54 = vpop.f32.mrf.mxu0 }
0x1702   : > { %v4153_v55 = vpop.f32.mrf.mxu2 }
0x1703   : > { %v4154_v56 = vadd.f32 %v4153_v55, %v4141_v12  ;;  %v4179_v57 = vpop.f32.mrf.mxu3 }
0x1705   : > { %v4167_v58 = vadd.f32 %v4166_v52, %v4154_v56 }
0x1707   : > { %v4180_v60 = vadd.f32 %v4179_v57, %v4167_v58 }
0x1709   : > { %v4183_v62 = vadd.f32 %v4180_v60, %v7135_v17 }
0x170a   : > { %v4155_v63 = vpop.f32.mrf.mxu2 }
0x170b   : > { %v4181_v0 = vpop.f32.mrf.mxu3  ;;  %4184 = vst [vmem:[%s759_s9] sm:$0xff] %v4183_v62 }
0x170c   : > { %6135 = shalt.err (!%p6132_p6)
}
0x170d   : > { %5975 = dma.vmem_to_hbm [thread:$0]  (%p6381_p3), %s4201_s10, 128, %s4203_s1, %s4186_s0  }
0x170e PF: > { %s7786_s9 = sld [smem:[#allocation10_spill]] }
0x170f   : > { %s7787_s23 = sld [smem:[#allocation5_spill]] }
0x1714   : > { %p5981_p7 = scmp.ge.s32.totalorder %s7786_s9, 2 }
0x1715   : > { %s4214_s2 = sand.u32 1, %s7787_s23  }
0x1716   : > { %p5978_p9 = pnand %p5981_p7, %p6390_p8  ;;  %s4215_s29 = scalar_lea.sflag [#allocation3], %s4214_s2 }
0x1718   : > { %p5979_p10 = pneg %p5978_p9 }
0x171a   : > { %6169 = dma.done.wait (%p5979_p10), %s4215_s29, 128  }
0x171b   : > { %6171 = vsyncadd (%p5979_p10), %s4215_s29, 4294967168  ;;  %s37_s0 = sadd.s32 1, %s7786_s9   ;;  %s7789_s4 = sld [smem:[#allocation6_spill]] }
0x171c   : > { %p34_p11 = scmp.ge.s32.totalorder %s37_s0, 6   ;;  %s7790_s27 = sld [smem:[#allocation15_spill]] }
0x171d   : > { %s7791_s28 = sld [smem:[#allocation8_spill]]  ;;  %s7795_s5 = smov %s6178_s26 }
0x171e   : > { %s7792_s6 = sld [smem:[#allocation9_spill]]  ;;  %36 = sbr.rel (!%p34_p11) target bundleno = 19 (0x13), region = 179 }
0x171f   : > { %s7793_s2 = sld [smem:[#allocation11_spill]] }
0x1720   : > { %s7794_s29 = sld [smem:[#allocation13_spill]] }
0x1721   : > { %s7796_s26 = smov %s7789_s4 }
0x1723   :  { %4221 = vsyncpa [#allocation3], 1 }
0x1724   :  { %4223 = vsyncpa [#allocation3 + $0x1], 1 }

</bundles_post_ra>
